<compile_context>
chip_gen: v7x
topology: tpu7x:2x2x1
jax: 0.10.0
libtpu: 0.0.40
codegen_flags: <defaults>
</compile_context>

<pallas_src>
import functools

import jax
import jax.numpy as jnp
import numpy as np
from jax import lax
from jax.experimental import pallas as pl
from jax.experimental.pallas import tpu as pltpu

LANE = 128  # every feature / class dim is zero-padded to one full lane width


def gokg_fused_kernel(
    src_ref, dst_ref, a_ref, x_ref,
    wp1_ref, bp1_ref, ws1_ref, wn1_ref, b1_ref,
    wp2_ref, bp2_ref, ws2_ref, wn2_ref, b2_ref,
    w1p_ref, w2p_ref, bpred_ref,
    out_ref, hwsrc_ref, hwdst_ref,
    *, n_src, n_edges_pad,
):
    """Whole GOKGModel forward on VMEM-resident tensors.

    src/dst:   (Ep,)   int32 edge endpoints in SMEM (padded entries are 0)
    a_ref:     (Nr, Nl) dense adjacency, a[d, s] = 1.0 iff edge s -> d (lane-padded)
    x_ref:     (Nr, P)  node features, zero-padded to P = 128 lanes
    w*_ref:    (P, P)   weights (MXU dtype: f32 or bf16), b*: (1, P) f32 biases
    out_ref:   (Ep, P)  edge scores (valid block is [:E, :num_class])
    hwsrc/hwdst: (Nr, P) f32 scratch holding the class-projected node table
    """
    f32 = jnp.float32
    mxu_dt = wp1_ref.dtype          # bf16 fast path (v6e/v7x) or f32
    # -1e30 sentinel is safe (matches the -inf reference) because p = relu(...) >= 0,
    # so any node with at least one neighbour has a true max >= 0 > -1e30.
    neg = f32(-1e30)

    a = a_ref[...]                                           # (Nr, Nl) 0/1 f32
    has_nbr = jnp.sum(a, axis=1, keepdims=True) > 0.0        # (Nr, 1), reused by both layers

    def sage_layer(h, wp_ref, bpool_ref, ws_ref, wn_ref, bias_ref):
        hm = h.astype(mxu_dt)
        # pool transform: p = relu(h @ Wp + bp); MXU with f32 accumulation.
        p = jnp.maximum(
            jnp.dot(hm, wp_ref[...], preferred_element_type=f32) + bpool_ref[...],
            0.0)
        # Running masked max over in-neighbours: (Nr, F) live state, pure VPU,
        # no materialized (Nr, Ns, F) tensor.
        acc = jnp.full(p.shape, neg, f32)
        for s in range(n_src):                 # static unroll (small graphs; see TODO)
            nbr = a[:, s:s + 1] > 0.0          # (Nr, 1): edge s -> d exists?
            acc = jnp.maximum(acc, jnp.where(nbr, p[s:s + 1, :], neg))
        neigh = jnp.where(has_nbr, acc, 0.0)   # DGL: empty neighbourhood -> 0
        out = (jnp.dot(hm, ws_ref[...], preferred_element_type=f32)
               + jnp.dot(neigh.astype(mxu_dt), wn_ref[...], preferred_element_type=f32)
               + bias_ref[...])
        # F.normalize(p=2, dim=1, eps=1e-12) then ReLU, via rsqrt (EUP slot); f32.
        sq = jnp.sum(out * out, axis=1, keepdims=True)
        inv = lax.rsqrt(jnp.maximum(sq, f32(1e-24)))
        return jnp.maximum(out * inv, 0.0)

    h = sage_layer(x_ref[...], wp1_ref, bp1_ref, ws1_ref, wn1_ref, b1_ref)
    h = sage_layer(h, wp2_ref, bp2_ref, ws2_ref, wn2_ref, b2_ref)

    # Reassociated predictor: project all nodes to class space first (N x C) ...
    hm = h.astype(mxu_dt)
    hwsrc_ref[...] = jnp.dot(hm, w1p_ref[...], preferred_element_type=f32)
    hwdst_ref[...] = jnp.dot(hm, w2p_ref[...], preferred_element_type=f32)
    bpred = bpred_ref[...]                                   # (1, P)

    # ... then gather per-edge rows via SMEM indices (no O(E*N) one-hot matmuls).
    for e in range(n_edges_pad):               # static unroll (small E; see TODO)
        s = src_ref[e]
        d = dst_ref[e]
        out_ref[e:e + 1, :] = (hwsrc_ref[pl.ds(s, 1), :]
                               + hwdst_ref[pl.ds(d, 1), :] + bpred)


# ----------------------------- host wrappers -----------------------------

def _round_up(v, m):
    return ((v + m - 1) // m) * m


def _pad2d(m, rows, cols, dtype=jnp.float32):
    out = jnp.zeros((rows, cols), jnp.float32)
    out = out.at[: m.shape[0], : m.shape[1]].set(m.astype(jnp.float32))
    return out.astype(dtype)


def prepare_params(params, mxu_dtype=jnp.float32):
    """Pad / cast the 13 weight & bias tensors ONCE (hoisted out of the jitted path).

    Weights go to (LANE, LANE) in the MXU dtype (bf16 on v6e/v7x for half the DMA /
    VMEM bytes, f32 otherwise); biases stay f32 since they are added post-accumulation.
    """
    for k in ("wp1", "ws1", "wn1", "wp2", "ws2", "wn2", "wpred1", "wpred2"):
        assert max(params[k].shape) <= LANE, "feature dims > 128 need multi-tile padding"
    pw = lambda m: _pad2d(m, LANE, LANE, mxu_dtype)
    pb = lambda m: _pad2d(m, 1, LANE)
    return (
        pw(params["wp1"]), pb(params["bp1"]), pw(params["ws1"]), pw(params["wn1"]), pb(params["b1"]),
        pw(params["wp2"]), pb(params["bp2"]), pw(params["ws2"]), pw(params["wn2"]), pb(params["b2"]),
        pw(params["wpred1"]), pw(params["wpred2"]), pb(params["bpred"]),
    )


@functools.partial(jax.jit, static_argnames=("num_class",))
def gokg_forward(padded_params, adj, src, dst, x, *, num_class):
    n = adj.shape[0]
    e = src.shape[0]
    assert x.shape[1] <= LANE
    n_rows = _round_up(n, 8)          # node rows: sublane multiple
    n_lanes = _round_up(n, LANE)      # adjacency source axis: lane-dense (128)
    e_pad = _round_up(e, 8)

    adj_p = _pad2d(adj, n_rows, n_lanes)
    x_p = _pad2d(x, n_rows, LANE)
    src_p = jnp.zeros((e_pad,), jnp.int32).at[:e].set(src.astype(jnp.int32))
    dst_p = jnp.zeros((e_pad,), jnp.int32).at[:e].set(dst.astype(jnp.int32))

    kernel = functools.partial(gokg_fused_kernel, n_src=n, n_edges_pad=e_pad)
    vmem = pl.BlockSpec(memory_space=pltpu.MemorySpace.VMEM)
    smem = pl.BlockSpec(memory_space=pltpu.MemorySpace.SMEM)

    scores_pad = pl.pallas_call(
        kernel,
        out_shape=jax.ShapeDtypeStruct((e_pad, LANE), jnp.float32),
        in_specs=[smem, smem] + [vmem] * (2 + len(padded_params)),
        out_specs=vmem,
        scratch_shapes=[pltpu.VMEM((n_rows, LANE), jnp.float32),
                        pltpu.VMEM((n_rows, LANE), jnp.float32)],
        compiler_params=pltpu.CompilerParams(vmem_limit_bytes=32 * 1024 * 1024),
    )(src_p, dst_p, adj_p, x_p, *padded_params)

    return scores_pad[:e, :num_class]


# pure-JAX reference (mirrors the PyTorch/DGL semantics) for sanity checking
def gokg_reference(params, adj, src, dst, x):
    def layer(h, wp, bp, ws, wn, b):
        p = jnp.maximum(h @ wp + bp, 0.0)
        masked = jnp.where(adj[:, :, None] > 0.0, p[None, :, :], -jnp.inf)
        neigh = jnp.max(masked, axis=1)
        deg = jnp.sum(adj, axis=1, keepdims=True)
        neigh = jnp.where(deg > 0.0, neigh, 0.0)
        out = h @ ws + neigh @ wn + b
        denom = jnp.maximum(jnp.sqrt(jnp.sum(out * out, axis=1, keepdims=True)), 1e-12)
        return jnp.maximum(out / denom, 0.0)

    h = layer(x, params["wp1"], params["bp1"], params["ws1"], params["wn1"], params["b1"])
    h = layer(h, params["wp2"], params["bp2"], params["ws2"], params["wn2"], params["b2"])
    return h[src] @ params["wpred1"] + h[dst] @ params["wpred2"] + params["bpred"]


# ----------------------------- main -----------------------------

if __name__ == "__main__":
    # Full-f32 matmuls on both the kernel and the reference path -> tight check.
    jax.config.update("jax_default_matmul_precision", "highest")

    in_features, hidden_features, out_features, num_class = 16, 32, 16, 2
    n_nodes = 8

    keys = jax.random.split(jax.random.PRNGKey(0), 13)

    def init(k, shape, scale=0.1):
        return (scale * jax.random.normal(k, shape)).astype(jnp.float32)

    params = {
        # SAGEConv 1 (in -> hidden), pool aggregator
        "wp1": init(keys[0], (in_features, in_features)),
        "bp1": init(keys[1], (1, in_features)),
        "ws1": init(keys[2], (in_features, hidden_features)),
        "wn1": init(keys[3], (in_features, hidden_features)),
        "b1":  init(keys[4], (1, hidden_features)),
        # SAGEConv 2 (hidden -> out), pool aggregator
        "wp2": init(keys[5], (hidden_features, hidden_features)),
        "bp2": init(keys[6], (1, hidden_features)),
        "ws2": init(keys[7], (hidden_features, out_features)),
        "wn2": init(keys[8], (hidden_features, out_features)),
        "b2":  init(keys[9], (1, out_features)),
        # MLPPredictor: Linear(out_features*2 -> num_class), split into src/dst halves
        "wpred1": init(keys[10], (out_features, num_class)),
        "wpred2": init(keys[11], (out_features, num_class)),
        "bpred": jnp.zeros((1, num_class), dtype=jnp.float32),
    }

    # deterministic small graph: 8 nodes, 12 directed edges (src -> dst)
    edges = [(0, 1), (1, 2), (2, 3), (3, 4), (4, 5), (5, 6),
             (6, 7), (7, 0), (0, 2), (1, 3), (2, 5), (4, 7)]
    src = jnp.array([e[0] for e in edges], dtype=jnp.int32)
    dst = jnp.array([e[1] for e in edges], dtype=jnp.int32)
    n_edges = len(edges)

    # dense adjacency A[dst, src]
    adj = jnp.zeros((n_nodes, n_nodes), dtype=jnp.float32).at[dst, src].set(1.0)

    # node features
    x = jax.random.normal(keys[12], (n_nodes, in_features)).astype(jnp.float32)

    ref = gokg_reference(params, adj, src, dst, x)

    # f32 MXU-operand path: tight correctness check.
    pp_f32 = prepare_params(params, jnp.float32)
    scores = jax.block_until_ready(
        gokg_forward(pp_f32, adj, src, dst, x, num_class=num_class))
    assert scores.shape == (n_edges, num_class)
    np.testing.assert_allclose(np.asarray(scores), np.asarray(ref),
                               rtol=5e-3, atol=5e-4)

    # bf16 MXU-operand path (v6e/v7x): f32 accumulation, looser tolerance.
    pp_bf16 = prepare_params(params, jnp.bfloat16)
    scores_bf16 = jax.block_until_ready(
        gokg_forward(pp_bf16, adj, src, dst, x, num_class=num_class))
    np.testing.assert_allclose(np.asarray(scores_bf16), np.asarray(ref),
                               rtol=5e-2, atol=1e-2)

    print("KERNEL_OK")
</pallas_src>

<mosaic_0001>
module attributes {stable_mosaic.version = 11 : i64} {
  func.func @gokg_fused_kernel(%arg0: memref<16xi32, #tpu.memory_space<smem>>, %arg1: memref<16xi32, #tpu.memory_space<smem>>, %arg2: memref<8x128xf32, #tpu.memory_space<vmem>>, %arg3: memref<8x128xf32, #tpu.memory_space<vmem>>, %arg4: memref<128x128xf32, #tpu.memory_space<vmem>>, %arg5: memref<1x128xf32, #tpu.memory_space<vmem>>, %arg6: memref<128x128xf32, #tpu.memory_space<vmem>>, %arg7: memref<128x128xf32, #tpu.memory_space<vmem>>, %arg8: memref<1x128xf32, #tpu.memory_space<vmem>>, %arg9: memref<128x128xf32, #tpu.memory_space<vmem>>, %arg10: memref<1x128xf32, #tpu.memory_space<vmem>>, %arg11: memref<128x128xf32, #tpu.memory_space<vmem>>, %arg12: memref<128x128xf32, #tpu.memory_space<vmem>>, %arg13: memref<1x128xf32, #tpu.memory_space<vmem>>, %arg14: memref<128x128xf32, #tpu.memory_space<vmem>>, %arg15: memref<128x128xf32, #tpu.memory_space<vmem>>, %arg16: memref<1x128xf32, #tpu.memory_space<vmem>>, %arg17: memref<16x128xf32, #tpu.memory_space<vmem>>, %arg18: memref<8x128xf32, #tpu.memory_space<vmem>>, %arg19: memref<8x128xf32, #tpu.memory_space<vmem>>) attributes {dimension_semantics = [], scalar_prefetch = 0 : i64, scratch_operands = 2 : i64, tpu.core_type = #tpu.core_type<tc>} {
    %c0 = arith.constant 0 : index
    %c0_0 = arith.constant 0 : index
    %0 = vector.load %arg2[%c0, %c0_0] : memref<8x128xf32, #tpu.memory_space<vmem>>, vector<8x128xf32>
    %cst = arith.constant dense<0.000000e+00> : vector<8xf32>
    %1 = vector.multi_reduction <add>, %0, %cst [1] : vector<8x128xf32> to vector<8xf32>
    %2 = vector.shape_cast %1 : vector<8xf32> to vector<8x1xf32>
    %cst_1 = arith.constant 0.000000e+00 : f32
    %3 = vector.broadcast %cst_1 : f32 to vector<8x1xf32>
    %4 = arith.cmpf ogt, %2, %3 : vector<8x1xf32>
    %c0_2 = arith.constant 0 : index
    %c0_3 = arith.constant 0 : index
    %5 = vector.load %arg3[%c0_2, %c0_3] : memref<8x128xf32, #tpu.memory_space<vmem>>, vector<8x128xf32>
    %c0_4 = arith.constant 0 : index
    %c0_5 = arith.constant 0 : index
    %6 = vector.load %arg4[%c0_4, %c0_5] : memref<128x128xf32, #tpu.memory_space<vmem>>, vector<128x128xf32>
    %cst_6 = arith.constant dense<0.000000e+00> : vector<8x128xf32>
    %7 = tpu.matmul %5, %6, %cst_6 {dimension_numbers = #tpu.dot_dimension_numbers<[1], [0], [0], [1], [0, 0, 1, 1], [], []>, precision = #tpu.contract_precision<fp32>} : vector<8x128xf32>, vector<128x128xf32>, vector<8x128xf32> -> vector<8x128xf32>
    %c0_7 = arith.constant 0 : index
    %c0_8 = arith.constant 0 : index
    %8 = vector.load %arg5[%c0_7, %c0_8] : memref<1x128xf32, #tpu.memory_space<vmem>>, vector<1x128xf32>
    %9 = vector.broadcast %8 : vector<1x128xf32> to vector<8x128xf32>
    %10 = arith.addf %7, %9 : vector<8x128xf32>
    %cst_9 = arith.constant 0.000000e+00 : f32
    %11 = vector.broadcast %cst_9 : f32 to vector<8x128xf32>
    %12 = arith.maximumf %10, %11 : vector<8x128xf32>
    %cst_10 = arith.constant -1.000000e+30 : f32
    %13 = vector.broadcast %cst_10 : f32 to vector<8x128xf32>
    %14 = vector.extract_strided_slice %0 {offsets = [0, 0], sizes = [8, 1], strides = [1, 1]} : vector<8x128xf32> to vector<8x1xf32>
    %cst_11 = arith.constant 0.000000e+00 : f32
    %15 = vector.broadcast %cst_11 : f32 to vector<8x1xf32>
    %16 = arith.cmpf ogt, %14, %15 : vector<8x1xf32>
    %17 = vector.extract_strided_slice %12 {offsets = [0, 0], sizes = [1, 128], strides = [1, 1]} : vector<8x128xf32> to vector<1x128xf32>
    %cst_12 = arith.constant -1.000000e+30 : f32
    %18 = vector.shape_cast %16 : vector<8x1xi1> to vector<8x1xi1>
    %19 = vector.broadcast %18 : vector<8x1xi1> to vector<8x128xi1>
    %20 = vector.shape_cast %17 : vector<1x128xf32> to vector<1x128xf32>
    %21 = vector.broadcast %20 : vector<1x128xf32> to vector<8x128xf32>
    %22 = vector.broadcast %cst_12 : f32 to vector<8x128xf32>
    %23 = arith.select %19, %21, %22 : vector<8x128xi1>, vector<8x128xf32>
    %24 = arith.maximumf %13, %23 : vector<8x128xf32>
    %25 = vector.extract_strided_slice %0 {offsets = [0, 1], sizes = [8, 1], strides = [1, 1]} : vector<8x128xf32> to vector<8x1xf32>
    %cst_13 = arith.constant 0.000000e+00 : f32
    %26 = vector.broadcast %cst_13 : f32 to vector<8x1xf32>
    %27 = arith.cmpf ogt, %25, %26 : vector<8x1xf32>
    %28 = vector.extract_strided_slice %12 {offsets = [1, 0], sizes = [1, 128], strides = [1, 1]} : vector<8x128xf32> to vector<1x128xf32>
    %cst_14 = arith.constant -1.000000e+30 : f32
    %29 = vector.shape_cast %27 : vector<8x1xi1> to vector<8x1xi1>
    %30 = vector.broadcast %29 : vector<8x1xi1> to vector<8x128xi1>
    %31 = vector.shape_cast %28 : vector<1x128xf32> to vector<1x128xf32>
    %32 = vector.broadcast %31 : vector<1x128xf32> to vector<8x128xf32>
    %33 = vector.broadcast %cst_14 : f32 to vector<8x128xf32>
    %34 = arith.select %30, %32, %33 : vector<8x128xi1>, vector<8x128xf32>
    %35 = arith.maximumf %24, %34 : vector<8x128xf32>
    %36 = vector.extract_strided_slice %0 {offsets = [0, 2], sizes = [8, 1], strides = [1, 1]} : vector<8x128xf32> to vector<8x1xf32>
    %cst_15 = arith.constant 0.000000e+00 : f32
    %37 = vector.broadcast %cst_15 : f32 to vector<8x1xf32>
    %38 = arith.cmpf ogt, %36, %37 : vector<8x1xf32>
    %39 = vector.extract_strided_slice %12 {offsets = [2, 0], sizes = [1, 128], strides = [1, 1]} : vector<8x128xf32> to vector<1x128xf32>
    %cst_16 = arith.constant -1.000000e+30 : f32
    %40 = vector.shape_cast %38 : vector<8x1xi1> to vector<8x1xi1>
    %41 = vector.broadcast %40 : vector<8x1xi1> to vector<8x128xi1>
    %42 = vector.shape_cast %39 : vector<1x128xf32> to vector<1x128xf32>
    %43 = vector.broadcast %42 : vector<1x128xf32> to vector<8x128xf32>
    %44 = vector.broadcast %cst_16 : f32 to vector<8x128xf32>
    %45 = arith.select %41, %43, %44 : vector<8x128xi1>, vector<8x128xf32>
    %46 = arith.maximumf %35, %45 : vector<8x128xf32>
    %47 = vector.extract_strided_slice %0 {offsets = [0, 3], sizes = [8, 1], strides = [1, 1]} : vector<8x128xf32> to vector<8x1xf32>
    %cst_17 = arith.constant 0.000000e+00 : f32
    %48 = vector.broadcast %cst_17 : f32 to vector<8x1xf32>
    %49 = arith.cmpf ogt, %47, %48 : vector<8x1xf32>
    %50 = vector.extract_strided_slice %12 {offsets = [3, 0], sizes = [1, 128], strides = [1, 1]} : vector<8x128xf32> to vector<1x128xf32>
    %cst_18 = arith.constant -1.000000e+30 : f32
    %51 = vector.shape_cast %49 : vector<8x1xi1> to vector<8x1xi1>
    %52 = vector.broadcast %51 : vector<8x1xi1> to vector<8x128xi1>
    %53 = vector.shape_cast %50 : vector<1x128xf32> to vector<1x128xf32>
    %54 = vector.broadcast %53 : vector<1x128xf32> to vector<8x128xf32>
    %55 = vector.broadcast %cst_18 : f32 to vector<8x128xf32>
    %56 = arith.select %52, %54, %55 : vector<8x128xi1>, vector<8x128xf32>
    %57 = arith.maximumf %46, %56 : vector<8x128xf32>
    %58 = vector.extract_strided_slice %0 {offsets = [0, 4], sizes = [8, 1], strides = [1, 1]} : vector<8x128xf32> to vector<8x1xf32>
    %cst_19 = arith.constant 0.000000e+00 : f32
    %59 = vector.broadcast %cst_19 : f32 to vector<8x1xf32>
    %60 = arith.cmpf ogt, %58, %59 : vector<8x1xf32>
    %61 = vector.extract_strided_slice %12 {offsets = [4, 0], sizes = [1, 128], strides = [1, 1]} : vector<8x128xf32> to vector<1x128xf32>
    %cst_20 = arith.constant -1.000000e+30 : f32
    %62 = vector.shape_cast %60 : vector<8x1xi1> to vector<8x1xi1>
    %63 = vector.broadcast %62 : vector<8x1xi1> to vector<8x128xi1>
    %64 = vector.shape_cast %61 : vector<1x128xf32> to vector<1x128xf32>
    %65 = vector.broadcast %64 : vector<1x128xf32> to vector<8x128xf32>
    %66 = vector.broadcast %cst_20 : f32 to vector<8x128xf32>
    %67 = arith.select %63, %65, %66 : vector<8x128xi1>, vector<8x128xf32>
    %68 = arith.maximumf %57, %67 : vector<8x128xf32>
    %69 = vector.extract_strided_slice %0 {offsets = [0, 5], sizes = [8, 1], strides = [1, 1]} : vector<8x128xf32> to vector<8x1xf32>
    %cst_21 = arith.constant 0.000000e+00 : f32
    %70 = vector.broadcast %cst_21 : f32 to vector<8x1xf32>
    %71 = arith.cmpf ogt, %69, %70 : vector<8x1xf32>
    %72 = vector.extract_strided_slice %12 {offsets = [5, 0], sizes = [1, 128], strides = [1, 1]} : vector<8x128xf32> to vector<1x128xf32>
    %cst_22 = arith.constant -1.000000e+30 : f32
    %73 = vector.shape_cast %71 : vector<8x1xi1> to vector<8x1xi1>
    %74 = vector.broadcast %73 : vector<8x1xi1> to vector<8x128xi1>
    %75 = vector.shape_cast %72 : vector<1x128xf32> to vector<1x128xf32>
    %76 = vector.broadcast %75 : vector<1x128xf32> to vector<8x128xf32>
    %77 = vector.broadcast %cst_22 : f32 to vector<8x128xf32>
    %78 = arith.select %74, %76, %77 : vector<8x128xi1>, vector<8x128xf32>
    %79 = arith.maximumf %68, %78 : vector<8x128xf32>
    %80 = vector.extract_strided_slice %0 {offsets = [0, 6], sizes = [8, 1], strides = [1, 1]} : vector<8x128xf32> to vector<8x1xf32>
    %cst_23 = arith.constant 0.000000e+00 : f32
    %81 = vector.broadcast %cst_23 : f32 to vector<8x1xf32>
    %82 = arith.cmpf ogt, %80, %81 : vector<8x1xf32>
    %83 = vector.extract_strided_slice %12 {offsets = [6, 0], sizes = [1, 128], strides = [1, 1]} : vector<8x128xf32> to vector<1x128xf32>
    %cst_24 = arith.constant -1.000000e+30 : f32
    %84 = vector.shape_cast %82 : vector<8x1xi1> to vector<8x1xi1>
    %85 = vector.broadcast %84 : vector<8x1xi1> to vector<8x128xi1>
    %86 = vector.shape_cast %83 : vector<1x128xf32> to vector<1x128xf32>
    %87 = vector.broadcast %86 : vector<1x128xf32> to vector<8x128xf32>
    %88 = vector.broadcast %cst_24 : f32 to vector<8x128xf32>
    %89 = arith.select %85, %87, %88 : vector<8x128xi1>, vector<8x128xf32>
    %90 = arith.maximumf %79, %89 : vector<8x128xf32>
    %91 = vector.extract_strided_slice %0 {offsets = [0, 7], sizes = [8, 1], strides = [1, 1]} : vector<8x128xf32> to vector<8x1xf32>
    %cst_25 = arith.constant 0.000000e+00 : f32
    %92 = vector.broadcast %cst_25 : f32 to vector<8x1xf32>
    %93 = arith.cmpf ogt, %91, %92 : vector<8x1xf32>
    %94 = vector.extract_strided_slice %12 {offsets = [7, 0], sizes = [1, 128], strides = [1, 1]} : vector<8x128xf32> to vector<1x128xf32>
    %cst_26 = arith.constant -1.000000e+30 : f32
    %95 = vector.shape_cast %93 : vector<8x1xi1> to vector<8x1xi1>
    %96 = vector.broadcast %95 : vector<8x1xi1> to vector<8x128xi1>
    %97 = vector.shape_cast %94 : vector<1x128xf32> to vector<1x128xf32>
    %98 = vector.broadcast %97 : vector<1x128xf32> to vector<8x128xf32>
    %99 = vector.broadcast %cst_26 : f32 to vector<8x128xf32>
    %100 = arith.select %96, %98, %99 : vector<8x128xi1>, vector<8x128xf32>
    %101 = arith.maximumf %90, %100 : vector<8x128xf32>
    %cst_27 = arith.constant 0.000000e+00 : f32
    %102 = vector.shape_cast %4 : vector<8x1xi1> to vector<8x1xi1>
    %103 = vector.broadcast %102 : vector<8x1xi1> to vector<8x128xi1>
    %104 = vector.broadcast %cst_27 : f32 to vector<8x128xf32>
    %105 = arith.select %103, %101, %104 : vector<8x128xi1>, vector<8x128xf32>
    %c0_28 = arith.constant 0 : index
    %c0_29 = arith.constant 0 : index
    %106 = vector.load %arg6[%c0_28, %c0_29] : memref<128x128xf32, #tpu.memory_space<vmem>>, vector<128x128xf32>
    %cst_30 = arith.constant dense<0.000000e+00> : vector<8x128xf32>
    %107 = tpu.matmul %5, %106, %cst_30 {dimension_numbers = #tpu.dot_dimension_numbers<[1], [0], [0], [1], [0, 0, 1, 1], [], []>, precision = #tpu.contract_precision<fp32>} : vector<8x128xf32>, vector<128x128xf32>, vector<8x128xf32> -> vector<8x128xf32>
    %c0_31 = arith.constant 0 : index
    %c0_32 = arith.constant 0 : index
    %108 = vector.load %arg7[%c0_31, %c0_32] : memref<128x128xf32, #tpu.memory_space<vmem>>, vector<128x128xf32>
    %cst_33 = arith.constant dense<0.000000e+00> : vector<8x128xf32>
    %109 = tpu.matmul %105, %108, %cst_33 {dimension_numbers = #tpu.dot_dimension_numbers<[1], [0], [0], [1], [0, 0, 1, 1], [], []>, precision = #tpu.contract_precision<fp32>} : vector<8x128xf32>, vector<128x128xf32>, vector<8x128xf32> -> vector<8x128xf32>
    %110 = arith.addf %107, %109 : vector<8x128xf32>
    %c0_34 = arith.constant 0 : index
    %c0_35 = arith.constant 0 : index
    %111 = vector.load %arg8[%c0_34, %c0_35] : memref<1x128xf32, #tpu.memory_space<vmem>>, vector<1x128xf32>
    %112 = vector.broadcast %111 : vector<1x128xf32> to vector<8x128xf32>
    %113 = arith.addf %110, %112 : vector<8x128xf32>
    %114 = arith.mulf %113, %113 : vector<8x128xf32>
    %cst_36 = arith.constant dense<0.000000e+00> : vector<8xf32>
    %115 = vector.multi_reduction <add>, %114, %cst_36 [1] : vector<8x128xf32> to vector<8xf32>
    %116 = vector.shape_cast %115 : vector<8xf32> to vector<8x1xf32>
    %cst_37 = arith.constant 1.000000e-24 : f32
    %117 = vector.broadcast %cst_37 : f32 to vector<8x1xf32>
    %118 = arith.maximumf %116, %117 : vector<8x1xf32>
    %119 = math.rsqrt %118 : vector<8x1xf32>
    %120 = vector.broadcast %119 : vector<8x1xf32> to vector<8x128xf32>
    %121 = arith.mulf %113, %120 : vector<8x128xf32>
    %cst_38 = arith.constant 0.000000e+00 : f32
    %122 = vector.broadcast %cst_38 : f32 to vector<8x128xf32>
    %123 = arith.maximumf %121, %122 : vector<8x128xf32>
    %c0_39 = arith.constant 0 : index
    %c0_40 = arith.constant 0 : index
    %124 = vector.load %arg9[%c0_39, %c0_40] : memref<128x128xf32, #tpu.memory_space<vmem>>, vector<128x128xf32>
    %cst_41 = arith.constant dense<0.000000e+00> : vector<8x128xf32>
    %125 = tpu.matmul %123, %124, %cst_41 {dimension_numbers = #tpu.dot_dimension_numbers<[1], [0], [0], [1], [0, 0, 1, 1], [], []>, precision = #tpu.contract_precision<fp32>} : vector<8x128xf32>, vector<128x128xf32>, vector<8x128xf32> -> vector<8x128xf32>
    %c0_42 = arith.constant 0 : index
    %c0_43 = arith.constant 0 : index
    %126 = vector.load %arg10[%c0_42, %c0_43] : memref<1x128xf32, #tpu.memory_space<vmem>>, vector<1x128xf32>
    %127 = vector.broadcast %126 : vector<1x128xf32> to vector<8x128xf32>
    %128 = arith.addf %125, %127 : vector<8x128xf32>
    %cst_44 = arith.constant 0.000000e+00 : f32
    %129 = vector.broadcast %cst_44 : f32 to vector<8x128xf32>
    %130 = arith.maximumf %128, %129 : vector<8x128xf32>
    %cst_45 = arith.constant -1.000000e+30 : f32
    %131 = vector.broadcast %cst_45 : f32 to vector<8x128xf32>
    %132 = vector.extract_strided_slice %0 {offsets = [0, 0], sizes = [8, 1], strides = [1, 1]} : vector<8x128xf32> to vector<8x1xf32>
    %cst_46 = arith.constant 0.000000e+00 : f32
    %133 = vector.broadcast %cst_46 : f32 to vector<8x1xf32>
    %134 = arith.cmpf ogt, %132, %133 : vector<8x1xf32>
    %135 = vector.extract_strided_slice %130 {offsets = [0, 0], sizes = [1, 128], strides = [1, 1]} : vector<8x128xf32> to vector<1x128xf32>
    %cst_47 = arith.constant -1.000000e+30 : f32
    %136 = vector.shape_cast %134 : vector<8x1xi1> to vector<8x1xi1>
    %137 = vector.broadcast %136 : vector<8x1xi1> to vector<8x128xi1>
    %138 = vector.shape_cast %135 : vector<1x128xf32> to vector<1x128xf32>
    %139 = vector.broadcast %138 : vector<1x128xf32> to vector<8x128xf32>
    %140 = vector.broadcast %cst_47 : f32 to vector<8x128xf32>
    %141 = arith.select %137, %139, %140 : vector<8x128xi1>, vector<8x128xf32>
    %142 = arith.maximumf %131, %141 : vector<8x128xf32>
    %143 = vector.extract_strided_slice %0 {offsets = [0, 1], sizes = [8, 1], strides = [1, 1]} : vector<8x128xf32> to vector<8x1xf32>
    %cst_48 = arith.constant 0.000000e+00 : f32
    %144 = vector.broadcast %cst_48 : f32 to vector<8x1xf32>
    %145 = arith.cmpf ogt, %143, %144 : vector<8x1xf32>
    %146 = vector.extract_strided_slice %130 {offsets = [1, 0], sizes = [1, 128], strides = [1, 1]} : vector<8x128xf32> to vector<1x128xf32>
    %cst_49 = arith.constant -1.000000e+30 : f32
    %147 = vector.shape_cast %145 : vector<8x1xi1> to vector<8x1xi1>
    %148 = vector.broadcast %147 : vector<8x1xi1> to vector<8x128xi1>
    %149 = vector.shape_cast %146 : vector<1x128xf32> to vector<1x128xf32>
    %150 = vector.broadcast %149 : vector<1x128xf32> to vector<8x128xf32>
    %151 = vector.broadcast %cst_49 : f32 to vector<8x128xf32>
    %152 = arith.select %148, %150, %151 : vector<8x128xi1>, vector<8x128xf32>
    %153 = arith.maximumf %142, %152 : vector<8x128xf32>
    %154 = vector.extract_strided_slice %0 {offsets = [0, 2], sizes = [8, 1], strides = [1, 1]} : vector<8x128xf32> to vector<8x1xf32>
    %cst_50 = arith.constant 0.000000e+00 : f32
    %155 = vector.broadcast %cst_50 : f32 to vector<8x1xf32>
    %156 = arith.cmpf ogt, %154, %155 : vector<8x1xf32>
    %157 = vector.extract_strided_slice %130 {offsets = [2, 0], sizes = [1, 128], strides = [1, 1]} : vector<8x128xf32> to vector<1x128xf32>
    %cst_51 = arith.constant -1.000000e+30 : f32
    %158 = vector.shape_cast %156 : vector<8x1xi1> to vector<8x1xi1>
    %159 = vector.broadcast %158 : vector<8x1xi1> to vector<8x128xi1>
    %160 = vector.shape_cast %157 : vector<1x128xf32> to vector<1x128xf32>
    %161 = vector.broadcast %160 : vector<1x128xf32> to vector<8x128xf32>
    %162 = vector.broadcast %cst_51 : f32 to vector<8x128xf32>
    %163 = arith.select %159, %161, %162 : vector<8x128xi1>, vector<8x128xf32>
    %164 = arith.maximumf %153, %163 : vector<8x128xf32>
    %165 = vector.extract_strided_slice %0 {offsets = [0, 3], sizes = [8, 1], strides = [1, 1]} : vector<8x128xf32> to vector<8x1xf32>
    %cst_52 = arith.constant 0.000000e+00 : f32
    %166 = vector.broadcast %cst_52 : f32 to vector<8x1xf32>
    %167 = arith.cmpf ogt, %165, %166 : vector<8x1xf32>
    %168 = vector.extract_strided_slice %130 {offsets = [3, 0], sizes = [1, 128], strides = [1, 1]} : vector<8x128xf32> to vector<1x128xf32>
    %cst_53 = arith.constant -1.000000e+30 : f32
    %169 = vector.shape_cast %167 : vector<8x1xi1> to vector<8x1xi1>
    %170 = vector.broadcast %169 : vector<8x1xi1> to vector<8x128xi1>
    %171 = vector.shape_cast %168 : vector<1x128xf32> to vector<1x128xf32>
    %172 = vector.broadcast %171 : vector<1x128xf32> to vector<8x128xf32>
    %173 = vector.broadcast %cst_53 : f32 to vector<8x128xf32>
    %174 = arith.select %170, %172, %173 : vector<8x128xi1>, vector<8x128xf32>
    %175 = arith.maximumf %164, %174 : vector<8x128xf32>
    %176 = vector.extract_strided_slice %0 {offsets = [0, 4], sizes = [8, 1], strides = [1, 1]} : vector<8x128xf32> to vector<8x1xf32>
    %cst_54 = arith.constant 0.000000e+00 : f32
    %177 = vector.broadcast %cst_54 : f32 to vector<8x1xf32>
    %178 = arith.cmpf ogt, %176, %177 : vector<8x1xf32>
    %179 = vector.extract_strided_slice %130 {offsets = [4, 0], sizes = [1, 128], strides = [1, 1]} : vector<8x128xf32> to vector<1x128xf32>
    %cst_55 = arith.constant -1.000000e+30 : f32
    %180 = vector.shape_cast %178 : vector<8x1xi1> to vector<8x1xi1>
    %181 = vector.broadcast %180 : vector<8x1xi1> to vector<8x128xi1>
    %182 = vector.shape_cast %179 : vector<1x128xf32> to vector<1x128xf32>
    %183 = vector.broadcast %182 : vector<1x128xf32> to vector<8x128xf32>
    %184 = vector.broadcast %cst_55 : f32 to vector<8x128xf32>
    %185 = arith.select %181, %183, %184 : vector<8x128xi1>, vector<8x128xf32>
    %186 = arith.maximumf %175, %185 : vector<8x128xf32>
    %187 = vector.extract_strided_slice %0 {offsets = [0, 5], sizes = [8, 1], strides = [1, 1]} : vector<8x128xf32> to vector<8x1xf32>
    %cst_56 = arith.constant 0.000000e+00 : f32
    %188 = vector.broadcast %cst_56 : f32 to vector<8x1xf32>
    %189 = arith.cmpf ogt, %187, %188 : vector<8x1xf32>
    %190 = vector.extract_strided_slice %130 {offsets = [5, 0], sizes = [1, 128], strides = [1, 1]} : vector<8x128xf32> to vector<1x128xf32>
    %cst_57 = arith.constant -1.000000e+30 : f32
    %191 = vector.shape_cast %189 : vector<8x1xi1> to vector<8x1xi1>
    %192 = vector.broadcast %191 : vector<8x1xi1> to vector<8x128xi1>
    %193 = vector.shape_cast %190 : vector<1x128xf32> to vector<1x128xf32>
    %194 = vector.broadcast %193 : vector<1x128xf32> to vector<8x128xf32>
    %195 = vector.broadcast %cst_57 : f32 to vector<8x128xf32>
    %196 = arith.select %192, %194, %195 : vector<8x128xi1>, vector<8x128xf32>
    %197 = arith.maximumf %186, %196 : vector<8x128xf32>
    %198 = vector.extract_strided_slice %0 {offsets = [0, 6], sizes = [8, 1], strides = [1, 1]} : vector<8x128xf32> to vector<8x1xf32>
    %cst_58 = arith.constant 0.000000e+00 : f32
    %199 = vector.broadcast %cst_58 : f32 to vector<8x1xf32>
    %200 = arith.cmpf ogt, %198, %199 : vector<8x1xf32>
    %201 = vector.extract_strided_slice %130 {offsets = [6, 0], sizes = [1, 128], strides = [1, 1]} : vector<8x128xf32> to vector<1x128xf32>
    %cst_59 = arith.constant -1.000000e+30 : f32
    %202 = vector.shape_cast %200 : vector<8x1xi1> to vector<8x1xi1>
    %203 = vector.broadcast %202 : vector<8x1xi1> to vector<8x128xi1>
    %204 = vector.shape_cast %201 : vector<1x128xf32> to vector<1x128xf32>
    %205 = vector.broadcast %204 : vector<1x128xf32> to vector<8x128xf32>
    %206 = vector.broadcast %cst_59 : f32 to vector<8x128xf32>
    %207 = arith.select %203, %205, %206 : vector<8x128xi1>, vector<8x128xf32>
    %208 = arith.maximumf %197, %207 : vector<8x128xf32>
    %209 = vector.extract_strided_slice %0 {offsets = [0, 7], sizes = [8, 1], strides = [1, 1]} : vector<8x128xf32> to vector<8x1xf32>
    %cst_60 = arith.constant 0.000000e+00 : f32
    %210 = vector.broadcast %cst_60 : f32 to vector<8x1xf32>
    %211 = arith.cmpf ogt, %209, %210 : vector<8x1xf32>
    %212 = vector.extract_strided_slice %130 {offsets = [7, 0], sizes = [1, 128], strides = [1, 1]} : vector<8x128xf32> to vector<1x128xf32>
    %cst_61 = arith.constant -1.000000e+30 : f32
    %213 = vector.shape_cast %211 : vector<8x1xi1> to vector<8x1xi1>
    %214 = vector.broadcast %213 : vector<8x1xi1> to vector<8x128xi1>
    %215 = vector.shape_cast %212 : vector<1x128xf32> to vector<1x128xf32>
    %216 = vector.broadcast %215 : vector<1x128xf32> to vector<8x128xf32>
    %217 = vector.broadcast %cst_61 : f32 to vector<8x128xf32>
    %218 = arith.select %214, %216, %217 : vector<8x128xi1>, vector<8x128xf32>
    %219 = arith.maximumf %208, %218 : vector<8x128xf32>
    %cst_62 = arith.constant 0.000000e+00 : f32
    %220 = vector.shape_cast %4 : vector<8x1xi1> to vector<8x1xi1>
    %221 = vector.broadcast %220 : vector<8x1xi1> to vector<8x128xi1>
    %222 = vector.broadcast %cst_62 : f32 to vector<8x128xf32>
    %223 = arith.select %221, %219, %222 : vector<8x128xi1>, vector<8x128xf32>
    %c0_63 = arith.constant 0 : index
    %c0_64 = arith.constant 0 : index
    %224 = vector.load %arg11[%c0_63, %c0_64] : memref<128x128xf32, #tpu.memory_space<vmem>>, vector<128x128xf32>
    %cst_65 = arith.constant dense<0.000000e+00> : vector<8x128xf32>
    %225 = tpu.matmul %123, %224, %cst_65 {dimension_numbers = #tpu.dot_dimension_numbers<[1], [0], [0], [1], [0, 0, 1, 1], [], []>, precision = #tpu.contract_precision<fp32>} : vector<8x128xf32>, vector<128x128xf32>, vector<8x128xf32> -> vector<8x128xf32>
    %c0_66 = arith.constant 0 : index
    %c0_67 = arith.constant 0 : index
    %226 = vector.load %arg12[%c0_66, %c0_67] : memref<128x128xf32, #tpu.memory_space<vmem>>, vector<128x128xf32>
    %cst_68 = arith.constant dense<0.000000e+00> : vector<8x128xf32>
    %227 = tpu.matmul %223, %226, %cst_68 {dimension_numbers = #tpu.dot_dimension_numbers<[1], [0], [0], [1], [0, 0, 1, 1], [], []>, precision = #tpu.contract_precision<fp32>} : vector<8x128xf32>, vector<128x128xf32>, vector<8x128xf32> -> vector<8x128xf32>
    %228 = arith.addf %225, %227 : vector<8x128xf32>
    %c0_69 = arith.constant 0 : index
    %c0_70 = arith.constant 0 : index
    %229 = vector.load %arg13[%c0_69, %c0_70] : memref<1x128xf32, #tpu.memory_space<vmem>>, vector<1x128xf32>
    %230 = vector.broadcast %229 : vector<1x128xf32> to vector<8x128xf32>
    %231 = arith.addf %228, %230 : vector<8x128xf32>
    %232 = arith.mulf %231, %231 : vector<8x128xf32>
    %cst_71 = arith.constant dense<0.000000e+00> : vector<8xf32>
    %233 = vector.multi_reduction <add>, %232, %cst_71 [1] : vector<8x128xf32> to vector<8xf32>
    %234 = vector.shape_cast %233 : vector<8xf32> to vector<8x1xf32>
    %cst_72 = arith.constant 1.000000e-24 : f32
    %235 = vector.broadcast %cst_72 : f32 to vector<8x1xf32>
    %236 = arith.maximumf %234, %235 : vector<8x1xf32>
    %237 = math.rsqrt %236 : vector<8x1xf32>
    %238 = vector.broadcast %237 : vector<8x1xf32> to vector<8x128xf32>
    %239 = arith.mulf %231, %238 : vector<8x128xf32>
    %cst_73 = arith.constant 0.000000e+00 : f32
    %240 = vector.broadcast %cst_73 : f32 to vector<8x128xf32>
    %241 = arith.maximumf %239, %240 : vector<8x128xf32>
    %c0_74 = arith.constant 0 : index
    %c0_75 = arith.constant 0 : index
    %242 = vector.load %arg14[%c0_74, %c0_75] : memref<128x128xf32, #tpu.memory_space<vmem>>, vector<128x128xf32>
    %cst_76 = arith.constant dense<0.000000e+00> : vector<8x128xf32>
    %243 = tpu.matmul %241, %242, %cst_76 {dimension_numbers = #tpu.dot_dimension_numbers<[1], [0], [0], [1], [0, 0, 1, 1], [], []>, precision = #tpu.contract_precision<fp32>} : vector<8x128xf32>, vector<128x128xf32>, vector<8x128xf32> -> vector<8x128xf32>
    %c0_77 = arith.constant 0 : index
    %c0_78 = arith.constant 0 : index
    %244 = vector.load %arg18[%c0_77, %c0_78] : memref<8x128xf32, #tpu.memory_space<vmem>>, vector<8x128xf32>
    tpu.vector_store %arg18[%c0_77, %c0_78], %243 {strides = array<i32>} : memref<8x128xf32, #tpu.memory_space<vmem>>, vector<8x128xf32>,
    %c0_79 = arith.constant 0 : index
    %c0_80 = arith.constant 0 : index
    %245 = vector.load %arg15[%c0_79, %c0_80] : memref<128x128xf32, #tpu.memory_space<vmem>>, vector<128x128xf32>
    %cst_81 = arith.constant dense<0.000000e+00> : vector<8x128xf32>
    %246 = tpu.matmul %241, %245, %cst_81 {dimension_numbers = #tpu.dot_dimension_numbers<[1], [0], [0], [1], [0, 0, 1, 1], [], []>, precision = #tpu.contract_precision<fp32>} : vector<8x128xf32>, vector<128x128xf32>, vector<8x128xf32> -> vector<8x128xf32>
    %c0_82 = arith.constant 0 : index
    %c0_83 = arith.constant 0 : index
    %247 = vector.load %arg19[%c0_82, %c0_83] : memref<8x128xf32, #tpu.memory_space<vmem>>, vector<8x128xf32>
    tpu.vector_store %arg19[%c0_82, %c0_83], %246 {strides = array<i32>} : memref<8x128xf32, #tpu.memory_space<vmem>>, vector<8x128xf32>,
    %c0_84 = arith.constant 0 : index
    %c0_85 = arith.constant 0 : index
    %248 = vector.load %arg16[%c0_84, %c0_85] : memref<1x128xf32, #tpu.memory_space<vmem>>, vector<1x128xf32>
    %c0_86 = arith.constant 0 : index
    %249 = memref.load %arg0[%c0_86] : memref<16xi32, #tpu.memory_space<smem>>
    %c0_87 = arith.constant 0 : index
    %250 = memref.load %arg1[%c0_87] : memref<16xi32, #tpu.memory_space<smem>>
    %251 = arith.index_cast %249 : i32 to index
    %c0_88 = arith.constant 0 : index
    %252 = vector.load %arg18[%251, %c0_88] : memref<8x128xf32, #tpu.memory_space<vmem>>, vector<1x128xf32>
    %253 = arith.index_cast %250 : i32 to index
    %c0_89 = arith.constant 0 : index
    %254 = vector.load %arg19[%253, %c0_89] : memref<8x128xf32, #tpu.memory_space<vmem>>, vector<1x128xf32>
    %255 = arith.addf %252, %254 : vector<1x128xf32>
    %256 = arith.addf %255, %248 : vector<1x128xf32>
    %c0_90 = arith.constant 0 : index
    %c0_91 = arith.constant 0 : index
    %257 = vector.load %arg17[%c0_90, %c0_91] : memref<16x128xf32, #tpu.memory_space<vmem>>, vector<1x128xf32>
    tpu.vector_store %arg17[%c0_90, %c0_91], %256 {strides = array<i32>} : memref<16x128xf32, #tpu.memory_space<vmem>>, vector<1x128xf32>,
    %c1 = arith.constant 1 : index
    %258 = memref.load %arg0[%c1] : memref<16xi32, #tpu.memory_space<smem>>
    %c1_92 = arith.constant 1 : index
    %259 = memref.load %arg1[%c1_92] : memref<16xi32, #tpu.memory_space<smem>>
    %260 = arith.index_cast %258 : i32 to index
    %c0_93 = arith.constant 0 : index
    %261 = vector.load %arg18[%260, %c0_93] : memref<8x128xf32, #tpu.memory_space<vmem>>, vector<1x128xf32>
    %262 = arith.index_cast %259 : i32 to index
    %c0_94 = arith.constant 0 : index
    %263 = vector.load %arg19[%262, %c0_94] : memref<8x128xf32, #tpu.memory_space<vmem>>, vector<1x128xf32>
    %264 = arith.addf %261, %263 : vector<1x128xf32>
    %265 = arith.addf %264, %248 : vector<1x128xf32>
    %c1_95 = arith.constant 1 : index
    %c0_96 = arith.constant 0 : index
    %266 = vector.load %arg17[%c1_95, %c0_96] : memref<16x128xf32, #tpu.memory_space<vmem>>, vector<1x128xf32>
    tpu.vector_store %arg17[%c1_95, %c0_96], %265 {strides = array<i32>} : memref<16x128xf32, #tpu.memory_space<vmem>>, vector<1x128xf32>,
    %c2 = arith.constant 2 : index
    %267 = memref.load %arg0[%c2] : memref<16xi32, #tpu.memory_space<smem>>
    %c2_97 = arith.constant 2 : index
    %268 = memref.load %arg1[%c2_97] : memref<16xi32, #tpu.memory_space<smem>>
    %269 = arith.index_cast %267 : i32 to index
    %c0_98 = arith.constant 0 : index
    %270 = vector.load %arg18[%269, %c0_98] : memref<8x128xf32, #tpu.memory_space<vmem>>, vector<1x128xf32>
    %271 = arith.index_cast %268 : i32 to index
    %c0_99 = arith.constant 0 : index
    %272 = vector.load %arg19[%271, %c0_99] : memref<8x128xf32, #tpu.memory_space<vmem>>, vector<1x128xf32>
    %273 = arith.addf %270, %272 : vector<1x128xf32>
    %274 = arith.addf %273, %248 : vector<1x128xf32>
    %c2_100 = arith.constant 2 : index
    %c0_101 = arith.constant 0 : index
    %275 = vector.load %arg17[%c2_100, %c0_101] : memref<16x128xf32, #tpu.memory_space<vmem>>, vector<1x128xf32>
    tpu.vector_store %arg17[%c2_100, %c0_101], %274 {strides = array<i32>} : memref<16x128xf32, #tpu.memory_space<vmem>>, vector<1x128xf32>,
    %c3 = arith.constant 3 : index
    %276 = memref.load %arg0[%c3] : memref<16xi32, #tpu.memory_space<smem>>
    %c3_102 = arith.constant 3 : index
    %277 = memref.load %arg1[%c3_102] : memref<16xi32, #tpu.memory_space<smem>>
    %278 = arith.index_cast %276 : i32 to index
    %c0_103 = arith.constant 0 : index
    %279 = vector.load %arg18[%278, %c0_103] : memref<8x128xf32, #tpu.memory_space<vmem>>, vector<1x128xf32>
    %280 = arith.index_cast %277 : i32 to index
    %c0_104 = arith.constant 0 : index
    %281 = vector.load %arg19[%280, %c0_104] : memref<8x128xf32, #tpu.memory_space<vmem>>, vector<1x128xf32>
    %282 = arith.addf %279, %281 : vector<1x128xf32>
    %283 = arith.addf %282, %248 : vector<1x128xf32>
    %c3_105 = arith.constant 3 : index
    %c0_106 = arith.constant 0 : index
    %284 = vector.load %arg17[%c3_105, %c0_106] : memref<16x128xf32, #tpu.memory_space<vmem>>, vector<1x128xf32>
    tpu.vector_store %arg17[%c3_105, %c0_106], %283 {strides = array<i32>} : memref<16x128xf32, #tpu.memory_space<vmem>>, vector<1x128xf32>,
    %c4 = arith.constant 4 : index
    %285 = memref.load %arg0[%c4] : memref<16xi32, #tpu.memory_space<smem>>
    %c4_107 = arith.constant 4 : index
    %286 = memref.load %arg1[%c4_107] : memref<16xi32, #tpu.memory_space<smem>>
    %287 = arith.index_cast %285 : i32 to index
    %c0_108 = arith.constant 0 : index
    %288 = vector.load %arg18[%287, %c0_108] : memref<8x128xf32, #tpu.memory_space<vmem>>, vector<1x128xf32>
    %289 = arith.index_cast %286 : i32 to index
    %c0_109 = arith.constant 0 : index
    %290 = vector.load %arg19[%289, %c0_109] : memref<8x128xf32, #tpu.memory_space<vmem>>, vector<1x128xf32>
    %291 = arith.addf %288, %290 : vector<1x128xf32>
    %292 = arith.addf %291, %248 : vector<1x128xf32>
    %c4_110 = arith.constant 4 : index
    %c0_111 = arith.constant 0 : index
    %293 = vector.load %arg17[%c4_110, %c0_111] : memref<16x128xf32, #tpu.memory_space<vmem>>, vector<1x128xf32>
    tpu.vector_store %arg17[%c4_110, %c0_111], %292 {strides = array<i32>} : memref<16x128xf32, #tpu.memory_space<vmem>>, vector<1x128xf32>,
    %c5 = arith.constant 5 : index
    %294 = memref.load %arg0[%c5] : memref<16xi32, #tpu.memory_space<smem>>
    %c5_112 = arith.constant 5 : index
    %295 = memref.load %arg1[%c5_112] : memref<16xi32, #tpu.memory_space<smem>>
    %296 = arith.index_cast %294 : i32 to index
    %c0_113 = arith.constant 0 : index
    %297 = vector.load %arg18[%296, %c0_113] : memref<8x128xf32, #tpu.memory_space<vmem>>, vector<1x128xf32>
    %298 = arith.index_cast %295 : i32 to index
    %c0_114 = arith.constant 0 : index
    %299 = vector.load %arg19[%298, %c0_114] : memref<8x128xf32, #tpu.memory_space<vmem>>, vector<1x128xf32>
    %300 = arith.addf %297, %299 : vector<1x128xf32>
    %301 = arith.addf %300, %248 : vector<1x128xf32>
    %c5_115 = arith.constant 5 : index
    %c0_116 = arith.constant 0 : index
    %302 = vector.load %arg17[%c5_115, %c0_116] : memref<16x128xf32, #tpu.memory_space<vmem>>, vector<1x128xf32>
    tpu.vector_store %arg17[%c5_115, %c0_116], %301 {strides = array<i32>} : memref<16x128xf32, #tpu.memory_space<vmem>>, vector<1x128xf32>,
    %c6 = arith.constant 6 : index
    %303 = memref.load %arg0[%c6] : memref<16xi32, #tpu.memory_space<smem>>
    %c6_117 = arith.constant 6 : index
    %304 = memref.load %arg1[%c6_117] : memref<16xi32, #tpu.memory_space<smem>>
    %305 = arith.index_cast %303 : i32 to index
    %c0_118 = arith.constant 0 : index
    %306 = vector.load %arg18[%305, %c0_118] : memref<8x128xf32, #tpu.memory_space<vmem>>, vector<1x128xf32>
    %307 = arith.index_cast %304 : i32 to index
    %c0_119 = arith.constant 0 : index
    %308 = vector.load %arg19[%307, %c0_119] : memref<8x128xf32, #tpu.memory_space<vmem>>, vector<1x128xf32>
    %309 = arith.addf %306, %308 : vector<1x128xf32>
    %310 = arith.addf %309, %248 : vector<1x128xf32>
    %c6_120 = arith.constant 6 : index
    %c0_121 = arith.constant 0 : index
    %311 = vector.load %arg17[%c6_120, %c0_121] : memref<16x128xf32, #tpu.memory_space<vmem>>, vector<1x128xf32>
    tpu.vector_store %arg17[%c6_120, %c0_121], %310 {strides = array<i32>} : memref<16x128xf32, #tpu.memory_space<vmem>>, vector<1x128xf32>,
    %c7 = arith.constant 7 : index
    %312 = memref.load %arg0[%c7] : memref<16xi32, #tpu.memory_space<smem>>
    %c7_122 = arith.constant 7 : index
    %313 = memref.load %arg1[%c7_122] : memref<16xi32, #tpu.memory_space<smem>>
    %314 = arith.index_cast %312 : i32 to index
    %c0_123 = arith.constant 0 : index
    %315 = vector.load %arg18[%314, %c0_123] : memref<8x128xf32, #tpu.memory_space<vmem>>, vector<1x128xf32>
    %316 = arith.index_cast %313 : i32 to index
    %c0_124 = arith.constant 0 : index
    %317 = vector.load %arg19[%316, %c0_124] : memref<8x128xf32, #tpu.memory_space<vmem>>, vector<1x128xf32>
    %318 = arith.addf %315, %317 : vector<1x128xf32>
    %319 = arith.addf %318, %248 : vector<1x128xf32>
    %c7_125 = arith.constant 7 : index
    %c0_126 = arith.constant 0 : index
    %320 = vector.load %arg17[%c7_125, %c0_126] : memref<16x128xf32, #tpu.memory_space<vmem>>, vector<1x128xf32>
    tpu.vector_store %arg17[%c7_125, %c0_126], %319 {strides = array<i32>} : memref<16x128xf32, #tpu.memory_space<vmem>>, vector<1x128xf32>,
    %c8 = arith.constant 8 : index
    %321 = memref.load %arg0[%c8] : memref<16xi32, #tpu.memory_space<smem>>
    %c8_127 = arith.constant 8 : index
    %322 = memref.load %arg1[%c8_127] : memref<16xi32, #tpu.memory_space<smem>>
    %323 = arith.index_cast %321 : i32 to index
    %c0_128 = arith.constant 0 : index
    %324 = vector.load %arg18[%323, %c0_128] : memref<8x128xf32, #tpu.memory_space<vmem>>, vector<1x128xf32>
    %325 = arith.index_cast %322 : i32 to index
    %c0_129 = arith.constant 0 : index
    %326 = vector.load %arg19[%325, %c0_129] : memref<8x128xf32, #tpu.memory_space<vmem>>, vector<1x128xf32>
    %327 = arith.addf %324, %326 : vector<1x128xf32>
    %328 = arith.addf %327, %248 : vector<1x128xf32>
    %c8_130 = arith.constant 8 : index
    %c0_131 = arith.constant 0 : index
    %329 = vector.load %arg17[%c8_130, %c0_131] : memref<16x128xf32, #tpu.memory_space<vmem>>, vector<1x128xf32>
    tpu.vector_store %arg17[%c8_130, %c0_131], %328 {strides = array<i32>} : memref<16x128xf32, #tpu.memory_space<vmem>>, vector<1x128xf32>,
    %c9 = arith.constant 9 : index
    %330 = memref.load %arg0[%c9] : memref<16xi32, #tpu.memory_space<smem>>
    %c9_132 = arith.constant 9 : index
    %331 = memref.load %arg1[%c9_132] : memref<16xi32, #tpu.memory_space<smem>>
    %332 = arith.index_cast %330 : i32 to index
    %c0_133 = arith.constant 0 : index
    %333 = vector.load %arg18[%332, %c0_133] : memref<8x128xf32, #tpu.memory_space<vmem>>, vector<1x128xf32>
    %334 = arith.index_cast %331 : i32 to index
    %c0_134 = arith.constant 0 : index
    %335 = vector.load %arg19[%334, %c0_134] : memref<8x128xf32, #tpu.memory_space<vmem>>, vector<1x128xf32>
    %336 = arith.addf %333, %335 : vector<1x128xf32>
    %337 = arith.addf %336, %248 : vector<1x128xf32>
    %c9_135 = arith.constant 9 : index
    %c0_136 = arith.constant 0 : index
    %338 = vector.load %arg17[%c9_135, %c0_136] : memref<16x128xf32, #tpu.memory_space<vmem>>, vector<1x128xf32>
    tpu.vector_store %arg17[%c9_135, %c0_136], %337 {strides = array<i32>} : memref<16x128xf32, #tpu.memory_space<vmem>>, vector<1x128xf32>,
    %c10 = arith.constant 10 : index
    %339 = memref.load %arg0[%c10] : memref<16xi32, #tpu.memory_space<smem>>
    %c10_137 = arith.constant 10 : index
    %340 = memref.load %arg1[%c10_137] : memref<16xi32, #tpu.memory_space<smem>>
    %341 = arith.index_cast %339 : i32 to index
    %c0_138 = arith.constant 0 : index
    %342 = vector.load %arg18[%341, %c0_138] : memref<8x128xf32, #tpu.memory_space<vmem>>, vector<1x128xf32>
    %343 = arith.index_cast %340 : i32 to index
    %c0_139 = arith.constant 0 : index
    %344 = vector.load %arg19[%343, %c0_139] : memref<8x128xf32, #tpu.memory_space<vmem>>, vector<1x128xf32>
    %345 = arith.addf %342, %344 : vector<1x128xf32>
    %346 = arith.addf %345, %248 : vector<1x128xf32>
    %c10_140 = arith.constant 10 : index
    %c0_141 = arith.constant 0 : index
    %347 = vector.load %arg17[%c10_140, %c0_141] : memref<16x128xf32, #tpu.memory_space<vmem>>, vector<1x128xf32>
    tpu.vector_store %arg17[%c10_140, %c0_141], %346 {strides = array<i32>} : memref<16x128xf32, #tpu.memory_space<vmem>>, vector<1x128xf32>,
    %c11 = arith.constant 11 : index
    %348 = memref.load %arg0[%c11] : memref<16xi32, #tpu.memory_space<smem>>
    %c11_142 = arith.constant 11 : index
    %349 = memref.load %arg1[%c11_142] : memref<16xi32, #tpu.memory_space<smem>>
    %350 = arith.index_cast %348 : i32 to index
    %c0_143 = arith.constant 0 : index
    %351 = vector.load %arg18[%350, %c0_143] : memref<8x128xf32, #tpu.memory_space<vmem>>, vector<1x128xf32>
    %352 = arith.index_cast %349 : i32 to index
    %c0_144 = arith.constant 0 : index
    %353 = vector.load %arg19[%352, %c0_144] : memref<8x128xf32, #tpu.memory_space<vmem>>, vector<1x128xf32>
    %354 = arith.addf %351, %353 : vector<1x128xf32>
    %355 = arith.addf %354, %248 : vector<1x128xf32>
    %c11_145 = arith.constant 11 : index
    %c0_146 = arith.constant 0 : index
    %356 = vector.load %arg17[%c11_145, %c0_146] : memref<16x128xf32, #tpu.memory_space<vmem>>, vector<1x128xf32>
    tpu.vector_store %arg17[%c11_145, %c0_146], %355 {strides = array<i32>} : memref<16x128xf32, #tpu.memory_space<vmem>>, vector<1x128xf32>,
    %c12 = arith.constant 12 : index
    %357 = memref.load %arg0[%c12] : memref<16xi32, #tpu.memory_space<smem>>
    %c12_147 = arith.constant 12 : index
    %358 = memref.load %arg1[%c12_147] : memref<16xi32, #tpu.memory_space<smem>>
    %359 = arith.index_cast %357 : i32 to index
    %c0_148 = arith.constant 0 : index
    %360 = vector.load %arg18[%359, %c0_148] : memref<8x128xf32, #tpu.memory_space<vmem>>, vector<1x128xf32>
    %361 = arith.index_cast %358 : i32 to index
    %c0_149 = arith.constant 0 : index
    %362 = vector.load %arg19[%361, %c0_149] : memref<8x128xf32, #tpu.memory_space<vmem>>, vector<1x128xf32>
    %363 = arith.addf %360, %362 : vector<1x128xf32>
    %364 = arith.addf %363, %248 : vector<1x128xf32>
    %c12_150 = arith.constant 12 : index
    %c0_151 = arith.constant 0 : index
    %365 = vector.load %arg17[%c12_150, %c0_151] : memref<16x128xf32, #tpu.memory_space<vmem>>, vector<1x128xf32>
    tpu.vector_store %arg17[%c12_150, %c0_151], %364 {strides = array<i32>} : memref<16x128xf32, #tpu.memory_space<vmem>>, vector<1x128xf32>,
    %c13 = arith.constant 13 : index
    %366 = memref.load %arg0[%c13] : memref<16xi32, #tpu.memory_space<smem>>
    %c13_152 = arith.constant 13 : index
    %367 = memref.load %arg1[%c13_152] : memref<16xi32, #tpu.memory_space<smem>>
    %368 = arith.index_cast %366 : i32 to index
    %c0_153 = arith.constant 0 : index
    %369 = vector.load %arg18[%368, %c0_153] : memref<8x128xf32, #tpu.memory_space<vmem>>, vector<1x128xf32>
    %370 = arith.index_cast %367 : i32 to index
    %c0_154 = arith.constant 0 : index
    %371 = vector.load %arg19[%370, %c0_154] : memref<8x128xf32, #tpu.memory_space<vmem>>, vector<1x128xf32>
    %372 = arith.addf %369, %371 : vector<1x128xf32>
    %373 = arith.addf %372, %248 : vector<1x128xf32>
    %c13_155 = arith.constant 13 : index
    %c0_156 = arith.constant 0 : index
    %374 = vector.load %arg17[%c13_155, %c0_156] : memref<16x128xf32, #tpu.memory_space<vmem>>, vector<1x128xf32>
    tpu.vector_store %arg17[%c13_155, %c0_156], %373 {strides = array<i32>} : memref<16x128xf32, #tpu.memory_space<vmem>>, vector<1x128xf32>,
    %c14 = arith.constant 14 : index
    %375 = memref.load %arg0[%c14] : memref<16xi32, #tpu.memory_space<smem>>
    %c14_157 = arith.constant 14 : index
    %376 = memref.load %arg1[%c14_157] : memref<16xi32, #tpu.memory_space<smem>>
    %377 = arith.index_cast %375 : i32 to index
    %c0_158 = arith.constant 0 : index
    %378 = vector.load %arg18[%377, %c0_158] : memref<8x128xf32, #tpu.memory_space<vmem>>, vector<1x128xf32>
    %379 = arith.index_cast %376 : i32 to index
    %c0_159 = arith.constant 0 : index
    %380 = vector.load %arg19[%379, %c0_159] : memref<8x128xf32, #tpu.memory_space<vmem>>, vector<1x128xf32>
    %381 = arith.addf %378, %380 : vector<1x128xf32>
    %382 = arith.addf %381, %248 : vector<1x128xf32>
    %c14_160 = arith.constant 14 : index
    %c0_161 = arith.constant 0 : index
    %383 = vector.load %arg17[%c14_160, %c0_161] : memref<16x128xf32, #tpu.memory_space<vmem>>, vector<1x128xf32>
    tpu.vector_store %arg17[%c14_160, %c0_161], %382 {strides = array<i32>} : memref<16x128xf32, #tpu.memory_space<vmem>>, vector<1x128xf32>,
    %c15 = arith.constant 15 : index
    %384 = memref.load %arg0[%c15] : memref<16xi32, #tpu.memory_space<smem>>
    %c15_162 = arith.constant 15 : index
    %385 = memref.load %arg1[%c15_162] : memref<16xi32, #tpu.memory_space<smem>>
    %386 = arith.index_cast %384 : i32 to index
    %c0_163 = arith.constant 0 : index
    %387 = vector.load %arg18[%386, %c0_163] : memref<8x128xf32, #tpu.memory_space<vmem>>, vector<1x128xf32>
    %388 = arith.index_cast %385 : i32 to index
    %c0_164 = arith.constant 0 : index
    %389 = vector.load %arg19[%388, %c0_164] : memref<8x128xf32, #tpu.memory_space<vmem>>, vector<1x128xf32>
    %390 = arith.addf %387, %389 : vector<1x128xf32>
    %391 = arith.addf %390, %248 : vector<1x128xf32>
    %c15_165 = arith.constant 15 : index
    %c0_166 = arith.constant 0 : index
    %392 = vector.load %arg17[%c15_165, %c0_166] : memref<16x128xf32, #tpu.memory_space<vmem>>, vector<1x128xf32>
    tpu.vector_store %arg17[%c15_165, %c0_166], %391 {strides = array<i32>} : memref<16x128xf32, #tpu.memory_space<vmem>>, vector<1x128xf32>,
    return
  }
}

</mosaic_0001>

<bundles_post_ra>
// kernel: gokg_forward.1
= control target key start
LH: loop header
LB: loop body
LE: loop exit
PB: predicated region body
PF: predicated region fallthrough
CT: control target
= control target key end

     0   :  { %s12656_s0 = inlined_call_operand.vmem [shape: s32[16], index: 0, kind: input, shape index: {}]   ;;  %s12657_s1 = inlined_call_operand.vmem [shape: s32[16], index: 1, kind: input, shape index: {}]   ;;  %s12658_s2 = inlined_call_operand.vmem [shape: f32[8,128], index: 2, kind: input, shape index: {}]   ;;  %s12659_s3 = inlined_call_operand.vmem [shape: f32[8,128], index: 3, kind: input, shape index: {}]   ;;  %s12660_s4 = inlined_call_operand.hbm [shape: f32[128,128], index: 4, kind: input, shape index: {}]   ;;  %s12661_s5 = inlined_call_operand.vmem [shape: f32[1,128], index: 5, kind: input, shape index: {}]   ;;  %s12662_s6 = inlined_call_operand.hbm [shape: f32[128,128], index: 6, kind: input, shape index: {}]   ;;  %s12663_s7 = inlined_call_operand.hbm [shape: f32[128,128], index: 7, kind: input, shape index: {}]   ;;  %s12664_s8 = inlined_call_operand.vmem [shape: f32[1,128], index: 8, kind: input, shape index: {}]   ;;  %s12665_s9 = inlined_call_operand.hbm [shape: f32[128,128], index: 9, kind: input, shape index: {}]   ;;  %s12666_s10 = inlined_call_operand.vmem [shape: f32[1,128], index: 10, kind: input, shape index: {}]   ;;  %s12667_s11 = inlined_call_operand.hbm [shape: f32[128,128], index: 11, kind: input, shape index: {}]   ;;  %s12668_s12 = inlined_call_operand.hbm [shape: f32[128,128], index: 12, kind: input, shape index: {}]   ;;  %s12669_s13 = inlined_call_operand.vmem [shape: f32[1,128], index: 13, kind: input, shape index: {}]   ;;  %s12670_s14 = inlined_call_operand.hbm [shape: f32[128,128], index: 14, kind: input, shape index: {}]   ;;  %s12671_s15 = inlined_call_operand.hbm [shape: f32[128,128], index: 15, kind: input, shape index: {}]   ;;  %s12672_s16 = inlined_call_operand.vmem [shape: f32[1,128], index: 16, kind: input, shape index: {}]   ;;  %s12673_s17 = inlined_call_operand.vmem [shape: f32[16,128], index: 17, kind: output, shape index: {}]  }
   0x1   :  { %12890 = sst [smem:[#allocation64_spill]] %s12656_s0 }
   0x2   :  { %12891 = sst [smem:[#allocation65_spill]] %s12657_s1 }
   0x3   :  { %12892 = sst [smem:[#allocation66_spill]] %s12672_s16 }
   0x4   :  { %12893 = sst [smem:[#allocation67_spill]] %s12673_s17 }
   0x5   :  { %22 = vsyncpa [#allocation6], 0 }
   0x6   :  { %23 = vsyncpa [#allocation8], 0 }
   0x7   :  { %24 = vsyncpa [#allocation5], 0 }
   0x8   :  { %25 = vsyncpa [#allocation11], 0 }
   0x9   :  { %26 = vsyncpa [#allocation14], 0 }
   0xa   :  { %27 = vsyncpa [#allocation17], 0 }
   0xb   :  { %28 = vsyncpa [#allocation20], 0  ;;  %s9795_s24 = smov [#allocation10]   ;;  %s9796_s26 = smov [#allocation13]  }
   0xc   :  { %s72_s25 = sshll.u32 %s9795_s24, 4  ;;  %s98_s27 = sshll.u32 %s9796_s26, 4  ;;  %s73_s25 = int_to_ptr.vmem [resolvable:$true] %s72_s25  ;;  %s9908_s27 = int_to_ptr.vmem [resolvable:$true] %s98_s27 }
   0xd   :  { %s9581_s0 = scalar_lea.hbm %s12662_s6, 2048 }
   0xe   :  { %p9582_p0 = scmp.ne.s32.totalorder %s12662_s6, %s9581_s0  ;;  %p9585_p1 = scmp.lt.u32.totalorder %s9581_s0, %s12662_s6 }
  0x10   :  { %p9587_p2 = pnand %p9585_p1, %p9582_p0 }
  0x12   :  { %9590 = shalt.err (!%p9587_p2)
}
  0x13   :  { %s9591_s20 = scalar_lea.vmem %s73_s25, 2048  ;;  %p9596_p4 = scmp.lt.s32.totalorder %s73_s25, %s73_s25 }
  0x14   :  { %p9592_p3 = scmp.ne.s32.totalorder %s73_s25, %s9591_s20  ;;  %p9597_p5 = scmp.lt.s32.totalorder %s9591_s20, %s9591_s20 }
  0x16   :  { %p9598_p6 = por %p9597_p5, %p9596_p4 }
  0x18   :  { %p9599_p7 = pnand %p9598_p6, %p9592_p3 }
  0x1a   :  { %9602 = shalt.err (!%p9599_p7)
}
  0x1b   :  { %s9797_s21 = smov 128   ;;  %s9798_s22 = smov 8  }
  0x1c   :  { %78 = dma.hbm_to_vmem [thread:$0]  %s12662_s6, 2048, %s73_s25, [#allocation11], %s9797_s21, %s9797_s21, %s9798_s22  }
  0x1d   :  { %s9603_s29 = scalar_lea.hbm %s12665_s9, 2048 }
  0x1e   :  { %p9604_p8 = scmp.ne.s32.totalorder %s12665_s9, %s9603_s29  ;;  %p9607_p9 = scmp.lt.u32.totalorder %s9603_s29, %s12665_s9 }
  0x20   :  { %p9609_p10 = pnand %p9607_p9, %p9604_p8 }
  0x22   :  { %9612 = shalt.err (!%p9609_p10)
}
  0x23   :  { %s9613_s1 = scalar_lea.vmem %s9908_s27, 2048  ;;  %p9618_p12 = scmp.lt.s32.totalorder %s9908_s27, %s9908_s27 }
  0x24   :  { %p9614_p11 = scmp.ne.s32.totalorder %s9908_s27, %s9613_s1  ;;  %p9619_p13 = scmp.lt.s32.totalorder %s9613_s1, %s9613_s1 }
  0x26   :  { %p9620_p0 = por %p9619_p13, %p9618_p12 }
  0x28   :  { %p9621_p1 = pnand %p9620_p0, %p9614_p11 }
  0x2a   :  { %9624 = shalt.err (!%p9621_p1)
}
  0x2b   :  { %104 = dma.hbm_to_vmem [thread:$0]  %s12665_s9, 2048, %s9908_s27, [#allocation14], %s9797_s21, %s9797_s21, %s9798_s22  }
  0x2c   :  { %s12894_s24 = sld [smem:[#allocation64_spill]]  ;;  %s9799_s28 = smov [#allocation16]  }
  0x2d   :  { %s124_s29 = sshll.u32 %s9799_s28, 4  ;;  %s9625_s18 = scalar_lea.hbm %s12668_s12, 2048  ;;  %s125_s29 = int_to_ptr.vmem [resolvable:$true] %s124_s29 }
  0x2e   :  { %p9626_p2 = scmp.ne.s32.totalorder %s12668_s12, %s9625_s18  ;;  %p9629_p3 = scmp.lt.u32.totalorder %s9625_s18, %s12668_s12 }
  0x30   :  { %p9631_p4 = pnand %p9629_p3, %p9626_p2 }
  0x32   :  { %s35_s26 = sshll.u32 %s12894_s24, 4  ;;  %s36_s26 = int_to_ptr.vmem [resolvable:$true] %s35_s26 }
  0x33   :  { %9634 = shalt.err (!%p9631_p4)
}
  0x34   :  { %s9635_s9 = scalar_lea.vmem %s125_s29, 2048  ;;  %p9640_p6 = scmp.lt.s32.totalorder %s125_s29, %s125_s29 }
  0x35   :  { %p9636_p5 = scmp.ne.s32.totalorder %s125_s29, %s9635_s9  ;;  %p9641_p7 = scmp.lt.s32.totalorder %s9635_s9, %s9635_s9 }
  0x37   :  { %p9642_p8 = por %p9641_p7, %p9640_p6 }
  0x39   :  { %p9643_p9 = pnand %p9642_p8, %p9636_p5 }
  0x3b   :  { %9646 = shalt.err (!%p9643_p9)
}
  0x3c   :  { %130 = dma.hbm_to_vmem [thread:$0]  %s12668_s12, 2048, %s125_s29, [#allocation17], %s9797_s21, %s9797_s21, %s9798_s22  }
  0x3d   :  { %s9647_s25 = scalar_lea.vmem %s36_s26, 16  ;;  %p9652_p11 = scmp.lt.s32.totalorder %s36_s26, %s36_s26 }
  0x3e   :  { %p9648_p10 = scmp.ne.s32.totalorder %s36_s26, %s9647_s25  ;;  %p9653_p12 = scmp.lt.s32.totalorder %s9647_s25, %s9647_s25 }
  0x40   :  { %p9654_p13 = por %p9653_p12, %p9652_p11 }
  0x42   :  { %p9655_p0 = pnand %p9654_p13, %p9648_p10 }
  0x44   :  { %9658 = shalt.err (!%p9655_p0)
}
  0x45   :  { %s9800_s16 = smov [#allocation4]   ;;  %s12895_s23 = sld [smem:[#allocation65_spill]] }
  0x46   :  { %38 = dma.vmem_to_smem %s36_s26, 16, %s9800_s16, [#allocation6]  }
  0x4b   :  { %s45_s24 = sshll.u32 %s12895_s23, 4  ;;  %s46_s24 = int_to_ptr.vmem [resolvable:$true] %s45_s24 }
  0x4c   :  { %s9659_s28 = scalar_lea.vmem %s46_s24, 16  ;;  %p9664_p2 = scmp.lt.s32.totalorder %s46_s24, %s46_s24 }
  0x4d   :  { %p9660_p1 = scmp.ne.s32.totalorder %s46_s24, %s9659_s28  ;;  %p9665_p3 = scmp.lt.s32.totalorder %s9659_s28, %s9659_s28 }
  0x4f   :  { %p9666_p4 = por %p9665_p3, %p9664_p2 }
  0x51   :  { %p9667_p5 = pnand %p9666_p4, %p9660_p1 }
  0x53   :  { %9670 = shalt.err (!%p9667_p5)
}
  0x54   :  { %s9801_s12 = smov [#allocation7]   ;;  %s9802_s29 = smov [#allocation9]  }
  0x55   :  { %48 = dma.vmem_to_smem %s46_s24, 16, %s9801_s12, [#allocation8]  }
  0x56   :  { %s58_s0 = sshll.u32 %s9802_s29, 4  ;;  %s9803_s30 = smov [#allocation12]   ;;  %s59_s0 = int_to_ptr.vmem [resolvable:$true] %s58_s0 }
  0x57   :  { %s84_s18 = sshll.u32 %s9803_s30, 4  ;;  %s9671_s1 = scalar_lea.hbm %s12660_s4, 2048  ;;  %s85_s18 = int_to_ptr.vmem [resolvable:$true] %s84_s18 }
  0x58   :  { %p9672_p6 = scmp.ne.s32.totalorder %s12660_s4, %s9671_s1  ;;  %p9675_p7 = scmp.lt.u32.totalorder %s9671_s1, %s12660_s4 }
  0x5a   :  { %p9677_p8 = pnand %p9675_p7, %p9672_p6 }
  0x5c   :  { %9680 = shalt.err (!%p9677_p8)
}
  0x5d   :  { %s9681_s16 = scalar_lea.vmem %s59_s0, 2048  ;;  %p9686_p10 = scmp.lt.s32.totalorder %s59_s0, %s59_s0 }
  0x5e   :  { %p9682_p9 = scmp.ne.s32.totalorder %s59_s0, %s9681_s16  ;;  %p9687_p11 = scmp.lt.s32.totalorder %s9681_s16, %s9681_s16 }
  0x60   :  { %p9688_p12 = por %p9687_p11, %p9686_p10 }
  0x62   :  { %p9689_p13 = pnand %p9688_p12, %p9682_p9 }
  0x64   :  { %9692 = shalt.err (!%p9689_p13)
}
  0x65   :  { %64 = dma.hbm_to_vmem [thread:$0]  %s12660_s4, 2048, %s59_s0, [#allocation5], %s9797_s21, %s9797_s21, %s9798_s22  }
  0x66   :  { %s9693_s28 = scalar_lea.hbm %s12663_s7, 2048 }
  0x67   :  { %p9694_p0 = scmp.ne.s32.totalorder %s12663_s7, %s9693_s28  ;;  %p9697_p1 = scmp.lt.u32.totalorder %s9693_s28, %s12663_s7 }
  0x69   :  { %p9699_p2 = pnand %p9697_p1, %p9694_p0 }
  0x6b   :  { %9702 = shalt.err (!%p9699_p2)
}
  0x6c   :  { %s9703_s19 = scalar_lea.vmem %s85_s18, 2048  ;;  %p9708_p4 = scmp.lt.s32.totalorder %s85_s18, %s85_s18 }
  0x6d   :  { %p9704_p3 = scmp.ne.s32.totalorder %s85_s18, %s9703_s19  ;;  %p9709_p5 = scmp.lt.s32.totalorder %s9703_s19, %s9703_s19 }
  0x6f   :  { %p9710_p6 = por %p9709_p5, %p9708_p4 }
  0x71   :  { %p9711_p7 = pnand %p9710_p6, %p9704_p3 }
  0x73   :  { %9714 = shalt.err (!%p9711_p7)
}
  0x74   :  { %90 = dma.hbm_to_vmem [thread:$0]  %s12663_s7, 2048, %s85_s18, [#allocation11], %s9797_s21, %s9797_s21, %s9798_s22  }
  0x75   :  { %s9804_s1 = smov [#allocation15]   ;;  %s9805_s27 = smov [#allocation18]  }
  0x76   :  { %s112_s9 = sshll.u32 %s9804_s1, 4  ;;  %s138_s6 = sshll.u32 %s9805_s27, 4  ;;  %s113_s9 = int_to_ptr.vmem [resolvable:$true] %s112_s9  ;;  %s139_s6 = int_to_ptr.vmem [resolvable:$true] %s138_s6 }
  0x77   :  { %s9715_s17 = scalar_lea.hbm %s12667_s11, 2048 }
  0x78   :  { %p9716_p8 = scmp.ne.s32.totalorder %s12667_s11, %s9715_s17  ;;  %p9719_p9 = scmp.lt.u32.totalorder %s9715_s17, %s12667_s11 }
  0x7a   :  { %p9721_p10 = pnand %p9719_p9, %p9716_p8 }
  0x7c   :  { %9724 = shalt.err (!%p9721_p10)
}
  0x7d   :  { %s9725_s7 = scalar_lea.vmem %s113_s9, 2048  ;;  %p9730_p12 = scmp.lt.s32.totalorder %s113_s9, %s113_s9 }
  0x7e   :  { %p9726_p11 = scmp.ne.s32.totalorder %s113_s9, %s9725_s7  ;;  %p9731_p13 = scmp.lt.s32.totalorder %s9725_s7, %s9725_s7 }
  0x80   :  { %p9732_p0 = por %p9731_p13, %p9730_p12 }
  0x82   :  { %p9733_p1 = pnand %p9732_p0, %p9726_p11 }
  0x84   :  { %9736 = shalt.err (!%p9733_p1)
}
  0x85   :  { %118 = dma.hbm_to_vmem [thread:$0]  %s12667_s11, 2048, %s113_s9, [#allocation14], %s9797_s21, %s9797_s21, %s9798_s22  }
  0x86   :  { %s9737_s26 = scalar_lea.hbm %s12670_s14, 2048 }
  0x87   :  { %p9738_p2 = scmp.ne.s32.totalorder %s12670_s14, %s9737_s26  ;;  %p9741_p3 = scmp.lt.u32.totalorder %s9737_s26, %s12670_s14 }
  0x89   :  { %p9743_p4 = pnand %p9741_p3, %p9738_p2 }
  0x8b   :  { %9746 = shalt.err (!%p9743_p4)
}
  0x8c   :  { %s9747_s27 = scalar_lea.vmem %s139_s6, 2048  ;;  %p9752_p6 = scmp.lt.s32.totalorder %s139_s6, %s139_s6 }
  0x8d   :  { %p9748_p5 = scmp.ne.s32.totalorder %s139_s6, %s9747_s27  ;;  %p9753_p7 = scmp.lt.s32.totalorder %s9747_s27, %s9747_s27 }
  0x8f   :  { %p9754_p8 = por %p9753_p7, %p9752_p6 }
  0x91   :  { %p9755_p9 = pnand %p9754_p8, %p9748_p5 }
  0x93   :  { %9758 = shalt.err (!%p9755_p9)
}
  0x94   :  { %144 = dma.hbm_to_vmem [thread:$0]  %s12670_s14, 2048, %s139_s6, [#allocation17], %s9797_s21, %s9797_s21, %s9798_s22  }
  0x95   :  { %s9806_s25 = smov [#allocation19]   ;;  %s9759_s23 = scalar_lea.hbm %s12671_s15, 2048 }
  0x96   :  { %s150_s16 = sshll.u32 %s9806_s25, 4  ;;  %p9760_p10 = scmp.ne.s32.totalorder %s12671_s15, %s9759_s23  ;;  %s151_s16 = int_to_ptr.vmem [resolvable:$true] %s150_s16 }
  0x97   :  { %p9763_p11 = scmp.lt.u32.totalorder %s9759_s23, %s12671_s15 }
  0x99   :  { %p9765_p12 = pnand %p9763_p11, %p9760_p10 }
  0x9b   :  { %9768 = shalt.err (!%p9765_p12)
}
  0x9c   :  { %s9769_s12 = scalar_lea.vmem %s151_s16, 2048  ;;  %p9774_p0 = scmp.lt.s32.totalorder %s151_s16, %s151_s16 }
  0x9d   :  { %p9770_p13 = scmp.ne.s32.totalorder %s151_s16, %s9769_s12  ;;  %p9775_p1 = scmp.lt.s32.totalorder %s9769_s12, %s9769_s12 }
  0x9f   :  { %p9776_p2 = por %p9775_p1, %p9774_p0 }
  0xa1   :  { %p9777_p3 = pnand %p9776_p2, %p9770_p13 }
  0xa3   :  { %9780 = shalt.err (!%p9777_p3)
}
  0xa4   :  { %156 = dma.hbm_to_vmem [thread:$0]  %s12671_s15, 2048, %s151_s16, [#allocation20], %s9797_s21, %s9797_s21, %s9798_s22  }
  0xa5   :  { %9781 = dma.done.wait [#allocation6], 16  }
  0xa6   :  { %9782 = vsyncadd [#allocation6], 4294967280 }
  0xa7   :  { %9783 = dma.done.wait [#allocation8], 16  }
  0xa8   :  { %9784 = vsyncadd [#allocation8], 4294967280 }
  0xa9   :  { %9785 = dma.done.wait [#allocation5], 2048  }
  0xaa   :  { %9786 = vsyncadd [#allocation5], 4294965248 }
  0xab   :  { %9787 = dma.done.wait [#allocation11], 4096  }
  0xac   :  { %9788 = vsyncadd [#allocation11], 4294963200 }
  0xad   :  { %9789 = dma.done.wait [#allocation14], 4096  }
  0xae   :  { %9790 = vsyncadd [#allocation14], 4294963200 }
  0xaf   :  { %9791 = dma.done.wait [#allocation17], 4096  }
  0xb0   :  { %9792 = vsyncadd [#allocation17], 4294963200 }
  0xb1   :  { %9793 = dma.done.wait [#allocation20], 2048  }
  0xb2   :  { %9794 = vsyncadd [#allocation20], 4294965248 }
  0xb3   :  { %189 = sfence }
  0xb4   :  { %v195_v0 = vld [vmem:[#allocation9] sm:$0xff]  ;;  %v196_v1 = vld [vmem:[#allocation9 + $0x8] sm:$0xff]  ;;  %v197_v2 = vld [vmem:[#allocation9 + $0x10] sm:$0xff]  ;;  %v12717_v3 = vmov 0.0|0.0   ;;  %vm9808_vm0 = vmmov 0   ;;  %v12700_v8 = vmov 0.0  }
  0xb5   :  { %8351 = vmatprep.subr.bf16.mxu0 %v12717_v3  ;;  %v219_v4 = vand.u32 4294901760, %v195_v0  ;;  %v222_v5 = vand.u32 4294901760, %v196_v1  ;;  %v198_v6 = vld [vmem:[#allocation9 + $0x18] sm:$0xff]  ;;  %v225_v7 = vand.u32 4294901760, %v197_v2  ;;  %6703 = vmatprep.mubr.msk.f32.mxu0 %vm9808_vm0, %v12700_v8  ;;  %v199_v10 = vld [vmem:[#allocation9 + $0x20] sm:$0xff]  ;;  %v200_v11 = vld [vmem:[#allocation9 + $0x28] sm:$0xff] }
  0xb6   :  { %v228_v9 = vand.u32 4294901760, %v198_v6  ;;  %8495 = vmatprep.subr.bf16.mxu1 %v12717_v3  ;;  %6913 = vmatprep.mubr.msk.f32.mxu1 %vm9808_vm0, %v12700_v8  ;;  %v231_v14 = vand.u32 4294901760, %v199_v10  ;;  %v234_v15 = vand.u32 4294901760, %v200_v11  ;;  %v201_v16 = vld [vmem:[#allocation9 + $0x30] sm:$0xff]  ;;  %v202_v17 = vld [vmem:[#allocation9 + $0x38] sm:$0xff]  ;;  %v203_v21 = vld [vmem:[#allocation9 + $0x40] sm:$0xff] }
  0xb7   :  { %v10047_v12 = vpack.c.bf16 %v222_v5, %v219_v4  ;;  %v237_v19 = vand.u32 4294901760, %v201_v16  ;;  %v240_v20 = vand.u32 4294901760, %v202_v17  ;;  %v204_v22 = vld [vmem:[#allocation9 + $0x48] sm:$0xff]  ;;  %v194_v23 = vld [vmem:[%s12659_s3] sm:$0xff]  ;;  %v10060_v24 = vsub.f32 %v195_v0, %v219_v4  ;;  %v206_v30 = vld [vmem:[#allocation9 + $0x58] sm:$0xff]  ;;  %s12493_s4 = sld [smem:[#allocation4 + $0x1]] }
  0xb8   :  { %v10050_v13 = vpack.c.bf16 %v228_v9, %v225_v7  ;;  %v10054_v18 = vpack.c.bf16 %v234_v15, %v231_v14  ;;  %v10062_v25 = vsub.f32 %v196_v1, %v222_v5  ;;  %v243_v27 = vand.u32 4294901760, %v203_v21  ;;  %v205_v29 = vld [vmem:[#allocation9 + $0x50] sm:$0xff]  ;;  %v207_v32 = vld [vmem:[#allocation9 + $0x60] sm:$0xff]  ;;  %v208_v35 = vld [vmem:[#allocation9 + $0x68] sm:$0xff]  ;;  %s12495_s0 = sld [smem:[#allocation4 + $0x2]]  ;;  %s12497_s1 = sld [smem:[#allocation4 + $0x3]] }
  0xb9   :  { %8353 = vmatpush3.bf16.msra.mxu0 %v10047_v12  ;;  %v10065_v26 = vpack.c.bf16 %v240_v20, %v237_v19  ;;  %v246_v28 = vand.u32 4294901760, %v204_v22  ;;  %v10068_v31 = vand.u32 4294901760, %v194_v23  ;;  %v10070_v33 = vsub.f32 %v197_v2, %v225_v7  ;;  %v209_v36 = vld [vmem:[#allocation9 + $0x70] sm:$0xff]  ;;  %v210_v37 = vld [vmem:[#allocation9 + $0x78] sm:$0xff]  ;;  %s12499_s27 = sld [smem:[#allocation4 + $0x4]]  ;;  %s12501_s11 = sld [smem:[#allocation4 + $0x5]] }
  0xba   :  { %8354 = vmatprep.subr.bf16.mxu0 %v12717_v3  ;;  %v249_v34 = vand.u32 4294901760, %v205_v29  ;;  %v252_v39 = vand.u32 4294901760, %v206_v30  ;;  %v312_v40 = vand.u32 4294901760, %v10060_v24  ;;  %v319_v41 = vand.u32 4294901760, %v10062_v25  ;;  %s12503_s9 = sld [smem:[#allocation4 + $0x6]]  ;;  %s12505_s25 = sld [smem:[#allocation4 + $0x7]] }
  0xbb   :  { %v10073_v38 = vpack.c.bf16 %v246_v28, %v243_v27  ;;  %v10077_v42 = vsub.f32 %v198_v6, %v228_v9  ;;  %v10079_v43 = vsub.f32 %v199_v10, %v231_v14  ;;  %v10081_v44 = vsub.f32 %v200_v11, %v234_v15  ;;  %s12507_s16 = sld [smem:[#allocation4 + $0x8]]  ;;  %s12509_s17 = sld [smem:[#allocation4 + $0x9]] }
  0xbc   :  { %v10085_v45 = vsub.f32 %v194_v23, %v10068_v31  ;;  %v255_v46 = vand.u32 4294901760, %v207_v32  ;;  %v258_v47 = vand.u32 4294901760, %v208_v35  ;;  %v261_v48 = vand.u32 4294901760, %v209_v36  ;;  %s12511_s20 = sld [smem:[#allocation4 + $0xa]]  ;;  %s12513_s23 = sld [smem:[#allocation4 + $0xb]] }
  0xbd   :  { %8356 = vmatpush3.bf16.msra.mxu0 %v10050_v13  ;;  %v264_v49 = vand.u32 4294901760, %v210_v37  ;;  %v10087_v50 = vsub.f32 %v201_v16, %v237_v19  ;;  %v10089_v51 = vsub.f32 %v202_v17, %v240_v20  ;;  %v10091_v52 = vsub.f32 %v203_v21, %v243_v27  ;;  %s12515_s24 = sld [smem:[#allocation4 + $0xc]]  ;;  %s12517_s28 = sld [smem:[#allocation4 + $0xd]] }
  0xbe   :  { %8357 = vmatprep.subr.bf16.mxu0 %v12717_v3  ;;  %v326_v53 = vand.u32 4294901760, %v10070_v33  ;;  %v10095_v54 = vsub.f32 %v204_v22, %v246_v28  ;;  %v10097_v55 = vpack.c.bf16 %v252_v39, %v249_v34  ;;  %v313_v56 = vsub.f32 %v10060_v24, %v312_v40  ;;  %s12519_s7 = sld [smem:[#allocation4 + $0xe]]  ;;  %s12521_s18 = sld [smem:[#allocation4 + $0xf]] }
  0xbf   :  { %v320_v57 = vsub.f32 %v10062_v25, %v319_v41  ;;  %v10102_v58 = vsub.f32 %v205_v29, %v249_v34  ;;  %v10104_v59 = vsub.f32 %v206_v30, %v252_v39  ;;  %v10106_v60 = vsub.f32 %v207_v32, %v255_v46  ;;  %s12523_s12 = sld [smem:[#allocation7]]  ;;  %s12525_s14 = sld [smem:[#allocation7 + $0x1]] }
  0xc0   :  { %v10109_v61 = vand.u32 4294901760, %v10085_v45  ;;  %v10111_v62 = vpack.c.bf16 %v258_v47, %v255_v46  ;;  %v10113_v63 = vsub.f32 %v208_v35, %v258_v47  ;;  %v10115_v0 = vpack.c.bf16 %v264_v49, %v261_v48  ;;  %s12527_s6 = sld [smem:[#allocation7 + $0x2]]  ;;  %s12529_s15 = sld [smem:[#allocation7 + $0x3]] }
  0xc1   :  { %8359 = vmatpush3.bf16.msra.mxu0 %v10054_v18  ;;  %v10117_v1 = vsub.f32 %v209_v36, %v261_v48  ;;  %v10119_v2 = vsub.f32 %v210_v37, %v264_v49  ;;  %v327_v4 = vsub.f32 %v10070_v33, %v326_v53  ;;  %v333_v5 = vand.u32 4294901760, %v10077_v42  ;;  %s12531_s21 = sld [smem:[#allocation7 + $0x4]]  ;;  %s12533_s3 = sld [smem:[#allocation7 + $0x5]] }
  0xc2   :  { %8360 = vmatprep.subr.bf16.mxu0 %v12717_v3  ;;  %12896 = vst [vmem:[#allocation28_spill] sm:$0xff] %v10109_v61  ;;  %v340_v6 = vand.u32 4294901760, %v10079_v43  ;;  %v314_v7 = vand.u32 4294901760, %v313_v56  ;;  %v321_v9 = vand.u32 4294901760, %v320_v57  ;;  %v347_v10 = vand.u32 4294901760, %v10081_v44  ;;  %s12535_s22 = sld [smem:[#allocation7 + $0x6]] }
  0xc3   :  { %v354_v11 = vand.u32 4294901760, %v10087_v50  ;;  %v302_v14 = vsub.f32 %v10085_v45, %v10109_v61  ;;  %v361_v15 = vand.u32 4294901760, %v10089_v51  ;;  %v368_v16 = vand.u32 4294901760, %v10091_v52  ;;  %s12539_s29 = sld [smem:[#allocation7 + $0x8]]  ;;  %s12543_s30 = sld [smem:[#allocation7 + $0xa]] }
  0xc4   :  { %v375_v17 = vand.u32 4294901760, %v10095_v54  ;;  %v382_v19 = vand.u32 4294901760, %v10102_v58  ;;  %v389_v20 = vand.u32 4294901760, %v10104_v59  ;;  %v396_v21 = vand.u32 4294901760, %v10106_v60  ;;  %13151 = sst [smem:[#allocation55_spill]] %s12521_s18  ;;  %s12547_s26 = sld [smem:[#allocation7 + $0xc]] }
  0xc5   :  { %8362 = vmatpush3.bf16.msra.mxu0 %v10065_v26  ;;  %v403_v22 = vand.u32 4294901760, %v10113_v63  ;;  %v410_v23 = vand.u32 4294901760, %v10117_v1  ;;  %v417_v27 = vand.u32 4294901760, %v10119_v2  ;;  %v10139_v28 = vpack.c.bf16 %v319_v41, %v312_v40  ;;  %s12551_s19 = sld [smem:[#allocation7 + $0xe]]  ;;  %s12553_s18 = sld [smem:[#allocation7 + $0xf]] }
  0xc6   :  { %8363 = vmatprep.subr.bf16.mxu0 %v12717_v3  ;;  %v10141_v29 = vpack.c.bf16 %v333_v5, %v326_v53  ;;  %v334_v30 = vsub.f32 %v10077_v42, %v333_v5  ;;  %v10145_v32 = vpack.c.bf16 %v347_v10, %v340_v6  ;;  %v10147_v34 = vpack.c.bf16 %v361_v15, %v354_v11 }
  0xc7   :  { %v10149_v35 = vpack.c.bf16 %v375_v17, %v368_v16  ;;  %v10152_v36 = vpack.c.bf16 %v389_v20, %v382_v19  ;;  %v10154_v37 = vpack.c.bf16 %v403_v22, %v396_v21  ;;  %v10156_v39 = vpack.c.bf16 %v417_v27, %v410_v23 }
  0xc8   :  { %v10158_v40 = vand.u32 4294901760, %v302_v14  ;;  %v328_v41 = vand.u32 4294901760, %v327_v4  ;;  %v8376_v46 = vpack.c.bf16 %v321_v9, %v314_v7  ;;  %v335_v47 = vand.u32 4294901760, %v334_v30 }
  0xc9   :  { %8365 = vmatpush3.bf16.msra.mxu0 %v10073_v38  ;;  %v341_v48 = vsub.f32 %v10079_v43, %v340_v6  ;;  %v348_v49 = vsub.f32 %v10081_v44, %v347_v10  ;;  %v355_v53 = vsub.f32 %v10087_v50, %v354_v11  ;;  %v362_v4 = vsub.f32 %v10089_v51, %v361_v15  ;;  %13153 = sst [smem:[#allocation57_spill]] %s12539_s29  ;;  %s5744_s29 = scalar_lea.vmem [#allocation2], %s12515_s24 }
  0xca   :  { %8366 = vmatprep.subr.bf16.mxu0 %v12717_v3  ;;  %v8379_v56 = vpack.c.bf16 %v335_v47, %v328_v41  ;;  %v369_v6 = vsub.f32 %v10091_v52, %v368_v16  ;;  %v376_v14 = vsub.f32 %v10095_v54, %v375_v17  ;;  %v383_v15 = vsub.f32 %v10102_v58, %v382_v19  ;;  %13155 = sst [smem:[#allocation59_spill]] %s12543_s30 }
  0xcb   :  { %v342_v57 = vand.u32 4294901760, %v341_v48  ;;  %v349_v5 = vand.u32 4294901760, %v348_v49  ;;  %v356_v9 = vand.u32 4294901760, %v355_v53  ;;  %v363_v10 = vand.u32 4294901760, %v362_v4  ;;  %13157 = sst [smem:[#allocation61_spill]] %s12547_s26  ;;  %s5663_s26 = scalar_lea.vmem [#allocation2], %s12497_s1 }
  0xcc   :  { %v370_v11 = vand.u32 4294901760, %v369_v6  ;;  %v377_v41 = vand.u32 4294901760, %v376_v14  ;;  %v397_v16 = vsub.f32 %v10106_v60, %v396_v21  ;;  %v384_v48 = vand.u32 4294901760, %v383_v15  ;;  %13159 = sst [smem:[#allocation63_spill]] %s12551_s19  ;;  %s13160_s19 = sld [smem:[#allocation66_spill]] }
  0xcd   :  { %8368 = vmatpush3.bf16.msra.mxu0 %v10097_v55  ;;  %v8382_v7 = vpack.c.bf16 %v349_v5, %v342_v57  ;;  %v8385_v30 = vpack.c.bf16 %v363_v10, %v356_v9  ;;  %v404_v17 = vsub.f32 %v10113_v63, %v403_v22  ;;  %v411_v19 = vsub.f32 %v10117_v1, %v410_v23  ;;  %v190_v23 = vld [vmem:[%s12658_s2] sm:$0xff]  ;;  %s12537_s2 = sld [smem:[#allocation7 + $0x7]]  ;;  %s5717_s1 = scalar_lea.vmem [#allocation2], %s12509_s17 }
  0xce   :  { %8369 = vmatprep.subr.bf16.mxu0 %v12717_v3  ;;  %v8388_v47 = vpack.c.bf16 %v377_v41, %v370_v11  ;;  %v398_v53 = vand.u32 4294901760, %v397_v16  ;;  %v8400_v6 = vpack.c.bf16 %v10062_v25, %v10060_v24  ;;  %vm860_vm1 = vcmp.gt.f32.partialorder %v190_v23, 0.0  ;;  %s5665_s17 = scalar_lea.vmem [#allocation3], %s12529_s15  ;;  %s13164_s24 = sld [smem:[#allocation59_spill]] }
  0xcf   :  { %v405_v57 = vand.u32 4294901760, %v404_v17  ;;  %v412_v5 = vand.u32 4294901760, %v411_v19  ;;  %v9811_v25 = vmov 2   ;;  %v8406_v9 = vpack.c.bf16 %v10081_v44, %v10079_v43 }
  0xd0   :  { %9570 = vset.pattern.permute.xlu1 %v9811_v25  ;;  %v8409_v10 = vpack.c.bf16 %v10089_v51, %v10087_v50  ;;  %v9814_v14 = vmov 7   ;;  %v8412_v43 = vpack.c.bf16 %v10095_v54, %v10091_v52  ;;  %v9815_v44 = vmov 4  }
  0xd1   :  { %8371 = vmatpush3.bf16.msra.mxu0 %v10111_v62  ;;  %v8394_v21 = vpack.c.bf16 %v405_v57, %v398_v53  ;;  %v8415_v11 = vpack.c.bf16 %v10104_v59, %v10102_v58  ;;  %v9816_v50 = vmov 5   ;;  %v8418_v51 = vpack.c.bf16 %v10113_v63, %v10106_v60  ;;  %v964_v58 = vld [vmem:[#allocation12 + $0x18] sm:$0xff]  ;;  %v965_v63 = vld [vmem:[#allocation12 + $0x20] sm:$0xff] }
  0xd2   :  { %8372 = vmatprep.subr.bf16.mxu0 %v12717_v3  ;;  %v9817_v52 = vmov 6   ;;  %v8421_v54 = vpack.c.bf16 %v10119_v2, %v10117_v1  ;;  %v987_v60 = vand.u32 4294901760, %v964_v58  ;;  %v990_v1 = vand.u32 4294901760, %v965_v63 }
  0xd3   :  { %13152 = sst [smem:[#allocation56_spill]] %s12537_s2  ;;  %s5647_s2 = scalar_lea.vmem [#allocation3], %s12525_s14 }
  0xd4   :  { %v10301_v57 = vsub.f32 %v965_v63, %v990_v1  ;;  %s5753_s14 = scalar_lea.vmem [#allocation2], %s12517_s28  ;;  %s13166_s28 = sld [smem:[#allocation61_spill]] }
  0xd5   :  { %8374 = vmatpush3.bf16.msra.mxu0 %v10115_v0 }
  0xd6   :  { %8375 = vmatprep.subr.bf16.mxu0 %v12717_v3 }
  0xd8   :  { %6704 = vmatmul.mubr.f32.vlgmr.msra.gmra.mrb[0].mxu0 %v10158_v40 }
  0xd9   :  { %8377 = vmatpush3.bf16.msra.mxu0 %v8376_v46  ;;  %6738 = vmatprep.mubr.msk.f32.mxu0 %vm9808_vm0, %v12700_v8  ;;  %v390_v46 = vsub.f32 %v10104_v59, %v389_v20  ;;  %v418_v20 = vsub.f32 %v10119_v2, %v417_v27  ;;  %v8403_v27 = vpack.c.bf16 %v10077_v42, %v10070_v33  ;;  %v9812_v33 = vmov 1  }
  0xda   :  { %8378 = vmatprep.subr.bf16.mxu0 %v12717_v3  ;;  %v9813_v42 = vmov 3  }
  0xdb   :  { %v391_v49 = vand.u32 4294901760, %v390_v46  ;;  %v419_v4 = vand.u32 4294901760, %v418_v20 }
  0xdd   :  { %8380 = vmatpush3.bf16.msra.mxu0 %v8379_v56  ;;  %v8391_v56 = vpack.c.bf16 %v391_v49, %v384_v48  ;;  %v8397_v22 = vpack.c.bf16 %v419_v4, %v412_v5  ;;  %v972_v48 = vld [vmem:[#allocation12 + $0x58] sm:$0xff] }
  0xde   :  { %8381 = vmatprep.subr.bf16.mxu0 %v12717_v3  ;;  %v1011_v17 = vand.u32 4294901760, %v972_v48 }
  0xe0   :  { %v10320_v25 = vsub.f32 %v972_v48, %v1011_v17 }
  0xe1   :  { %8383 = vmatpush3.bf16.msra.mxu0 %v8382_v7  ;;  %v9810_v7 = vmov 0  }
  0xe2   :  { %8384 = vmatprep.subr.bf16.mxu0 %v12717_v3  ;;  %9568 = vset.pattern.permute.xlu0 %v9810_v7  ;;  %v861_v24 = vsel %vm860_vm1, 1, %v9810_v7 }
  0xe3   :  { %863 = vperm.xlu0 %9568, %v861_v24   ;;  %883 = vperm.xlu1 %9570, %v861_v24  }
  0xe5   :  { %8386 = vmatpush3.bf16.msra.mxu0 %v8385_v30 }
  0xe6   :  { %8387 = vmatprep.subr.bf16.mxu0 %v12717_v3 }
  0xe7   :  { %9569 = vset.pattern.permute.xlu0 %v9812_v33  ;;  %9571 = vset.pattern.permute.xlu1 %v9813_v42  ;;  %v975_v42 = vld [vmem:[#allocation12 + $0x70] sm:$0xff] }
  0xe8   :  { %873 = vperm.xlu0 %9569, %v861_v24   ;;  %893 = vperm.xlu1 %9571, %v861_v24  }
  0xe9   :  { %8389 = vmatpush3.bf16.msra.mxu0 %v8388_v47  ;;  %v971_v47 = vld [vmem:[#allocation12 + $0x50] sm:$0xff] }
  0xea   :  { %8390 = vmatprep.subr.bf16.mxu0 %v12717_v3  ;;  %v1008_v49 = vand.u32 4294901760, %v971_v47 }
  0xec   :  { %9576 = vset.pattern.permute.xlu0 %v9814_v14  ;;  %9572 = vset.pattern.permute.xlu1 %v9815_v44 }
  0xed   :  { %8392 = vmatpush3.bf16.msra.mxu0 %v8391_v56  ;;  %903 = vperm.xlu1 %9572, %v861_v24   ;;  %v10299_v56 = vsub.f32 %v964_v58, %v987_v60 }
  0xee   :  { %8393 = vmatprep.subr.bf16.mxu0 %v12717_v3 }
  0xef   :  { %v12687_v58 = vand.u32 4294901760, %v10299_v56 }
  0xf1   :  { %8395 = vmatpush3.bf16.msra.mxu0 %v8394_v21  ;;  %9573 = vset.pattern.permute.xlu1 %v9816_v50  ;;  %v1093_v63 = vsub.f32 %v10299_v56, %v12687_v58 }
  0xf2   :  { %8396 = vmatprep.subr.bf16.mxu0 %v12717_v3  ;;  %913 = vperm.xlu1 %9573, %v861_v24  }
  0xf5   :  { %8398 = vmatpush3.bf16.msra.mxu0 %v8397_v22  ;;  %v10315_v22 = vpack.c.bf16 %v1011_v17, %v1008_v49 }
  0xf6   :  { %8399 = vmatprep.subr.bf16.mxu0 %v12717_v3  ;;  %9574 = vset.pattern.permute.xlu1 %v9817_v52 }
  0xf7   :  { %923 = vperm.xlu1 %9574, %v861_v24  }
  0xf8   :  { %6739 = vmatmul.mubr.f32.vlgmr.msra.gmra.mrb[0].mxu0 %v10068_v31 }
  0xf9   :  { %8401 = vmatpush3.bf16.msra.mxu0 %v8400_v6  ;;  %6773 = vmatprep.mubr.msk.f32.mxu0 %vm9808_vm0, %v12700_v8  ;;  %v973_v6 = vld [vmem:[#allocation12 + $0x60] sm:$0xff] }
  0xfa   :  { %8402 = vmatprep.subr.bf16.mxu0 %v12717_v3 }
  0xfb   :  { %9575 = vset.pattern.permute.xlu1 %v9814_v14 }
  0xfc   :  { %933 = vperm.xlu1 %9575, %v861_v24   ;;  %v10318_v24 = vsub.f32 %v971_v47, %v1008_v49 }
  0xfd   :  { %8404 = vmatpush3.bf16.msra.mxu0 %v8403_v27  ;;  %v1014_v27 = vand.u32 4294901760, %v973_v6 }
  0xfe   :  { %8405 = vmatprep.subr.bf16.mxu0 %v12717_v3 }
  0xff   :  { %v10325_v33 = vsub.f32 %v973_v6, %v1014_v27 }
 0x101   :  { %8407 = vmatpush3.bf16.msra.mxu0 %v8406_v9 }
 0x102   :  { %8408 = vmatprep.subr.bf16.mxu0 %v12717_v3 }
 0x105   :  { %8410 = vmatpush3.bf16.msra.mxu0 %v8409_v10  ;;  %v976_v10 = vld [vmem:[#allocation12 + $0x78] sm:$0xff] }
 0x106   :  { %8411 = vmatprep.subr.bf16.mxu0 %v12717_v3  ;;  %v1023_v44 = vand.u32 4294901760, %v976_v10 }
 0x107   :  { %191 = vadd.xlane.f32.xlu0 %v190_v23  ;;  %v974_v23 = vld [vmem:[#allocation12 + $0x68] sm:$0xff] }
 0x108   :  { %v1017_v7 = vand.u32 4294901760, %v974_v23 }
 0x109   :  { %8413 = vmatpush3.bf16.msra.mxu0 %v8412_v43  ;;  %v1020_v43 = vand.u32 4294901760, %v975_v42 }
 0x10a   :  { %8414 = vmatprep.subr.bf16.mxu0 %v12717_v3  ;;  %v10323_v9 = vpack.c.bf16 %v1017_v7, %v1014_v27  ;;  %v10327_v14 = vsub.f32 %v974_v23, %v1017_v7 }
 0x10b   :  { %v10334_v52 = vsub.f32 %v975_v42, %v1020_v43 }
 0x10d   :  { %8416 = vmatpush3.bf16.msra.mxu0 %v8415_v11 }
 0x10e   :  { %8417 = vmatprep.subr.bf16.mxu0 %v12717_v3 }
 0x111   :  { %8419 = vmatpush3.bf16.msra.mxu0 %v8418_v51  ;;  %v10332_v51 = vpack.c.bf16 %v1023_v44, %v1020_v43 }
 0x112   :  { %8420 = vmatprep.subr.bf16.mxu0 %v12717_v3 }
 0x115   :  { %8422 = vmatpush3.bf16.msra.mxu0 %v8421_v54  ;;  %v10336_v54 = vsub.f32 %v976_v10, %v1023_v44 }
 0x116   :  { %8423 = vmatprep.subr.bf16.mxu0 %v12717_v3 }
 0x118   :  { %6774 = vmatmul.mubr.f32.vlgmr.msra.gmra.mrb[0].mxu0 %v10085_v45 }
 0x119   :  { %8425 = vmatpush3.bf16.msra.mxu0 %v10047_v12  ;;  %6808 = vmatprep.mubr.msk.f32.mxu0 %vm9808_vm0, %v12700_v8 }
 0x11a   :  { %8426 = vmatprep.subr.bf16.mxu0 %v12717_v3 }
 0x11d   :  { %8428 = vmatpush3.bf16.msra.mxu0 %v10050_v13 }
 0x11e   :  { %8429 = vmatprep.subr.bf16.mxu0 %v12717_v3 }
 0x121   :  { %8431 = vmatpush3.bf16.msra.mxu0 %v10054_v18 }
 0x122   :  { %8432 = vmatprep.subr.bf16.mxu0 %v12717_v3 }
 0x125   :  { %8434 = vmatpush3.bf16.msra.mxu0 %v10065_v26 }
 0x126   :  { %8435 = vmatprep.subr.bf16.mxu0 %v12717_v3 }
 0x129   :  { %8437 = vmatpush3.bf16.msra.mxu0 %v10073_v38 }
 0x12a   :  { %8438 = vmatprep.subr.bf16.mxu0 %v12717_v3 }
 0x12d   :  { %8440 = vmatpush3.bf16.msra.mxu0 %v10097_v55 }
 0x12e   :  { %8441 = vmatprep.subr.bf16.mxu0 %v12717_v3 }
 0x131   :  { %8443 = vmatpush3.bf16.msra.mxu0 %v10111_v62 }
 0x132   :  { %8444 = vmatprep.subr.bf16.mxu0 %v12717_v3 }
 0x135   :  { %8446 = vmatpush3.bf16.msra.mxu0 %v10115_v0 }
 0x136   :  { %8447 = vmatprep.subr.bf16.mxu0 %v12717_v3 }
 0x138   :  { %6809 = vmatmul.mubr.f32.vlgmr.msra.gmra.mrb[0].mxu0 %v10109_v61  ;;  %v10611_v61 = vld [vmem:[#allocation10 + $0x78] sm:$0xff] }
 0x139   :  { %8449 = vmatpush3.bf16.msra.mxu0 %v10139_v28  ;;  %6843 = vmatprep.mubr.msk.f32.mxu0 %vm9808_vm0, %v12700_v8 }
 0x13a   :  { %8450 = vmatprep.subr.bf16.mxu0 %v12717_v3 }
 0x13d   :  { %8452 = vmatpush3.bf16.msra.mxu0 %v10141_v29  ;;  %v967_v29 = vld [vmem:[#allocation12 + $0x30] sm:$0xff] }
 0x13e   :  { %8453 = vmatprep.subr.bf16.mxu0 %v12717_v3 }
 0x141   :  { %8455 = vmatpush3.bf16.msra.mxu0 %v10145_v32  ;;  %v968_v32 = vld [vmem:[#allocation12 + $0x38] sm:$0xff] }
 0x142   :  { %8456 = vmatprep.subr.bf16.mxu0 %v12717_v3 }
 0x145   :  { %8458 = vmatpush3.bf16.msra.mxu0 %v10147_v34  ;;  %v996_v34 = vand.u32 4294901760, %v967_v29 }
 0x146   :  { %8459 = vmatprep.subr.bf16.mxu0 %v12717_v3 }
 0x147   :  { %v10306_v20 = vsub.f32 %v967_v29, %v996_v34 }
 0x149   :  { %8461 = vmatpush3.bf16.msra.mxu0 %v10149_v35  ;;  %v999_v35 = vand.u32 4294901760, %v968_v32 }
 0x14a   :  { %8462 = vmatprep.subr.bf16.mxu0 %v12717_v3 }
 0x14b   :  { %v10308_v21 = vsub.f32 %v968_v32, %v999_v35 }
 0x14d   :  { %8464 = vmatpush3.bf16.msra.mxu0 %v10152_v36  ;;  %v10287_v36 = vpack.c.bf16 %v999_v35, %v996_v34 }
 0x14e   :  { %8465 = vmatprep.subr.bf16.mxu0 %v12717_v3 }
 0x151   :  { %8467 = vmatpush3.bf16.msra.mxu0 %v10154_v37  ;;  %v969_v37 = vld [vmem:[#allocation12 + $0x40] sm:$0xff] }
 0x152   :  { %8468 = vmatprep.subr.bf16.mxu0 %v12717_v3  ;;  %v1002_v30 = vand.u32 4294901760, %v969_v37 }
 0x154   :  { %v10310_v5 = vsub.f32 %v969_v37, %v1002_v30 }
 0x155   :  { %8470 = vmatpush3.bf16.msra.mxu0 %v10156_v39  ;;  %v970_v39 = vld [vmem:[#allocation12 + $0x48] sm:$0xff] }
 0x156   :  { %8471 = vmatprep.subr.bf16.mxu0 %v12717_v3  ;;  %v1005_v41 = vand.u32 4294901760, %v970_v39  ;;  %v12682_v23 = vand.u32 4294901760, %v10310_v5 }
 0x158   :  { %6844 = vmatmul.mubr.f32.vlgmr.msra.gmra.mrb[0].mxu0 %v10068_v31  ;;  %v10291_v15 = vpack.c.bf16 %v1005_v41, %v1002_v30  ;;  %v10312_v4 = vsub.f32 %v970_v39, %v1005_v41  ;;  %v12684_v30 = vand.u32 4294901760, %v10306_v20  ;;  %v12683_v41 = vand.u32 4294901760, %v10308_v21 }
 0x159   :  { %8473 = vmatpush3.bf16.msra.mxu0 %v10047_v12  ;;  %6878 = vmatprep.mubr.msk.f32.mxu0 %vm9808_vm0, %v12700_v8  ;;  %v961_v12 = vld [vmem:[#allocation12] sm:$0xff]  ;;  %v1128_v42 = vsub.f32 %v10310_v5, %v12682_v23 }
 0x15a   :  { %8474 = vmatprep.subr.bf16.mxu0 %v12717_v3  ;;  %v1114_v48 = vsub.f32 %v10306_v20, %v12684_v30  ;;  %v1121_v49 = vsub.f32 %v10308_v21, %v12683_v41  ;;  %v12681_v27 = vand.u32 4294901760, %v10312_v4 }
 0x15b   :  { %v1129_v43 = vand.u32 4294901760, %v1128_v42 }
 0x15c   :  { %v1115_v17 = vand.u32 4294901760, %v1114_v48  ;;  %v1122_v6 = vand.u32 4294901760, %v1121_v49  ;;  %v1135_v10 = vsub.f32 %v10312_v4, %v12681_v27 }
 0x15d   :  { %8476 = vmatpush3.bf16.msra.mxu0 %v10050_v13  ;;  %v962_v13 = vld [vmem:[#allocation12 + $0x8] sm:$0xff] }
 0x15e   :  { %8477 = vmatprep.subr.bf16.mxu0 %v12717_v3  ;;  %v10379_v7 = vpack.c.bf16 %v1122_v6, %v1115_v17  ;;  %v1136_v44 = vand.u32 4294901760, %v1135_v10  ;;  %v12676_v17 = vand.u32 4294901760, %v10334_v52  ;;  %v12675_v6 = vand.u32 4294901760, %v10336_v54 }
 0x160   :  { %v1170_v10 = vsub.f32 %v10334_v52, %v12676_v17 }
 0x161   :  { %8479 = vmatpush3.bf16.msra.mxu0 %v10054_v18  ;;  %v978_v18 = vand.u32 4294901760, %v961_v12 }
 0x162   :  { %8480 = vmatprep.subr.bf16.mxu0 %v12717_v3 }
 0x163   :  { %v10293_v46 = vsub.f32 %v961_v12, %v978_v18 }
 0x165   :  { %8482 = vmatpush3.bf16.msra.mxu0 %v10065_v26  ;;  %v981_v26 = vand.u32 4294901760, %v962_v13  ;;  %v12690_v11 = vand.u32 4294901760, %v10293_v46 }
 0x166   :  { %8483 = vmatprep.subr.bf16.mxu0 %v12717_v3 }
 0x167   :  { %v10295_v16 = vsub.f32 %v962_v13, %v981_v26  ;;  %v1072_v12 = vsub.f32 %v10293_v46, %v12690_v11 }
 0x169   :  { %8485 = vmatpush3.bf16.msra.mxu0 %v10073_v38  ;;  %v10275_v38 = vpack.c.bf16 %v981_v26, %v978_v18  ;;  %v12689_v50 = vand.u32 4294901760, %v10295_v16  ;;  %v1073_v18 = vand.u32 4294901760, %v1072_v12  ;;  %v12680_v12 = vand.u32 4294901760, %v10318_v24 }
 0x16a   :  { %8486 = vmatprep.subr.bf16.mxu0 %v12717_v3 }
 0x16b   :  { %8497 = vmatpush3.bf16.msra.mxu1 %v10275_v38  ;;  %v1079_v13 = vsub.f32 %v10295_v16, %v12689_v50 }
 0x16c   :  { %8498 = vmatprep.subr.bf16.mxu1 %v12717_v3 }
 0x16d   :  { %8488 = vmatpush3.bf16.msra.mxu0 %v10097_v55  ;;  %v963_v55 = vld [vmem:[#allocation12 + $0x10] sm:$0xff]  ;;  %v1080_v26 = vand.u32 4294901760, %v1079_v13  ;;  %v12679_v13 = vand.u32 4294901760, %v10320_v25 }
 0x16e   :  { %8489 = vmatprep.subr.bf16.mxu0 %v12717_v3  ;;  %v984_v59 = vand.u32 4294901760, %v963_v55 }
 0x170   :  { %v10297_v53 = vsub.f32 %v963_v55, %v984_v59 }
 0x171   :  { %8491 = vmatpush3.bf16.msra.mxu0 %v10111_v62  ;;  %v10279_v62 = vpack.c.bf16 %v987_v60, %v984_v59  ;;  %v10349_v59 = vpack.c.bf16 %v1080_v26, %v1073_v18  ;;  %v10389_v18 = vpack.c.bf16 %v1136_v44, %v1129_v43  ;;  %v1142_v26 = vsub.f32 %v10318_v24, %v12680_v12 }
 0x172   :  { %8492 = vmatprep.subr.bf16.mxu0 %v12717_v3  ;;  %v12688_v55 = vand.u32 4294901760, %v10297_v53  ;;  %v1177_v43 = vsub.f32 %v10336_v54, %v12675_v6  ;;  %v1171_v44 = vand.u32 4294901760, %v1170_v10  ;;  %v866_v6 = vlaneseq }
 0x173   :  { %8500 = vmatpush3.bf16.msra.mxu1 %v10279_v62 }
 0x174   :  { %8501 = vmatprep.subr.bf16.mxu1 %v12717_v3  ;;  %v1086_v60 = vsub.f32 %v10297_v53, %v12688_v55 }
 0x175   :  { %8494 = vmatpush3.bf16.msra.mxu0 %v10115_v0  ;;  %v966_v0 = vld [vmem:[#allocation12 + $0x28] sm:$0xff] }
 0x176   :  { %8639 = vmatprep.subr.bf16.mxu0 %v12717_v3  ;;  %v993_v2 = vand.u32 4294901760, %v966_v0 }
 0x178   :  { %6879 = vmatmul.mubr.f32.vlgmr.msra.gmra.mrb[0].mxu0 %v10068_v31  ;;  %v10283_v28 = vpack.c.bf16 %v993_v2, %v990_v1  ;;  %v10303_v19 = vsub.f32 %v966_v0, %v993_v2  ;;  %v1087_v0 = vand.u32 4294901760, %v1086_v60  ;;  %v1094_v1 = vand.u32 4294901760, %v1093_v63 }
 0x179   :  { %7123 = vmatprep.mubr.msk.f32.mxu0 %vm9808_vm0, %v12700_v8  ;;  %v12686_v2 = vand.u32 4294901760, %v10301_v57  ;;  %v1149_v60 = vsub.f32 %v10320_v25, %v12679_v13  ;;  %v1143_v63 = vand.u32 4294901760, %v1142_v26  ;;  %v1178_v26 = vand.u32 4294901760, %v1177_v43  ;;  %v10446_v13 = vpop.permute.xlu0 %863 }
 0x17a   :  { %8503 = vmatpush3.bf16.msra.mxu1 %v10283_v28  ;;  %v12685_v29 = vand.u32 4294901760, %v10303_v19  ;;  %v10359_v32 = vpack.c.bf16 %v1094_v1, %v1087_v0  ;;  %v12678_v1 = vand.u32 4294901760, %v10325_v33  ;;  %12901 = vst [vmem:[#allocation33_spill] sm:$0xff] %v10446_v13  ;;  %vm865_vm2 = vcmp.eq.s32.totalorder %v10446_v13, 1  ;;  %v10588_v13 = vld [vmem:[#allocation10 + $0x60] sm:$0xff] }
 0x17b   :  { %8504 = vmatprep.subr.bf16.mxu1 %v12717_v3  ;;  %v1100_v34 = vsub.f32 %v10301_v57, %v12686_v2  ;;  %v1150_v0 = vand.u32 4294901760, %v1149_v60  ;;  %v10417_v60 = vpack.c.bf16 %v1178_v26, %v1171_v44  ;;  %v10435_v44 = vpop.permute.xlu1 %883 }
 0x17c   :  { %v1107_v35 = vsub.f32 %v10303_v19, %v12685_v29  ;;  %12897 = vst [vmem:[#allocation29_spill] sm:$0xff] %v10435_v44  ;;  %vm885_vm4 = vcmp.eq.s32.totalorder %v10435_v44, 1 }
 0x17d   :  { %v1101_v37 = vand.u32 4294901760, %v1100_v34  ;;  %v12677_v34 = vand.u32 4294901760, %v10327_v14 }
 0x17e   :  { %8506 = vmatpush3.bf16.msra.mxu1 %v10287_v36  ;;  %v1108_v39 = vand.u32 4294901760, %v1107_v35  ;;  %v10399_v35 = vpack.c.bf16 %v1150_v0, %v1143_v63  ;;  %v10538_v63 = vld [vmem:[#allocation10 + $0x38] sm:$0xff] }
 0x17f   :  { %8507 = vmatprep.subr.bf16.mxu1 %v12717_v3  ;;  %v10437_v26 = vpop.permute.xlu1 %893 }
 0x180   :  { %v10369_v47 = vpack.c.bf16 %v1108_v39, %v1101_v37  ;;  %v1156_v37 = vsub.f32 %v10325_v33, %v12678_v1  ;;  %v1163_v39 = vsub.f32 %v10327_v14, %v12677_v34  ;;  %12898 = vst [vmem:[#allocation30_spill] sm:$0xff] %v10437_v26  ;;  %v10441_v34 = vshrl.u32 %v866_v6, 7  ;;  %v5821_v1 = vld [vmem:[%s12661_s5] ss:$0 sm:$0xff]  ;;  %v10453_v6 = vpop.permute.xlu0 %873  ;;  %s12541_s5 = sld [smem:[#allocation7 + $0x9]] }
 0x181   :  { %12903 = vst [vmem:[#allocation35_spill] sm:$0xff] %v10453_v6  ;;  %vm875_vm3 = vcmp.eq.s32.totalorder %v10453_v6, 1  ;;  %vm895_vm5 = vcmp.eq.s32.totalorder %v10437_v26, 1  ;;  %v10570_v26 = vld [vmem:[#allocation10 + $0x58] sm:$0xff] }
 0x182   :  { %8509 = vmatpush3.bf16.msra.mxu1 %v10291_v15  ;;  %v1157_v48 = vand.u32 4294901760, %v1156_v37  ;;  %v1164_v49 = vand.u32 4294901760, %v1163_v39  ;;  %12900 = vst [vmem:[#allocation32_spill] sm:$0xff] %v10441_v34  ;;  %v12691_v41 = vsub.s32 0, %v10441_v34  ;;  %v12692_v30 = vsub.s32 1, %v10441_v34 }
 0x183   :  { %8510 = vmatprep.subr.bf16.mxu1 %v12717_v3  ;;  %v10439_v17 = vpop.permute.xlu1 %903  ;;  %v12693_v58 = vsub.s32 2, %v10441_v34 }
 0x184   :  { %v10409_v42 = vpack.c.bf16 %v1164_v49, %v1157_v48  ;;  %12899 = vst [vmem:[#allocation31_spill] sm:$0xff] %v10439_v17  ;;  %vm905_vm6 = vcmp.eq.s32.totalorder %v10439_v17, 1 }
 0x186   :  { %8512 = vmatpush3.bf16.msra.mxu1 %v10315_v22  ;;  %13154 = sst [smem:[#allocation58_spill]] %s12541_s5  ;;  %s5654_s5 = scalar_lea.vmem [#allocation2], %s12495_s0 }
 0x187   :  { %8513 = vmatprep.subr.bf16.mxu1 %v12717_v3  ;;  %v10450_v29 = vpop.permute.xlu1 %913  ;;  %s5699_s0 = scalar_lea.vmem [#allocation2], %s12505_s25  ;;  %s5656_s25 = scalar_lea.vmem [#allocation3], %s12527_s6 }
 0x188   :  { %12902 = vst [vmem:[#allocation34_spill] sm:$0xff] %v10450_v29  ;;  %vm915_vm7 = vcmp.eq.s32.totalorder %v10450_v29, 1  ;;  %v10554_v29 = vld [vmem:[#allocation10 + $0x48] sm:$0xff] }
 0x18a   :  { %8515 = vmatpush3.bf16.msra.mxu1 %v10323_v9 }
 0x18b   :  { %8516 = vmatprep.subr.bf16.mxu1 %v12717_v3  ;;  %v10470_v43 = vpop.permute.xlu1 %923 }
 0x18c   :  { %12904 = vst [vmem:[#allocation36_spill] sm:$0xff] %v10470_v43  ;;  %vm925_vm8 = vcmp.eq.s32.totalorder %v10470_v43, 1  ;;  %v10552_v43 = vld [vmem:[#allocation10 + $0x40] sm:$0xff] }
 0x18d   :  { %v12713_v17 = vand.u32 4294901760, %v10552_v43 }
 0x18e   :  { %8518 = vmatpush3.bf16.msra.mxu1 %v10332_v51 }
 0x18f   :  { %8519 = vmatprep.subr.bf16.mxu1 %v12717_v3  ;;  %v10492_v39 = vpop.permute.xlu1 %933 }
 0x190   :  { %12905 = vst [vmem:[#allocation37_spill] sm:$0xff] %v10492_v39  ;;  %vm935_vm9 = vcmp.eq.s32.totalorder %v10492_v39, 1  ;;  %v12707_v39 = vand.u32 4294901760, %v10538_v63 }
 0x24b   :  { %v855_v12 = vpop.f32.mrb[0].mxu0 }
 0x24c   :  { %v9503_v27 = vadd.f32 %v5821_v1, %v855_v12  ;;  %v6880_v23 = vpop.f32.mrb[1].mxu0  ;;  %v12694_v12 = vsub.s32 3, %v10441_v34  ;;  %v12695_v1 = vsub.s32 4, %v10441_v34 }
 0x24e   :  { %v859_v2 = vmax.f32 %v9503_v27, 0.0 }
 0x250   :  { %v869_v55 = vrot.slane %v859_v2, %v12691_v41  ;;  %v879_v50 = vrot.slane %v859_v2, %v12692_v30  ;;  %v889_v23 = vrot.slane %v859_v2, %v12693_v58  ;;  %v899_v41 = vrot.slane %v859_v2, %v12694_v12 }
 0x251   :  { %v12696_v30 = vsub.s32 5, %v10441_v34 }
 0x252   :  { %v870_v27 = vsel %vm865_vm2, %v869_v55, -1e+30  ;;  %v880_v10 = vsel %vm875_vm3, %v879_v50, -1e+30  ;;  %v890_v49 = vsel %vm885_vm4, %v889_v23, -1e+30  ;;  %v909_v55 = vrot.slane %v859_v2, %v12695_v1 }
 0x253   :  { %v871_v11 = vmax.f32 %v870_v27, -1e+30  ;;  %v12697_v27 = vsub.s32 6, %v10441_v34  ;;  %v900_v48 = vsel %vm895_vm5, %v899_v41, -1e+30  ;;  %v919_v50 = vrot.slane %v859_v2, %v12696_v30 }
 0x254   :  { %v910_v23 = vsel %vm905_vm6, %v909_v55, -1e+30 }
 0x255   :  { %v881_v58 = vmax.f32 %v871_v11, %v880_v10  ;;  %v12698_v11 = vsub.s32 7, %v10441_v34  ;;  %v929_v1 = vrot.slane %v859_v2, %v12697_v27  ;;  %v920_v41 = vsel %vm915_vm7, %v919_v50, -1e+30  ;;  %v10590_v34 = vld [vmem:[#allocation10 + $0x68] sm:$0xff] }
 0x257   :  { %v891_v12 = vmax.f32 %v881_v58, %v890_v49  ;;  %v939_v49 = vrot.slane %v859_v2, %v12698_v11 }
 0x259   :  { %v901_v10 = vmax.f32 %v891_v12, %v900_v48  ;;  %v10500_v48 = vpop.xlane.xlu0 %191  ;;  %v930_v12 = vsel %vm925_vm8, %v929_v1, -1e+30 }
 0x25a   :  { %12906 = vst [vmem:[#allocation38_spill] sm:$0xff] %v10500_v48  ;;  %vm193_vm10 = vcmp.gt.f32.partialorder %v10500_v48, 0.0 }
 0x25b   :  { %v911_v58 = vmax.f32 %v901_v10, %v910_v23  ;;  %v940_v10 = vsel %vm935_vm9, %v939_v49, -1e+30  ;;  %v946_v49 = vld [vmem:[#allocation10 + $0x8] sm:$0xff] }
 0x25d   :  { %v921_v30 = vmax.f32 %v911_v58, %v920_v41  ;;  %v945_v41 = vld [vmem:[#allocation10] sm:$0xff] }
 0x25f   :  { %v931_v55 = vmax.f32 %v921_v30, %v930_v12  ;;  %v1619_v12 = vand.u32 4294901760, %v945_v41 }
 0x261   :  { %v941_v23 = vmax.f32 %v931_v55, %v940_v10  ;;  %v1622_v55 = vand.u32 4294901760, %v946_v49  ;;  %v10578_v6 = vsub.f32 %v945_v41, %v1619_v12  ;;  %v12913_v41 = vmov 0.0|0.0  }
 0x263   :  { %v944_v50 = vsel %vm193_vm10, %v941_v23, 0.0  ;;  %v10522_v10 = vpack.c.bf16 %v1622_v55, %v1619_v12  ;;  %v947_v23 = vld [vmem:[#allocation10 + $0x10] sm:$0xff]  ;;  %v12727_v12 = vand.u32 4294901760, %v10578_v6 }
 0x264   :  { %v10509_v27 = vand.u32 4294901760, %v944_v50  ;;  %v1625_v11 = vand.u32 4294901760, %v947_v23 }
 0x265   :  { %12907 = vst [vmem:[#allocation39_spill] sm:$0xff] %v10522_v10  ;;  %8641 = vmatpush3.bf16.msra.mxu0 %v10522_v10 }
 0x266   :  { %v10512_v2 = vsub.f32 %v944_v50, %v10509_v27  ;;  %v948_v50 = vld [vmem:[#allocation10 + $0x18] sm:$0xff]  ;;  %8642 = vmatprep.subr.bf16.mxu0 %v12717_v3 }
 0x268   :  { %v12699_v58 = vand.u32 4294901760, %v10512_v2 }
 0x26a   :  { %v1061_v30 = vsub.f32 %v10512_v2, %v12699_v58  ;;  %v950_v58 = vld [vmem:[#allocation10 + $0x28] sm:$0xff] }
 0x26b   :  { %v1634_v0 = vand.u32 4294901760, %v950_v58 }
 0x26c   :  { %v1062_v1 = vand.u32 4294901760, %v1061_v30  ;;  %v1628_v30 = vand.u32 4294901760, %v948_v50 }
 0x26e   :  { %6914 = vmatmul.mubr.f32.vlgmr.msra.gmra.mrb[0].mxu1 %v1062_v1  ;;  %v949_v1 = vld [vmem:[#allocation10 + $0x20] sm:$0xff] }
 0x26f   :  { %8521 = vmatpush3.bf16.msra.mxu1 %v10349_v59  ;;  %6948 = vmatprep.mubr.msk.f32.mxu1 %vm9808_vm0, %v12700_v8  ;;  %v10528_v59 = vpack.c.bf16 %v1628_v30, %v1625_v11  ;;  %v1631_v37 = vand.u32 4294901760, %v949_v1 }
 0x270   :  { %8522 = vmatprep.subr.bf16.mxu1 %v12717_v3 }
 0x271   :  { %12908 = vst [vmem:[#allocation40_spill] sm:$0xff] %v10528_v59  ;;  %8644 = vmatpush3.bf16.msra.mxu0 %v10528_v59  ;;  %v10534_v8 = vpack.c.bf16 %v1634_v0, %v1631_v37  ;;  %v12933_v59 = vpack.c.bf16 %v10327_v14, %v10325_v33 }
 0x272   :  { %8645 = vmatprep.subr.bf16.mxu0 %v12717_v3 }
 0x273   :  { %8524 = vmatpush3.bf16.msra.mxu1 %v10359_v32  ;;  %12909 = vst [vmem:[#allocation41_spill] sm:$0xff] %v10534_v8  ;;  %v10536_v32 = vld [vmem:[#allocation10 + $0x30] sm:$0xff] }
 0x274   :  { %8525 = vmatprep.subr.bf16.mxu1 %v12717_v3  ;;  %v12708_v48 = vand.u32 4294901760, %v10536_v32 }
 0x275   :  { %8647 = vmatpush3.bf16.msra.mxu0 %v10534_v8 }
 0x276   :  { %8648 = vmatprep.subr.bf16.mxu0 %v12717_v3 }
 0x277   :  { %8527 = vmatpush3.bf16.msra.mxu1 %v10369_v47  ;;  %v10550_v47 = vpack.c.bf16 %v12707_v39, %v12708_v48  ;;  %v10568_v48 = vld [vmem:[#allocation10 + $0x50] sm:$0xff] }
 0x278   :  { %8528 = vmatprep.subr.bf16.mxu1 %v12717_v3  ;;  %v12720_v44 = vand.u32 4294901760, %v10568_v48 }
 0x279   :  { %12910 = vst [vmem:[#allocation42_spill] sm:$0xff] %v10550_v47  ;;  %8650 = vmatpush3.bf16.msra.mxu0 %v10550_v47 }
 0x27a   :  { %8651 = vmatprep.subr.bf16.mxu0 %v12717_v3 }
 0x27b   :  { %8530 = vmatpush3.bf16.msra.mxu1 %v10379_v7  ;;  %v12712_v7 = vand.u32 4294901760, %v10554_v29 }
 0x27c   :  { %8531 = vmatprep.subr.bf16.mxu1 %v12717_v3 }
 0x27d   :  { %v10566_v39 = vpack.c.bf16 %v12712_v7, %v12713_v17  ;;  %v10586_v17 = vsub.f32 %v946_v49, %v1622_v55  ;;  %v10605_v55 = vsub.f32 %v947_v23, %v1625_v11  ;;  %v10626_v23 = vsub.f32 %v949_v1, %v1631_v37 }
 0x27e   :  { %v12917_v37 = vmov 0.0  }
 0x27f   :  { %8533 = vmatpush3.bf16.msra.mxu1 %v10389_v18  ;;  %12911 = vst [vmem:[#allocation43_spill] sm:$0xff] %v10566_v39  ;;  %8653 = vmatpush3.bf16.msra.mxu0 %v10566_v39  ;;  %v12719_v18 = vand.u32 4294901760, %v10570_v26  ;;  %v12732_v39 = vand.u32 4294901760, %v10611_v61 }
 0x280   :  { %8534 = vmatprep.subr.bf16.mxu1 %v12717_v3  ;;  %8654 = vmatprep.subr.bf16.mxu0 %v12717_v3 }
 0x281   :  { %v10584_v7 = vpack.c.bf16 %v12719_v18, %v12720_v44  ;;  %v10607_v18 = vsub.f32 %v948_v50, %v1628_v30  ;;  %v10609_v44 = vld [vmem:[#allocation10 + $0x70] sm:$0xff]  ;;  %v10628_v50 = vsub.f32 %v950_v58, %v1634_v0  ;;  %v12916_v0 = vpack.c.bf16 %v10295_v16, %v10293_v46 }
 0x283   :  { %8536 = vmatpush3.bf16.msra.mxu1 %v10399_v35  ;;  %12912 = vst [vmem:[#allocation44_spill] sm:$0xff] %v10584_v7  ;;  %8656 = vmatpush3.bf16.msra.mxu0 %v10584_v7  ;;  %v12728_v35 = vand.u32 4294901760, %v10588_v13  ;;  %v12734_v7 = vand.u32 4294901760, %v10609_v44 }
 0x284   :  { %8537 = vmatprep.subr.bf16.mxu1 %v12717_v3  ;;  %v12726_v3 = vand.u32 4294901760, %v10590_v34  ;;  %8657 = vmatprep.subr.bf16.mxu0 %v12913_v41 }
 0x285   :  { %v10634_v30 = vpack.c.bf16 %v12732_v39, %v12734_v7  ;;  %v12919_v39 = vand.u32 4294901760, %v10538_v63 }
 0x286   :  { %v10602_v49 = vpack.c.bf16 %v12726_v3, %v12728_v35  ;;  %v1713_v3 = vsub.f32 %v10578_v6, %v12727_v12  ;;  %v12733_v35 = vand.u32 4294901760, %v10605_v55 }
 0x287   :  { %8539 = vmatpush3.bf16.msra.mxu1 %v10409_v42  ;;  %v12731_v42 = vand.u32 4294901760, %v10586_v17  ;;  %12915 = vst [vmem:[#allocation46_spill] sm:$0xff] %v10634_v30 }
 0x288   :  { %8540 = vmatprep.subr.bf16.mxu1 %v12913_v41  ;;  %12914 = vst [vmem:[#allocation45_spill] sm:$0xff] %v10602_v49  ;;  %8659 = vmatpush3.bf16.msra.mxu0 %v10602_v49  ;;  %v1714_v12 = vand.u32 4294901760, %v1713_v3  ;;  %v12735_v49 = vand.u32 4294901760, %v10607_v18  ;;  %v8688_v3 = vpack.c.bf16 %v10586_v17, %v10578_v6  ;;  %v1727_v1 = vsub.f32 %v10605_v55, %v12733_v35 }
 0x289   :  { %8660 = vmatprep.subr.bf16.mxu0 %v12913_v41  ;;  %v1720_v11 = vsub.f32 %v10586_v17, %v12731_v42  ;;  %v10667_v35 = vsub.f32 %v10538_v63, %v12919_v39  ;;  %v12920_v63 = vpack.c.bf16 %v10299_v56, %v10297_v53 }
 0x28a   :  { %v1728_v7 = vand.u32 4294901760, %v1727_v1 }
 0x28b   :  { %8542 = vmatpush3.bf16.msra.mxu1 %v10417_v60  ;;  %v1721_v60 = vand.u32 4294901760, %v1720_v11  ;;  %v12918_v11 = vand.u32 4294901760, %v10536_v32 }
 0x28c   :  { %8543 = vmatprep.subr.bf16.mxu1 %v12913_v41  ;;  %8662 = vmatpush3.bf16.msra.mxu0 %v10634_v30 }
 0x28d   :  { %v10645_v58 = vpack.c.bf16 %v1721_v60, %v1714_v12  ;;  %v10656_v42 = vsub.f32 %v10536_v32, %v12918_v11  ;;  %8687 = vmatprep.subr.bf16.mxu0 %v12913_v41  ;;  %v1734_v12 = vsub.f32 %v10607_v18, %v12735_v49  ;;  %v12737_v60 = vand.u32 4294901760, %v10626_v23 }
 0x28e   :  { %6949 = vmatmul.mubr.f32.vlgmr.msra.gmra.mrb[2].mxu1 %v10509_v27 }
 0x28f   :  { %8545 = vmatpush3.bf16.msra.mxu1 %v12916_v0  ;;  %6983 = vmatprep.mubr.msk.f32.mxu1 %vm9808_vm0, %v12917_v37  ;;  %v12736_v0 = vand.u32 4294901760, %v10628_v50  ;;  %v1735_v32 = vand.u32 4294901760, %v1734_v12  ;;  %v1741_v11 = vsub.f32 %v10626_v23, %v12737_v60  ;;  %v8691_v12 = vpack.c.bf16 %v10607_v18, %v10605_v55 }
 0x290   :  { %8546 = vmatprep.subr.bf16.mxu1 %v12913_v41  ;;  %7124 = vmatmul.mubr.f32.vlgmr.msra.gmra.mrb[2].mxu0 %v10158_v40  ;;  %v12921_v40 = vand.u32 4294901760, %v10552_v43  ;;  %v12740_v30 = vand.u32 4294901760, %v10656_v42 }
 0x291   :  { %8689 = vmatpush3.bf16.msra.mxu0 %v8688_v3  ;;  %v1748_v49 = vsub.f32 %v10628_v50, %v12736_v0  ;;  %7193 = vmatprep.mubr.msk.f32.mxu0 %vm9808_vm0, %v12917_v37  ;;  %v12922_v3 = vand.u32 4294901760, %v10554_v29  ;;  %v10695_v0 = vpack.c.bf16 %v1735_v32, %v1728_v7  ;;  %v12924_v7 = vand.u32 4294901760, %v10568_v48 }
 0x292   :  { %v10684_v39 = vsub.f32 %v10552_v43, %v12921_v40  ;;  %8690 = vmatprep.subr.bf16.mxu0 %v12913_v41  ;;  %v12743_v43 = vand.u32 4294901760, %v10667_v35 }
 0x293   :  { %8548 = vmatpush3.bf16.msra.mxu1 %v12920_v63  ;;  %v10689_v1 = vsub.f32 %v10554_v29, %v12922_v3  ;;  %v1742_v63 = vand.u32 4294901760, %v1741_v11  ;;  %v1749_v60 = vand.u32 4294901760, %v1748_v49  ;;  %v1755_v29 = vsub.f32 %v10656_v42, %v12740_v30 }
 0x294   :  { %8549 = vmatprep.subr.bf16.mxu1 %v12913_v41  ;;  %v12923_v3 = vpack.c.bf16 %v10303_v19, %v10301_v57  ;;  %v10710_v32 = vsub.f32 %v10568_v48, %v12924_v7  ;;  %v8694_v49 = vpack.c.bf16 %v10628_v50, %v10626_v23  ;;  %v12925_v11 = vand.u32 4294901760, %v10570_v26 }
 0x295   :  { %8692 = vmatpush3.bf16.msra.mxu0 %v8691_v12  ;;  %v10699_v40 = vpack.c.bf16 %v1749_v60, %v1742_v63  ;;  %v1762_v60 = vsub.f32 %v10667_v35, %v12743_v43  ;;  %v1756_v63 = vand.u32 4294901760, %v1755_v29  ;;  %v12745_v48 = vand.u32 4294901760, %v10684_v39 }
 0x296   :  { %8693 = vmatprep.subr.bf16.mxu0 %v12913_v41  ;;  %v10722_v12 = vsub.f32 %v10570_v26, %v12925_v11  ;;  %v12926_v30 = vand.u32 4294901760, %v10588_v13  ;;  %v12927_v29 = vpack.c.bf16 %v10308_v21, %v10306_v20 }
 0x297   :  { %8551 = vmatpush3.bf16.msra.mxu1 %v12923_v3  ;;  %v12744_v3 = vand.u32 4294901760, %v10689_v1  ;;  %v1763_v7 = vand.u32 4294901760, %v1762_v60  ;;  %v1769_v43 = vsub.f32 %v10684_v39, %v12745_v48  ;;  %v12928_v60 = vand.u32 4294901760, %v10590_v34 }
 0x298   :  { %8552 = vmatprep.subr.bf16.mxu1 %v12913_v41  ;;  %v10729_v47 = vsub.f32 %v10588_v13, %v12926_v30  ;;  %v8697_v30 = vpack.c.bf16 %v10667_v35, %v10656_v42  ;;  %v12749_v48 = vand.u32 4294901760, %v10710_v32 }
 0x299   :  { %8695 = vmatpush3.bf16.msra.mxu0 %v8694_v49  ;;  %v1776_v26 = vsub.f32 %v10689_v1, %v12744_v3  ;;  %v10743_v11 = vsub.f32 %v10590_v34, %v12928_v60  ;;  %v10745_v13 = vpack.c.bf16 %v1763_v7, %v1756_v63  ;;  %v1770_v49 = vand.u32 4294901760, %v1769_v43 }
 0x29a   :  { %8696 = vmatprep.subr.bf16.mxu0 %v12913_v41  ;;  %v1783_v34 = vsub.f32 %v10710_v32, %v12749_v48  ;;  %v12929_v7 = vpack.c.bf16 %v10312_v4, %v10310_v5  ;;  %v12930_v43 = vand.u32 4294901760, %v10609_v44 }
 0x29b   :  { %8554 = vmatpush3.bf16.msra.mxu1 %v12927_v29  ;;  %v1777_v3 = vand.u32 4294901760, %v1776_v26  ;;  %v12748_v29 = vand.u32 4294901760, %v10722_v12  ;;  %v12751_v48 = vand.u32 4294901760, %v10743_v11 }
 0x29c   :  { %8555 = vmatprep.subr.bf16.mxu1 %v12913_v41  ;;  %v10767_v26 = vsub.f32 %v10609_v44, %v12930_v43 }
 0x29d   :  { %8698 = vmatpush3.bf16.msra.mxu0 %v8697_v30  ;;  %v10753_v8 = vpack.c.bf16 %v1777_v3, %v1770_v49  ;;  %v1790_v63 = vsub.f32 %v10722_v12, %v12748_v29  ;;  %v12931_v3 = vand.u32 4294901760, %v10611_v61  ;;  %v8700_v30 = vpack.c.bf16 %v10689_v1, %v10684_v39 }
 0x29e   :  { %8699 = vmatprep.subr.bf16.mxu0 %v12913_v41  ;;  %v1784_v49 = vand.u32 4294901760, %v1783_v34  ;;  %v1804_v43 = vsub.f32 %v10743_v11, %v12751_v48  ;;  %v8703_v34 = vpack.c.bf16 %v10722_v12, %v10710_v32 }
 0x29f   :  { %8557 = vmatpush3.bf16.msra.mxu1 %v12929_v7  ;;  %v10772_v60 = vsub.f32 %v10611_v61, %v12931_v3  ;;  %v1791_v29 = vand.u32 4294901760, %v1790_v63  ;;  %v12750_v7 = vand.u32 4294901760, %v10729_v47  ;;  %v12932_v3 = vpack.c.bf16 %v10320_v25, %v10318_v24 }
 0x2a0   :  { %8558 = vmatprep.subr.bf16.mxu1 %v12913_v41  ;;  %v1805_v63 = vand.u32 4294901760, %v1804_v43 }
 0x2a1   :  { %8701 = vmatpush3.bf16.msra.mxu0 %v8700_v30  ;;  %v10780_v44 = vpack.c.bf16 %v1791_v29, %v1784_v49  ;;  %v1797_v61 = vsub.f32 %v10729_v47, %v12750_v7  ;;  %v1810_v30 = vand.u32 4294901760, %v10767_v26  ;;  %v1817_v49 = vand.u32 4294901760, %v10772_v60 }
 0x2a2   :  { %8702 = vmatprep.subr.bf16.mxu0 %v12913_v41 }
 0x2a3   :  { %8560 = vmatpush3.bf16.msra.mxu1 %v12932_v3  ;;  %v1798_v29 = vand.u32 4294901760, %v1797_v61  ;;  %v1811_v48 = vsub.f32 %v10767_v26, %v1810_v30  ;;  %v1818_v3 = vsub.f32 %v10772_v60, %v1817_v49  ;;  %v8706_v61 = vpack.c.bf16 %v10743_v11, %v10729_v47 }
 0x2a4   :  { %8561 = vmatprep.subr.bf16.mxu1 %v12913_v41 }
 0x2a5   :  { %8704 = vmatpush3.bf16.msra.mxu0 %v8703_v34  ;;  %v10797_v7 = vpack.c.bf16 %v1805_v63, %v1798_v29  ;;  %v1812_v43 = vand.u32 4294901760, %v1811_v48  ;;  %v1819_v10 = vand.u32 4294901760, %v1818_v3  ;;  %v12934_v29 = vpack.c.bf16 %v10336_v54, %v10334_v52 }
 0x2a6   :  { %8705 = vmatprep.subr.bf16.mxu0 %v12913_v41  ;;  %v12936_v48 = vand.u32 4294901760, %v10586_v17 }
 0x2a7   :  { %8563 = vmatpush3.bf16.msra.mxu1 %v12933_v59  ;;  %v10808_v34 = vpack.c.bf16 %v1819_v10, %v1812_v43  ;;  %v8709_v59 = vpack.c.bf16 %v10772_v60, %v10767_v26  ;;  %v12935_v10 = vand.u32 4294901760, %v10578_v6  ;;  %v12937_v26 = vand.u32 4294901760, %v10605_v55 }
 0x2a8   :  { %8564 = vmatprep.subr.bf16.mxu1 %v12913_v41  ;;  %v12938_v6 = vand.u32 4294901760, %v10607_v18  ;;  %v12940_v60 = vand.u32 4294901760, %v10628_v50  ;;  %v12941_v18 = vand.u32 4294901760, %v10656_v42  ;;  %v12942_v55 = vand.u32 4294901760, %v10667_v35 }
 0x2a9   :  { %8707 = vmatpush3.bf16.msra.mxu0 %v8706_v61  ;;  %v8736_v63 = vpack.c.bf16 %v12936_v48, %v12935_v10  ;;  %v12944_v50 = vand.u32 4294901760, %v10689_v1  ;;  %v12945_v35 = vand.u32 4294901760, %v10710_v32  ;;  %v12946_v42 = vand.u32 4294901760, %v10722_v12 }
 0x2aa   :  { %8708 = vmatprep.subr.bf16.mxu0 %v12913_v41  ;;  %v8739_v17 = vpack.c.bf16 %v12938_v6, %v12937_v26  ;;  %v8745_v61 = vpack.c.bf16 %v12942_v55, %v12941_v18  ;;  %v12948_v1 = vand.u32 4294901760, %v10743_v11  ;;  %v12949_v32 = vand.u32 4294901760, %v10293_v46 }
 0x2ab   :  { %8566 = vmatpush3.bf16.msra.mxu1 %v12934_v29  ;;  %v8751_v29 = vpack.c.bf16 %v12946_v42, %v12945_v35  ;;  %v12950_v12 = vand.u32 4294901760, %v10295_v16  ;;  %v8757_v48 = vpack.c.bf16 %v1817_v49, %v1810_v30  ;;  %v12952_v11 = vand.u32 4294901760, %v10297_v53  ;;  %v2274_v35 = vld [vmem:[#allocation13] sm:$0xff]  ;;  %v2275_v42 = vld [vmem:[#allocation13 + $0x8] sm:$0xff] }
 0x2ac   :  { %8567 = vmatprep.subr.bf16.mxu1 %v12913_v41  ;;  %v12954_v46 = vand.u32 4294901760, %v10301_v57  ;;  %v12955_v16 = vand.u32 4294901760, %v10303_v19  ;;  %v12958_v49 = vand.u32 4294901760, %v10310_v5  ;;  %v12959_v6 = vand.u32 4294901760, %v10312_v4 }
 0x2ad   :  { %8710 = vmatpush3.bf16.msra.mxu0 %v8709_v59  ;;  %v8592_v10 = vpack.c.bf16 %v12950_v12, %v12949_v32  ;;  %v12960_v57 = vand.u32 4294901760, %v10318_v24  ;;  %v12961_v19 = vand.u32 4294901760, %v10320_v25  ;;  %v12964_v5 = vand.u32 4294901760, %v10334_v52  ;;  %v12971_v24 = vld [vmem:[#allocation44_spill] sm:$0xff]  ;;  %v12972_v25 = vld [vmem:[#allocation45_spill] sm:$0xff] }
 0x2ae   :  { %6984 = vmatmul.mubr.f32.vlgmr.msra.gmra.mrb[4].mxu1 %v10512_v2  ;;  %8735 = vmatprep.subr.bf16.mxu0 %v12913_v41  ;;  %v8598_v53 = vpack.c.bf16 %v12955_v16, %v12954_v46  ;;  %v12965_v4 = vand.u32 4294901760, %v10336_v54 }
 0x2af   :  { %8569 = vmatpush3.bf16.msra.mxu1 %v10275_v38  ;;  %7018 = vmatprep.mubr.msk.f32.mxu1 %vm9808_vm0, %v12917_v37 }
 0x2b0   :  { %8570 = vmatprep.subr.bf16.mxu1 %v12913_v41  ;;  %7194 = vmatmul.mubr.f32.vlgmr.msra.gmra.mrb[4].mxu0 %v10085_v45  ;;  %v12939_v45 = vand.u32 4294901760, %v10626_v23  ;;  %v12943_v23 = vand.u32 4294901760, %v10684_v39  ;;  %v12947_v39 = vand.u32 4294901760, %v10729_v47  ;;  %v12951_v47 = vand.u32 4294901760, %v10512_v2 }
 0x2b1   :  { %8737 = vmatpush3.bf16.msra.mxu0 %v8736_v63  ;;  %7263 = vmatprep.mubr.msk.f32.mxu0 %vm9808_vm0, %v12917_v37  ;;  %v12953_v63 = vand.u32 4294901760, %v10299_v56  ;;  %v12956_v56 = vand.u32 4294901760, %v10306_v20  ;;  %v12957_v2 = vand.u32 4294901760, %v10308_v21  ;;  %v12962_v20 = vand.u32 4294901760, %v10325_v33  ;;  %v12974_v33 = vld [vmem:[#allocation28_spill] sm:$0xff] }
 0x2b2   :  { %8738 = vmatprep.subr.bf16.mxu0 %v12913_v41  ;;  %v8742_v3 = vpack.c.bf16 %v12940_v60, %v12939_v45  ;;  %v8748_v43 = vpack.c.bf16 %v12944_v50, %v12943_v23  ;;  %v8754_v59 = vpack.c.bf16 %v12948_v1, %v12947_v39  ;;  %v8607_v45 = vpack.c.bf16 %v12961_v19, %v12960_v57  ;;  %v2277_v1 = vld [vmem:[#allocation13 + $0x18] sm:$0xff] }
 0x2b3   :  { %8572 = vmatpush3.bf16.msra.mxu1 %v10279_v62  ;;  %v8595_v26 = vpack.c.bf16 %v12953_v63, %v12952_v11  ;;  %v8601_v30 = vpack.c.bf16 %v12957_v2, %v12956_v56  ;;  %v12963_v21 = vand.u32 4294901760, %v10327_v14  ;;  %v2301_v39 = vand.u32 4294901760, %v2275_v42 }
 0x2b4   :  { %8573 = vmatprep.subr.bf16.mxu1 %v12913_v41  ;;  %v2307_v32 = vand.u32 4294901760, %v2277_v1 }
 0x2b5   :  { %8740 = vmatpush3.bf16.msra.mxu0 %v8739_v17  ;;  %v8604_v17 = vpack.c.bf16 %v12959_v6, %v12958_v49  ;;  %v8610_v60 = vpack.c.bf16 %v12963_v21, %v12962_v20  ;;  %v5822_v20 = vld [vmem:[%s12664_s8] ss:$0 sm:$0xff]  ;;  %s12545_s8 = sld [smem:[#allocation7 + $0xb]] }
 0x2b6   :  { %8741 = vmatprep.subr.bf16.mxu0 %v12913_v41  ;;  %v11010_v11 = vsub.f32 %v2277_v1, %v2307_v32 }
 0x2b7   :  { %8575 = vmatpush3.bf16.msra.mxu1 %v10283_v28 }
 0x2b8   :  { %8576 = vmatprep.subr.bf16.mxu1 %v12913_v41 }
 0x2b9   :  { %8743 = vmatpush3.bf16.msra.mxu0 %v8742_v3  ;;  %v8613_v3 = vpack.c.bf16 %v12965_v4, %v12964_v5 }
 0x2ba   :  { %8744 = vmatprep.subr.bf16.mxu0 %v12913_v41 }
 0x2bb   :  { %8578 = vmatpush3.bf16.msra.mxu1 %v10287_v36  ;;  %13156 = sst [smem:[#allocation60_spill]] %s12545_s8  ;;  %s5645_s8 = scalar_lea.vmem [#allocation2], %s12493_s4 }
 0x2bc   :  { %8579 = vmatprep.subr.bf16.mxu1 %v12913_v41  ;;  %s5690_s4 = scalar_lea.vmem [#allocation2], %s12503_s9  ;;  %s5735_s9 = scalar_lea.vmem [#allocation2], %s12513_s23 }
 0x2bd   :  { %8746 = vmatpush3.bf16.msra.mxu0 %v8745_v61  ;;  %s13163_s23 = sld [smem:[#allocation58_spill]] }
 0x2be   :  { %8747 = vmatprep.subr.bf16.mxu0 %v12913_v41 }
 0x2bf   :  { %8581 = vmatpush3.bf16.msra.mxu1 %v10291_v15 }
 0x2c0   :  { %8582 = vmatprep.subr.bf16.mxu1 %v12913_v41 }
 0x2c1   :  { %8749 = vmatpush3.bf16.msra.mxu0 %v8748_v43 }
 0x2c2   :  { %8750 = vmatprep.subr.bf16.mxu0 %v12913_v41 }
 0x2c3   :  { %8584 = vmatpush3.bf16.msra.mxu1 %v10315_v22 }
 0x2c4   :  { %8585 = vmatprep.subr.bf16.mxu1 %v12913_v41 }
 0x2c5   :  { %8752 = vmatpush3.bf16.msra.mxu0 %v8751_v29  ;;  %v2276_v29 = vld [vmem:[#allocation13 + $0x10] sm:$0xff] }
 0x2c6   :  { %8753 = vmatprep.subr.bf16.mxu0 %v12913_v41 }
 0x2c7   :  { %8587 = vmatpush3.bf16.msra.mxu1 %v10323_v9 }
 0x2c8   :  { %8588 = vmatprep.subr.bf16.mxu1 %v12913_v41 }
 0x2c9   :  { %8755 = vmatpush3.bf16.msra.mxu0 %v8754_v59  ;;  %v2304_v59 = vand.u32 4294901760, %v2276_v29 }
 0x2ca   :  { %8756 = vmatprep.subr.bf16.mxu0 %v12913_v41 }
 0x2cb   :  { %8590 = vmatpush3.bf16.msra.mxu1 %v10332_v51  ;;  %v11013_v63 = vpack.c.bf16 %v2307_v32, %v2304_v59 }
 0x2cc   :  { %8591 = vmatprep.subr.bf16.mxu1 %v12913_v41 }
 0x2cd   :  { %8758 = vmatpush3.bf16.msra.mxu0 %v8757_v48  ;;  %v11006_v48 = vsub.f32 %v2275_v42, %v2301_v39 }
 0x2ce   :  { %7019 = vmatmul.mubr.f32.vlgmr.msra.gmra.mrb[6].mxu1 %v12951_v47  ;;  %8783 = vmatprep.subr.bf16.mxu0 %v12913_v41  ;;  %v11008_v47 = vsub.f32 %v2276_v29, %v2304_v59 }
 0x2cf   :  { %8593 = vmatpush3.bf16.msra.mxu1 %v8592_v10  ;;  %7053 = vmatprep.mubr.msk.f32.mxu1 %vm9808_vm0, %v12917_v37 }
 0x2d0   :  { %8594 = vmatprep.subr.bf16.mxu1 %v12913_v41  ;;  %7264 = vmatmul.mubr.f32.vlgmr.msra.gmra.mrb[6].mxu0 %v10068_v31 }
 0x2d1   :  { %7333 = vmatprep.mubr.msk.f32.mxu0 %vm9808_vm0, %v12917_v37 }
 0x2d3   :  { %8596 = vmatpush3.bf16.msra.mxu1 %v8595_v26 }
 0x2d4   :  { %8597 = vmatprep.subr.bf16.mxu1 %v12913_v41 }
 0x2d7   :  { %8599 = vmatpush3.bf16.msra.mxu1 %v8598_v53 }
 0x2d8   :  { %8600 = vmatprep.subr.bf16.mxu1 %v12913_v41 }
 0x2db   :  { %8602 = vmatpush3.bf16.msra.mxu1 %v8601_v30 }
 0x2dc   :  { %8603 = vmatprep.subr.bf16.mxu1 %v12913_v41 }
 0x2df   :  { %8605 = vmatpush3.bf16.msra.mxu1 %v8604_v17 }
 0x2e0   :  { %8606 = vmatprep.subr.bf16.mxu1 %v12913_v41 }
 0x2e3   :  { %8608 = vmatpush3.bf16.msra.mxu1 %v8607_v45 }
 0x2e4   :  { %8609 = vmatprep.subr.bf16.mxu1 %v12913_v41 }
 0x2e7   :  { %8611 = vmatpush3.bf16.msra.mxu1 %v8610_v60 }
 0x2e8   :  { %8612 = vmatprep.subr.bf16.mxu1 %v12913_v41 }
 0x2eb   :  { %8614 = vmatpush3.bf16.msra.mxu1 %v8613_v3  ;;  %v2278_v3 = vld [vmem:[#allocation13 + $0x20] sm:$0xff] }
 0x2ec   :  { %8615 = vmatprep.subr.bf16.mxu1 %v12913_v41 }
 0x2ee   :  { %7054 = vmatmul.mubr.f32.vlgmr.msra.gmra.mrb[8].mxu1 %v10509_v27 }
 0x2ef   :  { %8617 = vmatpush3.bf16.msra.mxu1 %v10275_v38  ;;  %7088 = vmatprep.mubr.msk.f32.mxu1 %vm9808_vm0, %v12917_v37  ;;  %v12966_v38 = vld [vmem:[#allocation39_spill] sm:$0xff] }
 0x2f0   :  { %8618 = vmatprep.subr.bf16.mxu1 %v12913_v41 }
 0x2f3   :  { %8620 = vmatpush3.bf16.msra.mxu1 %v10279_v62  ;;  %v12968_v62 = vld [vmem:[#allocation41_spill] sm:$0xff] }
 0x2f4   :  { %8621 = vmatprep.subr.bf16.mxu1 %v12913_v41 }
 0x2f7   :  { %8623 = vmatpush3.bf16.msra.mxu1 %v10283_v28  ;;  %v12969_v28 = vld [vmem:[#allocation42_spill] sm:$0xff] }
 0x2f8   :  { %8624 = vmatprep.subr.bf16.mxu1 %v12913_v41 }
 0x2fb   :  { %8626 = vmatpush3.bf16.msra.mxu1 %v10287_v36  ;;  %v12970_v36 = vld [vmem:[#allocation43_spill] sm:$0xff] }
 0x2fc   :  { %8627 = vmatprep.subr.bf16.mxu1 %v12913_v41 }
 0x2ff   :  { %8629 = vmatpush3.bf16.msra.mxu1 %v10291_v15 }
 0x300   :  { %8630 = vmatprep.subr.bf16.mxu1 %v12913_v41 }
 0x303   :  { %8632 = vmatpush3.bf16.msra.mxu1 %v10315_v22 }
 0x304   :  { %8633 = vmatprep.subr.bf16.mxu1 %v12913_v41 }
 0x307   :  { %8635 = vmatpush3.bf16.msra.mxu1 %v10323_v9  ;;  %v12973_v9 = vld [vmem:[#allocation46_spill] sm:$0xff] }
 0x308   :  { %8636 = vmatprep.subr.bf16.mxu1 %v12913_v41 }
 0x30b   :  { %8638 = vmatpush3.bf16.msra.mxu1 %v10332_v51 }
 0x30c   :  { %8663 = vmatprep.subr.bf16.mxu1 %v12913_v41 }
 0x30e   :  { %7089 = vmatmul.mubr.f32.vlgmr.msra.gmra.mrb[10].mxu1 %v10509_v27 }
 0x30f   :  { %8665 = vmatpush3.bf16.msra.mxu1 %v10645_v58  ;;  %7158 = vmatprep.mubr.msk.f32.mxu1 %vm9808_vm0, %v12917_v37 }
 0x310   :  { %8666 = vmatprep.subr.bf16.mxu1 %v12913_v41 }
 0x313   :  { %8668 = vmatpush3.bf16.msra.mxu1 %v10695_v0 }
 0x314   :  { %8669 = vmatprep.subr.bf16.mxu1 %v12913_v41 }
 0x317   :  { %8671 = vmatpush3.bf16.msra.mxu1 %v10699_v40 }
 0x318   :  { %8672 = vmatprep.subr.bf16.mxu1 %v12913_v41 }
 0x31b   :  { %8674 = vmatpush3.bf16.msra.mxu1 %v10745_v13 }
 0x31c   :  { %8675 = vmatprep.subr.bf16.mxu1 %v12913_v41 }
 0x31f   :  { %8677 = vmatpush3.bf16.msra.mxu1 %v10753_v8  ;;  %v12967_v8 = vld [vmem:[#allocation40_spill] sm:$0xff] }
 0x320   :  { %8678 = vmatprep.subr.bf16.mxu1 %v12913_v41 }
 0x323   :  { %8680 = vmatpush3.bf16.msra.mxu1 %v10780_v44 }
 0x324   :  { %8681 = vmatprep.subr.bf16.mxu1 %v12913_v41 }
 0x327   :  { %8683 = vmatpush3.bf16.msra.mxu1 %v10797_v7 }
 0x328   :  { %8684 = vmatprep.subr.bf16.mxu1 %v12913_v41 }
 0x32b   :  { %8686 = vmatpush3.bf16.msra.mxu1 %v10808_v34 }
 0x32c   :  { %8711 = vmatprep.subr.bf16.mxu1 %v12913_v41 }
 0x32e   :  { %7159 = vmatmul.mubr.f32.vlgmr.msra.gmra.mrb[12].mxu1 %v10068_v31 }
 0x32f   :  { %8713 = vmatpush3.bf16.msra.mxu1 %v12966_v38  ;;  %7228 = vmatprep.mubr.msk.f32.mxu1 %vm9808_vm0, %v12917_v37 }
 0x330   :  { %8714 = vmatprep.subr.bf16.mxu1 %v12913_v41 }
 0x333   :  { %8716 = vmatpush3.bf16.msra.mxu1 %v12967_v8 }
 0x334   :  { %8717 = vmatprep.subr.bf16.mxu1 %v12913_v41 }
 0x337   :  { %8719 = vmatpush3.bf16.msra.mxu1 %v12968_v62 }
 0x338   :  { %8720 = vmatprep.subr.bf16.mxu1 %v12913_v41 }
 0x33b   :  { %8722 = vmatpush3.bf16.msra.mxu1 %v12969_v28 }
 0x33c   :  { %8723 = vmatprep.subr.bf16.mxu1 %v12913_v41 }
 0x33f   :  { %8725 = vmatpush3.bf16.msra.mxu1 %v12970_v36 }
 0x340   :  { %8726 = vmatprep.subr.bf16.mxu1 %v12913_v41 }
 0x341   :  { %v1064_v15 = vpop.f32.mrb[0].mxu1 }
 0x342   :  { %v6915_v22 = vpop.f32.mrb[1].mxu1 }
 0x343   :  { %8728 = vmatpush3.bf16.msra.mxu1 %v12971_v24 }
 0x344   :  { %8729 = vmatprep.subr.bf16.mxu1 %v12913_v41 }
 0x347   :  { %8731 = vmatpush3.bf16.msra.mxu1 %v12972_v25 }
 0x348   :  { %8732 = vmatprep.subr.bf16.mxu1 %v12913_v41 }
 0x34b   :  { %8734 = vmatpush3.bf16.msra.mxu1 %v12973_v9 }
 0x34c   :  { %8759 = vmatprep.subr.bf16.mxu1 %v12913_v41 }
 0x34e   :  { %7229 = vmatmul.mubr.f32.vlgmr.msra.gmra.mrb[14].mxu1 %v12974_v33  ;;  %v2283_v33 = vld [vmem:[#allocation13 + $0x48] sm:$0xff] }
 0x34f   :  { %8761 = vmatpush3.bf16.msra.mxu1 %v12966_v38  ;;  %7298 = vmatprep.mubr.msk.f32.mxu1 %vm9808_vm0, %v12917_v37  ;;  %v2279_v38 = vld [vmem:[#allocation13 + $0x28] sm:$0xff] }
 0x350   :  { %8762 = vmatprep.subr.bf16.mxu1 %v12913_v41 }
 0x353   :  { %8764 = vmatpush3.bf16.msra.mxu1 %v12967_v8  ;;  %v2310_v8 = vand.u32 4294901760, %v2278_v3 }
 0x354   :  { %8765 = vmatprep.subr.bf16.mxu1 %v12913_v41 }
 0x357   :  { %8767 = vmatpush3.bf16.msra.mxu1 %v12968_v62  ;;  %v2313_v62 = vand.u32 4294901760, %v2279_v38 }
 0x358   :  { %8768 = vmatprep.subr.bf16.mxu1 %v12913_v41 }
 0x35b   :  { %8770 = vmatpush3.bf16.msra.mxu1 %v12969_v28  ;;  %v11025_v28 = vpack.c.bf16 %v2313_v62, %v2310_v8 }
 0x35c   :  { %8771 = vmatprep.subr.bf16.mxu1 %v12913_v41 }
 0x35f   :  { %8773 = vmatpush3.bf16.msra.mxu1 %v12970_v36  ;;  %v2280_v36 = vld [vmem:[#allocation13 + $0x30] sm:$0xff] }
 0x360   :  { %8774 = vmatprep.subr.bf16.mxu1 %v12913_v41  ;;  %v2316_v22 = vand.u32 4294901760, %v2280_v36 }
 0x361   :  { %v1215_v14 = vpop.f32.mrb[2].mxu1 }
 0x362   :  { %v1216_v51 = vadd.f32 %v1215_v14, %v1064_v15  ;;  %v6950_v52 = vpop.f32.mrb[3].mxu1  ;;  %v2281_v15 = vld [vmem:[#allocation13 + $0x38] sm:$0xff] }
 0x363   :  { %8776 = vmatpush3.bf16.msra.mxu1 %v12971_v24  ;;  %v1705_v54 = vpop.f32.mrb[2].mxu0  ;;  %v2319_v24 = vand.u32 4294901760, %v2281_v15 }
 0x364   :  { %8777 = vmatprep.subr.bf16.mxu1 %v12913_v41  ;;  %v7125_v27 = vpop.f32.mrb[3].mxu0 }
 0x365   :  { %v2285_v27 = vld [vmem:[#allocation13 + $0x58] sm:$0xff] }
 0x367   :  { %8779 = vmatpush3.bf16.msra.mxu1 %v12972_v25  ;;  %v11029_v25 = vpack.c.bf16 %v2319_v24, %v2316_v22 }
 0x368   :  { %8780 = vmatprep.subr.bf16.mxu1 %v12913_v41 }
 0x36b   :  { %8782 = vmatpush3.bf16.msra.mxu1 %v12973_v9  ;;  %v2282_v9 = vld [vmem:[#allocation13 + $0x40] sm:$0xff] }
 0x36c   :  { %8927 = vmatprep.subr.bf16.mxu1 %v12913_v41  ;;  %v2322_v14 = vand.u32 4294901760, %v2282_v9 }
 0x36e   :  { %7299 = vmatmul.mubr.f32.vlgmr.msra.gmra.mrb[16].mxu1 %v10068_v31  ;;  %v2298_v31 = vand.u32 4294901760, %v2274_v35  ;;  %v11051_v42 = vsub.f32 %v2282_v9, %v2322_v14 }
 0x36f   :  { %7543 = vmatprep.mubr.msk.f32.mxu1 %vm9808_vm0, %v12917_v37 }
 0x370   :  { %v11002_v12 = vpack.c.bf16 %v2301_v39, %v2298_v31  ;;  %v11004_v10 = vsub.f32 %v2274_v35, %v2298_v31  ;;  %v2289_v35 = vld [vmem:[#allocation13 + $0x78] sm:$0xff] }
 0x372   :  { %8785 = vmatpush3.bf16.msra.mxu0 %v11002_v12 }
 0x373   :  { %8786 = vmatprep.subr.bf16.mxu0 %v12913_v41 }
 0x376   :  { %8788 = vmatpush3.bf16.msra.mxu0 %v11013_v63 }
 0x377   :  { %8789 = vmatprep.subr.bf16.mxu0 %v12913_v41 }
 0x37a   :  { %8791 = vmatpush3.bf16.msra.mxu0 %v11025_v28 }
 0x37b   :  { %8792 = vmatprep.subr.bf16.mxu0 %v12913_v41 }
 0x37e   :  { %8794 = vmatpush3.bf16.msra.mxu0 %v11029_v25 }
 0x37f   :  { %8795 = vmatprep.subr.bf16.mxu0 %v12913_v41 }
 0x381   :  { %v1319_v58 = vpop.f32.mrb[4].mxu1 }
 0x382   :  { %v1320_v0 = vadd.f32 %v1319_v58, %v1216_v51  ;;  %v6985_v40 = vpop.f32.mrb[5].mxu1  ;;  %v2325_v51 = vand.u32 4294901760, %v2283_v33 }
 0x383   :  { %v1960_v13 = vpop.f32.mrb[4].mxu0 }
 0x384   :  { %v7195_v7 = vpop.f32.mrb[5].mxu0  ;;  %v11033_v52 = vpack.c.bf16 %v2325_v51, %v2322_v14  ;;  %v11053_v29 = vsub.f32 %v2283_v33, %v2325_v51 }
 0x385   :  { %v2287_v7 = vld [vmem:[#allocation13 + $0x68] sm:$0xff] }
 0x386   :  { %8797 = vmatpush3.bf16.msra.mxu0 %v11033_v52 }
 0x387   :  { %8798 = vmatprep.subr.bf16.mxu0 %v12913_v41 }
 0x3a1   :  { %v1408_v44 = vpop.f32.mrb[6].mxu1 }
 0x3a2   :  { %v1409_v34 = vadd.f32 %v1408_v44, %v1320_v0  ;;  %v7020_v18 = vpop.f32.mrb[7].mxu1  ;;  %v2331_v0 = vand.u32 4294901760, %v2285_v27 }
 0x3a3   :  { %v2168_v55 = vpop.f32.mrb[6].mxu0 }
 0x3a4   :  { %v7265_v61 = vpop.f32.mrb[7].mxu0  ;;  %v11057_v39 = vsub.f32 %v2285_v27, %v2331_v0 }
 0x3a5   :  { %v11045_v61 = vsub.f32 %v2279_v38, %v2313_v62 }
 0x3a7   :  { %v2426_v38 = vand.u32 4294901760, %v11045_v61 }
 0x3c1   :  { %v1527_v23 = vpop.f32.mrb[8].mxu1 }
 0x3c2   :  { %v1528_v50 = vadd.f32 %v1527_v23, %v1409_v34  ;;  %v7055_v43 = vpop.f32.mrb[9].mxu1  ;;  %v2337_v34 = vand.u32 4294901760, %v2287_v7  ;;  %v11047_v23 = vsub.f32 %v2280_v36, %v2316_v22  ;;  %v2427_v36 = vsub.f32 %v11045_v61, %v2426_v38 }
 0x3c3   :  { %v2288_v43 = vld [vmem:[#allocation13 + $0x70] sm:$0xff] }
 0x3c4   :  { %v11062_v59 = vsub.f32 %v2287_v7, %v2337_v34  ;;  %v2340_v32 = vand.u32 4294901760, %v2288_v43  ;;  %v2433_v22 = vand.u32 4294901760, %v11047_v23  ;;  %v2428_v9 = vand.u32 4294901760, %v2427_v36 }
 0x3c6   :  { %v2434_v33 = vsub.f32 %v11047_v23, %v2433_v22 }
 0x3e1   :  { %v1614_v26 = vpop.f32.mrb[10].mxu1 }
 0x3e2   :  { %v1615_v46 = vadd.f32 %v1614_v26, %v1528_v50  ;;  %v7090_v16 = vpop.f32.mrb[11].mxu1  ;;  %v11049_v50 = vsub.f32 %v2281_v15, %v2319_v24  ;;  %v2343_v26 = vand.u32 4294901760, %v2289_v35 }
 0x3e3   :  { %v2398_v16 = vand.u32 4294901760, %v11006_v48 }
 0x3e4   :  { %v1706_v53 = vadd.f32 %v1705_v54, %v1615_v46  ;;  %v2284_v54 = vld [vmem:[#allocation13 + $0x50] sm:$0xff]  ;;  %v2391_v46 = vand.u32 4294901760, %v11004_v10  ;;  %v2440_v24 = vand.u32 4294901760, %v11049_v50 }
 0x3e5   :  { %v2328_v58 = vand.u32 4294901760, %v2284_v54 }
 0x3e6   :  { %v2441_v14 = vsub.f32 %v11049_v50, %v2440_v24 }
 0x3e7   :  { %v11037_v40 = vpack.c.bf16 %v2331_v0, %v2328_v58  ;;  %v11055_v31 = vsub.f32 %v2284_v54, %v2328_v58  ;;  %v2435_v54 = vand.u32 4294901760, %v2434_v33  ;;  %v2447_v58 = vand.u32 4294901760, %v11051_v42 }
 0x3e8   :  { %v2442_v27 = vand.u32 4294901760, %v2441_v14  ;;  %v2454_v0 = vand.u32 4294901760, %v11053_v29 }
 0x3e9   :  { %8800 = vmatpush3.bf16.msra.mxu0 %v11037_v40  ;;  %v2448_v7 = vsub.f32 %v11051_v42, %v2447_v58 }
 0x3ea   :  { %8801 = vmatprep.subr.bf16.mxu0 %v12913_v41 }
 0x401   :  { %v1856_v56 = vpop.f32.mrb[12].mxu1 }
 0x402   :  { %v1857_v2 = vadd.f32 %v1856_v56, %v1706_v53  ;;  %v7160_v30 = vpop.f32.mrb[13].mxu1  ;;  %v11067_v53 = vpack.c.bf16 %v2343_v26, %v2340_v32  ;;  %v11069_v56 = vsub.f32 %v2288_v43, %v2340_v32  ;;  %v12760_v32 = vand.u32 4294901760, %v11057_v39 }
 0x403   :  { %v2392_v30 = vsub.f32 %v11004_v10, %v2391_v46 }
 0x404   :  { %v1961_v49 = vadd.f32 %v1960_v13, %v1857_v2  ;;  %v2286_v13 = vld [vmem:[#allocation13 + $0x60] sm:$0xff]  ;;  %v11071_v2 = vsub.f32 %v2289_v35, %v2343_v26  ;;  %v2461_v35 = vand.u32 4294901760, %v11055_v31 }
 0x405   :  { %v2334_v44 = vand.u32 4294901760, %v2286_v13 }
 0x406   :  { %v12756_v33 = vand.u32 4294901760, %v11071_v2 }
 0x407   :  { %v11041_v18 = vpack.c.bf16 %v2337_v34, %v2334_v44  ;;  %v11060_v1 = vsub.f32 %v2286_v13, %v2334_v44  ;;  %v8817_v13 = vpack.c.bf16 %v2442_v27, %v2435_v54  ;;  %v2455_v44 = vsub.f32 %v11053_v29, %v2454_v0 }
 0x408   :  { %v2449_v34 = vand.u32 4294901760, %v2448_v7  ;;  %v2497_v27 = vsub.f32 %v11071_v2, %v12756_v33 }
 0x409   :  { %8803 = vmatpush3.bf16.msra.mxu0 %v11041_v18  ;;  %v2456_v43 = vand.u32 4294901760, %v2455_v44 }
 0x40a   :  { %8804 = vmatprep.subr.bf16.mxu0 %v12913_v41  ;;  %v2498_v44 = vand.u32 4294901760, %v2497_v27 }
 0x40b   :  { %v8820_v26 = vpack.c.bf16 %v2456_v43, %v2449_v34  ;;  %v8832_v43 = vpack.c.bf16 %v11006_v48, %v11004_v10 }
 0x40d   :  { %8806 = vmatpush3.bf16.msra.mxu0 %v11067_v53 }
 0x40e   :  { %8807 = vmatprep.subr.bf16.mxu0 %v12913_v41 }
 0x421   :  { %v2049_v6 = vpop.f32.mrb[14].mxu1 }
 0x422   :  { %v2050_v17 = vadd.f32 %v2049_v6, %v1961_v49  ;;  %v7230_v57 = vpop.f32.mrb[15].mxu1  ;;  %v2399_v49 = vsub.f32 %v11006_v48, %v2398_v16  ;;  %v2405_v6 = vand.u32 4294901760, %v11008_v47  ;;  %v8889_v48 = vpack.c.bf16 %v2440_v24, %v2433_v22  ;;  %v2997_v22 = vld [vmem:[#allocation15 + $0x48] sm:$0xff] }
 0x423   :  { %v2393_v57 = vand.u32 4294901760, %v2392_v30  ;;  %v2462_v30 = vsub.f32 %v11055_v31, %v2461_v35 }
 0x424   :  { %v2169_v19 = vadd.f32 %v2168_v55, %v2050_v17  ;;  %v11043_v55 = vsub.f32 %v2278_v3, %v2310_v8  ;;  %v2412_v17 = vand.u32 4294901760, %v11010_v11 }
 0x426   :  { %v2419_v3 = vand.u32 4294901760, %v11043_v55 }
 0x428   :  { %v2420_v62 = vsub.f32 %v11043_v55, %v2419_v3  ;;  %v8886_v10 = vpack.c.bf16 %v2426_v38, %v2419_v3 }
 0x42a   :  { %v2421_v15 = vand.u32 4294901760, %v2420_v62 }
 0x42c   :  { %v8814_v51 = vpack.c.bf16 %v2428_v9, %v2421_v15  ;;  %v12757_v9 = vand.u32 4294901760, %v11069_v56 }
 0x42e   :  { %v2490_v54 = vsub.f32 %v11069_v56, %v12757_v9 }
 0x430   :  { %v2491_v7 = vand.u32 4294901760, %v2490_v54 }
 0x432   :  { %v8829_v34 = vpack.c.bf16 %v2498_v44, %v2491_v7 }
 0x441   :  { %v2255_v45 = vpop.f32.mrb[16].mxu1 }
 0x442   :  { %v2256_v21 = vadd.f32 %v2255_v45, %v2169_v19  ;;  %v7300_v60 = vpop.f32.mrb[17].mxu1  ;;  %v2400_v19 = vand.u32 4294901760, %v2399_v49  ;;  %v2406_v45 = vsub.f32 %v11008_v47, %v2405_v6  ;;  %v2469_v49 = vsub.f32 %v11057_v39, %v12760_v32 }
 0x444   :  { %v11021_v5 = vadd.f32 %v5822_v20, %v2256_v21  ;;  %v2413_v20 = vsub.f32 %v11010_v11, %v2412_v17  ;;  %v11089_v21 = vpack.c.bf16 %v2400_v19, %v2393_v57  ;;  %v2407_v60 = vand.u32 4294901760, %v2406_v45 }
 0x445   :  { %v2463_v57 = vand.u32 4294901760, %v2462_v30  ;;  %v2470_v19 = vand.u32 4294901760, %v2469_v49  ;;  %v12759_v45 = vand.u32 4294901760, %v11060_v1  ;;  %v8835_v30 = vpack.c.bf16 %v11010_v11, %v11008_v47 }
 0x446   :  { %v2267_v4 = vmul.f32 %v11021_v5, %v11021_v5  ;;  %v8838_v49 = vpack.c.bf16 %v11045_v61, %v11043_v55  ;;  %v8892_v47 = vpack.c.bf16 %v2454_v0, %v2447_v58  ;;  %v12977_v11 = vand.u32 4294901760, %v11057_v39  ;;  %v2998_v0 = vld [vmem:[#allocation15 + $0x50] sm:$0xff] }
 0x447   :  { %v12978_v61 = vand.u32 4294901760, %v11060_v1  ;;  %v3689_v58 = vand.u32 4294901760, %v2997_v22 }
 0x448   :  { %2268 = vadd.xlane.f32.xlu1 %v2267_v4  ;;  %v2414_v4 = vand.u32 4294901760, %v2413_v20  ;;  %v12758_v20 = vand.u32 4294901760, %v11062_v59  ;;  %v8895_v55 = vpack.c.bf16 %v12977_v11, %v2461_v35 }
 0x44a   :  { %v11093_v8 = vpack.c.bf16 %v2414_v4, %v2407_v60  ;;  %v8823_v60 = vpack.c.bf16 %v2470_v19, %v2463_v57  ;;  %v2476_v4 = vsub.f32 %v11060_v1, %v12759_v45  ;;  %v2483_v62 = vsub.f32 %v11062_v59, %v12758_v20 }
 0x44b   :  { %v8841_v57 = vpack.c.bf16 %v11049_v50, %v11047_v23  ;;  %v8844_v19 = vpack.c.bf16 %v11053_v29, %v11051_v42  ;;  %v12979_v23 = vand.u32 4294901760, %v11062_v59  ;;  %v12980_v42 = vand.u32 4294901760, %v11069_v56 }
 0x44c   :  { %v2477_v36 = vand.u32 4294901760, %v2476_v4  ;;  %v2484_v15 = vand.u32 4294901760, %v2483_v62  ;;  %v8847_v4 = vpack.c.bf16 %v11057_v39, %v11055_v31  ;;  %v8850_v62 = vpack.c.bf16 %v11062_v59, %v11060_v1  ;;  %v2990_v39 = vld [vmem:[#allocation15 + $0x10] sm:$0xff] }
 0x44d   :  { %v8898_v50 = vpack.c.bf16 %v12979_v23, %v12978_v61  ;;  %v12981_v29 = vand.u32 4294901760, %v11071_v2 }
 0x44e   :  { %v8826_v14 = vpack.c.bf16 %v2484_v15, %v2477_v36  ;;  %v8853_v36 = vpack.c.bf16 %v11071_v2, %v11069_v56 }
 0x4d5   :  { %v2269_v15 = vpop.xlane.xlu1 %2268 }
 0x4d6   :  { %v2270_v54 = vmax.f32 %v2269_v15, 1e-24 }
 0x4d8   :  { %9577 = vrsqrt.f32 %v2270_v54 }
 0x4e2   :  { %v9578_v27 = vpop.eup %9577 }
 0x4e3   :  { %v2272_v7 = vmul.f32 %v9578_v27, %v11021_v5  ;;  %v8880_v5 = vpack.c.bf16 %v2398_v16, %v2391_v46  ;;  %v8901_v46 = vpack.c.bf16 %v12981_v29, %v12980_v42  ;;  %v2993_v16 = vld [vmem:[#allocation15 + $0x28] sm:$0xff] }
 0x4e4   :  { %v3677_v2 = vand.u32 4294901760, %v2993_v16 }
 0x4e5   :  { %v2273_v44 = vmax.f32 %v2272_v7, 0.0 }
 0x4e7   :  { %v11158_v33 = vand.u32 4294901760, %v2273_v44 }
 0x4e9   :  { %12975 = vst [vmem:[#allocation39_spill] sm:$0xff] %v11158_v33  ;;  %v11161_v9 = vsub.f32 %v2273_v44, %v11158_v33 }
 0x4eb   :  { %v11164_v20 = vand.u32 4294901760, %v11161_v9 }
 0x4ed   :  { %12976 = vst [vmem:[#allocation40_spill] sm:$0xff] %v11164_v20  ;;  %v2381_v45 = vsub.f32 %v11161_v9, %v11164_v20 }
 0x4ef   :  { %v11168_v32 = vand.u32 4294901760, %v2381_v45 }
 0x4f1   :  { %7334 = vmatmul.mubr.f32.vlgmr.msra.gmra.mrb[8].mxu0 %v11168_v32 }
 0x4f2   :  { %8809 = vmatpush3.bf16.msra.mxu0 %v11089_v21  ;;  %7368 = vmatprep.mubr.msk.f32.mxu0 %vm9808_vm0, %v12917_v37  ;;  %v8883_v21 = vpack.c.bf16 %v2412_v17, %v2405_v6  ;;  %v2995_v6 = vld [vmem:[#allocation15 + $0x38] sm:$0xff] }
 0x4f3   :  { %8810 = vmatprep.subr.bf16.mxu0 %v12913_v41  ;;  %v3683_v38 = vand.u32 4294901760, %v2995_v6 }
 0x4f6   :  { %8812 = vmatpush3.bf16.msra.mxu0 %v11093_v8  ;;  %v2996_v8 = vld [vmem:[#allocation15 + $0x40] sm:$0xff] }
 0x4f7   :  { %8813 = vmatprep.subr.bf16.mxu0 %v12913_v41 }
 0x4fa   :  { %8815 = vmatpush3.bf16.msra.mxu0 %v8814_v51  ;;  %v3686_v51 = vand.u32 4294901760, %v2996_v8 }
 0x4fb   :  { %8816 = vmatprep.subr.bf16.mxu0 %v12913_v41 }
 0x4fc   :  { %v11293_v35 = vpack.c.bf16 %v3689_v58, %v3686_v51  ;;  %v11337_v11 = vsub.f32 %v2996_v8, %v3686_v51 }
 0x4fe   :  { %8818 = vmatpush3.bf16.msra.mxu0 %v8817_v13  ;;  %v2999_v13 = vld [vmem:[#allocation15 + $0x58] sm:$0xff]  ;;  %12986 = vst [vmem:[#allocation45_spill] sm:$0xff] %v11293_v35  ;;  %v12766_v8 = vand.u32 4294901760, %v11337_v11 }
 0x4ff   :  { %8819 = vmatprep.subr.bf16.mxu0 %v12913_v41  ;;  %v3695_v45 = vand.u32 4294901760, %v2999_v13 }
 0x502   :  { %8821 = vmatpush3.bf16.msra.mxu0 %v8820_v26  ;;  %v3692_v26 = vand.u32 4294901760, %v2998_v0 }
 0x503   :  { %8822 = vmatprep.subr.bf16.mxu0 %v12913_v41 }
 0x504   :  { %v11344_v23 = vsub.f32 %v2998_v0, %v3692_v26 }
 0x506   :  { %8824 = vmatpush3.bf16.msra.mxu0 %v8823_v60  ;;  %v3000_v60 = vld [vmem:[#allocation15 + $0x60] sm:$0xff]  ;;  %12991 = vst [vmem:[#allocation49_spill] sm:$0xff] %v11344_v23 }
 0x507   :  { %8825 = vmatprep.subr.bf16.mxu0 %v12913_v41 }
 0x50a   :  { %8827 = vmatpush3.bf16.msra.mxu0 %v8826_v14  ;;  %v3001_v14 = vld [vmem:[#allocation15 + $0x68] sm:$0xff] }
 0x50b   :  { %8828 = vmatprep.subr.bf16.mxu0 %v12913_v41 }
 0x50e   :  { %8830 = vmatpush3.bf16.msra.mxu0 %v8829_v34  ;;  %v11297_v34 = vpack.c.bf16 %v3695_v45, %v3692_v26 }
 0x50f   :  { %8831 = vmatprep.subr.bf16.mxu0 %v12913_v41 }
 0x510   :  { %12987 = vst [vmem:[#allocation46_spill] sm:$0xff] %v11297_v34 }
 0x511   :  { %7369 = vmatmul.mubr.f32.vlgmr.msra.gmra.mrb[8].mxu0 %v11158_v33 }
 0x512   :  { %8833 = vmatpush3.bf16.msra.mxu0 %v8832_v43  ;;  %7403 = vmatprep.mubr.msk.f32.mxu0 %vm9808_vm0, %v12917_v37  ;;  %v3698_v43 = vand.u32 4294901760, %v3000_v60 }
 0x513   :  { %8834 = vmatprep.subr.bf16.mxu0 %v12913_v41 }
 0x514   :  { %v11351_v29 = vsub.f32 %v3000_v60, %v3698_v43  ;;  %v3004_v60 = vld [vmem:[#allocation16] sm:$0xff] }
 0x516   :  { %8836 = vmatpush3.bf16.msra.mxu0 %v8835_v30  ;;  %v3701_v30 = vand.u32 4294901760, %v3001_v14  ;;  %12993 = vst [vmem:[#allocation51_spill] sm:$0xff] %v11351_v29  ;;  %v12762_v26 = vand.u32 4294901760, %v11351_v29 }
 0x517   :  { %8837 = vmatprep.subr.bf16.mxu0 %v12913_v41 }
 0x51a   :  { %8839 = vmatpush3.bf16.msra.mxu0 %v8838_v49  ;;  %v3002_v49 = vld [vmem:[#allocation15 + $0x70] sm:$0xff] }
 0x51b   :  { %8840 = vmatprep.subr.bf16.mxu0 %v12913_v41 }
 0x51e   :  { %8842 = vmatpush3.bf16.msra.mxu0 %v8841_v57  ;;  %v3003_v57 = vld [vmem:[#allocation15 + $0x78] sm:$0xff] }
 0x51f   :  { %8843 = vmatprep.subr.bf16.mxu0 %v12913_v41 }
 0x522   :  { %8845 = vmatpush3.bf16.msra.mxu0 %v8844_v19  ;;  %v11301_v19 = vpack.c.bf16 %v3701_v30, %v3698_v43  ;;  %v3021_v43 = vand.u32 4294901760, %v3004_v60 }
 0x523   :  { %8846 = vmatprep.subr.bf16.mxu0 %v12913_v41 }
 0x524   :  { %12988 = vst [vmem:[#allocation28_spill] sm:$0xff] %v11301_v19 }
 0x526   :  { %8848 = vmatpush3.bf16.msra.mxu0 %v8847_v4  ;;  %v3704_v4 = vand.u32 4294901760, %v3002_v49 }
 0x527   :  { %8849 = vmatprep.subr.bf16.mxu0 %v12913_v41 }
 0x52a   :  { %8851 = vmatpush3.bf16.msra.mxu0 %v8850_v62  ;;  %v3707_v62 = vand.u32 4294901760, %v3003_v57 }
 0x52b   :  { %8852 = vmatprep.subr.bf16.mxu0 %v12913_v41 }
 0x52c   :  { %v11309_v54 = vpack.c.bf16 %v3707_v62, %v3704_v4 }
 0x52e   :  { %8854 = vmatpush3.bf16.msra.mxu0 %v8853_v36  ;;  %12989 = vst [vmem:[#allocation47_spill] sm:$0xff] %v11309_v54 }
 0x52f   :  { %8855 = vmatprep.subr.bf16.mxu0 %v12913_v41 }
 0x531   :  { %7404 = vmatmul.mubr.f32.vlgmr.msra.gmra.mrb[8].mxu0 %v11161_v9 }
 0x532   :  { %8857 = vmatpush3.bf16.msra.mxu0 %v11002_v12  ;;  %7438 = vmatprep.mubr.msk.f32.mxu0 %vm9808_vm0, %v12917_v37 }
 0x533   :  { %8858 = vmatprep.subr.bf16.mxu0 %v12913_v41 }
 0x536   :  { %8860 = vmatpush3.bf16.msra.mxu0 %v11013_v63 }
 0x537   :  { %8861 = vmatprep.subr.bf16.mxu0 %v12913_v41 }
 0x53a   :  { %8863 = vmatpush3.bf16.msra.mxu0 %v11025_v28 }
 0x53b   :  { %8864 = vmatprep.subr.bf16.mxu0 %v12913_v41 }
 0x53e   :  { %8866 = vmatpush3.bf16.msra.mxu0 %v11029_v25 }
 0x53f   :  { %8867 = vmatprep.subr.bf16.mxu0 %v12913_v41 }
 0x542   :  { %8869 = vmatpush3.bf16.msra.mxu0 %v11033_v52 }
 0x543   :  { %8870 = vmatprep.subr.bf16.mxu0 %v12913_v41 }
 0x546   :  { %8872 = vmatpush3.bf16.msra.mxu0 %v11037_v40 }
 0x547   :  { %8873 = vmatprep.subr.bf16.mxu0 %v12913_v41 }
 0x54a   :  { %8875 = vmatpush3.bf16.msra.mxu0 %v11041_v18 }
 0x54b   :  { %8876 = vmatprep.subr.bf16.mxu0 %v12913_v41 }
 0x54e   :  { %8878 = vmatpush3.bf16.msra.mxu0 %v11067_v53 }
 0x54f   :  { %8879 = vmatprep.subr.bf16.mxu0 %v12913_v41 }
 0x551   :  { %7439 = vmatmul.mubr.f32.vlgmr.msra.gmra.mrb[8].mxu0 %v11164_v20 }
 0x552   :  { %8881 = vmatpush3.bf16.msra.mxu0 %v8880_v5  ;;  %7473 = vmatprep.mubr.msk.f32.mxu0 %vm9808_vm0, %v12917_v37 }
 0x553   :  { %8882 = vmatprep.subr.bf16.mxu0 %v12913_v41 }
 0x556   :  { %8884 = vmatpush3.bf16.msra.mxu0 %v8883_v21  ;;  %v11323_v21 = vsub.f32 %v2993_v16, %v3677_v2 }
 0x557   :  { %8885 = vmatprep.subr.bf16.mxu0 %v12913_v41 }
 0x55a   :  { %8887 = vmatpush3.bf16.msra.mxu0 %v8886_v10 }
 0x55b   :  { %8888 = vmatprep.subr.bf16.mxu0 %v12913_v41 }
 0x55e   :  { %8890 = vmatpush3.bf16.msra.mxu0 %v8889_v48 }
 0x55f   :  { %8891 = vmatprep.subr.bf16.mxu0 %v12913_v41 }
 0x562   :  { %8893 = vmatpush3.bf16.msra.mxu0 %v8892_v47  ;;  %v11332_v47 = vsub.f32 %v2995_v6, %v3683_v38 }
 0x563   :  { %8894 = vmatprep.subr.bf16.mxu0 %v12913_v41 }
 0x566   :  { %8896 = vmatpush3.bf16.msra.mxu0 %v8895_v55  ;;  %v11339_v55 = vsub.f32 %v2997_v22, %v3689_v58  ;;  %v12764_v58 = vand.u32 4294901760, %v11344_v23 }
 0x567   :  { %8897 = vmatprep.subr.bf16.mxu0 %v12913_v41 }
 0x568   :  { %12990 = vst [vmem:[#allocation48_spill] sm:$0xff] %v11339_v55  ;;  %v9132_v42 = vpack.c.bf16 %v11339_v55, %v11337_v11  ;;  %v12765_v22 = vand.u32 4294901760, %v11339_v55 }
 0x56a   :  { %8899 = vmatpush3.bf16.msra.mxu0 %v8898_v50  ;;  %v11346_v50 = vsub.f32 %v2999_v13, %v3695_v45  ;;  %v9180_v51 = vpack.c.bf16 %v12765_v22, %v12766_v8 }
 0x56b   :  { %8900 = vmatprep.subr.bf16.mxu0 %v12913_v41 }
 0x56c   :  { %12992 = vst [vmem:[#allocation50_spill] sm:$0xff] %v11346_v50  ;;  %v12763_v0 = vand.u32 4294901760, %v11346_v50 }
 0x56e   :  { %8902 = vmatpush3.bf16.msra.mxu0 %v8901_v46  ;;  %v11353_v46 = vsub.f32 %v3001_v14, %v3701_v30  ;;  %v9183_v13 = vpack.c.bf16 %v12763_v0, %v12764_v58  ;;  %v3005_v14 = vld [vmem:[#allocation16 + $0x8] sm:$0xff]  ;;  %v3016_v58 = vld [vmem:[#allocation16 + $0x60] sm:$0xff] }
 0x56f   :  { %8903 = vmatprep.subr.bf16.mxu0 %v12913_v41  ;;  %v3024_v30 = vand.u32 4294901760, %v3005_v14 }
 0x570   :  { %12994 = vst [vmem:[#allocation52_spill] sm:$0xff] %v11353_v46  ;;  %v12761_v45 = vand.u32 4294901760, %v11353_v46 }
 0x571   :  { %7474 = vmatmul.mubr.f32.vlgmr.msra.gmra.mrb[8].mxu0 %v11158_v33 }
 0x572   :  { %8905 = vmatpush3.bf16.msra.mxu0 %v11002_v12  ;;  %7508 = vmatprep.mubr.msk.f32.mxu0 %vm9808_vm0, %v12917_v37  ;;  %v2988_v12 = vld [vmem:[#allocation15] sm:$0xff] }
 0x573   :  { %8906 = vmatprep.subr.bf16.mxu0 %v12913_v41  ;;  %v3662_v31 = vand.u32 4294901760, %v2988_v12 }
 0x575   :  { %v11304_v36 = vsub.f32 %v2988_v12, %v3662_v31  ;;  %v9135_v12 = vpack.c.bf16 %v11346_v50, %v11344_v23 }
 0x576   :  { %8908 = vmatpush3.bf16.msra.mxu0 %v11013_v63  ;;  %v2989_v63 = vld [vmem:[#allocation15 + $0x8] sm:$0xff] }
 0x577   :  { %8909 = vmatprep.subr.bf16.mxu0 %v12913_v41 }
 0x57a   :  { %8911 = vmatpush3.bf16.msra.mxu0 %v11025_v28  ;;  %v3665_v28 = vand.u32 4294901760, %v2989_v63 }
 0x57b   :  { %8912 = vmatprep.subr.bf16.mxu0 %v12913_v41 }
 0x57c   :  { %v11274_v1 = vpack.c.bf16 %v3665_v28, %v3662_v31  ;;  %v11306_v15 = vsub.f32 %v2989_v63, %v3665_v28  ;;  %v11358_v63 = vsub.f32 %v3002_v49, %v3704_v4  ;;  %v11360_v31 = vsub.f32 %v3003_v57, %v3707_v62 }
 0x57d   :  { %v9138_v28 = vpack.c.bf16 %v11353_v46, %v11351_v29  ;;  %v11415_v49 = vpack.c.bf16 %v3024_v30, %v3021_v43  ;;  %v9186_v57 = vpack.c.bf16 %v12761_v45, %v12762_v26  ;;  %v3013_v45 = vld [vmem:[#allocation16 + $0x48] sm:$0xff] }
 0x57e   :  { %8914 = vmatpush3.bf16.msra.mxu0 %v11029_v25  ;;  %v2991_v25 = vld [vmem:[#allocation15 + $0x18] sm:$0xff]  ;;  %12982 = vst [vmem:[#allocation41_spill] sm:$0xff] %v11274_v1  ;;  %v9120_v44 = vpack.c.bf16 %v11306_v15, %v11304_v36  ;;  %12995 = vst [vmem:[#allocation53_spill] sm:$0xff] %v11358_v63  ;;  %v12771_v4 = vand.u32 4294901760, %v11358_v63  ;;  %v12770_v62 = vand.u32 4294901760, %v11360_v31 }
 0x57f   :  { %8915 = vmatprep.subr.bf16.mxu0 %v12913_v41  ;;  %v3671_v59 = vand.u32 4294901760, %v2991_v25  ;;  %12996 = vst [vmem:[#allocation54_spill] sm:$0xff] %v11360_v31  ;;  %8929 = vmatpush3.bf16.msra.mxu1 %v11415_v49 }
 0x580   :  { %8930 = vmatprep.subr.bf16.mxu1 %v12913_v41  ;;  %v9189_v22 = vpack.c.bf16 %v12770_v62, %v12771_v4  ;;  %v3019_v4 = vld [vmem:[#allocation16 + $0x78] sm:$0xff] }
 0x581   :  { %v11314_v7 = vsub.f32 %v2991_v25, %v3671_v59  ;;  %v12776_v25 = vand.u32 4294901760, %v11304_v36  ;;  %v3066_v20 = vand.u32 4294901760, %v3019_v4 }
 0x582   :  { %8917 = vmatpush3.bf16.msra.mxu0 %v11033_v52  ;;  %v3668_v52 = vand.u32 4294901760, %v2990_v39 }
 0x583   :  { %8918 = vmatprep.subr.bf16.mxu0 %v12913_v41  ;;  %v12773_v16 = vand.u32 4294901760, %v11314_v7 }
 0x584   :  { %v11312_v27 = vsub.f32 %v2990_v39, %v3668_v52  ;;  %v9141_v39 = vpack.c.bf16 %v11360_v31, %v11358_v63 }
 0x586   :  { %8920 = vmatpush3.bf16.msra.mxu0 %v11037_v40  ;;  %v2992_v40 = vld [vmem:[#allocation15 + $0x20] sm:$0xff]  ;;  %v9123_v10 = vpack.c.bf16 %v11314_v7, %v11312_v27 }
 0x587   :  { %8921 = vmatprep.subr.bf16.mxu0 %v12913_v41  ;;  %v3674_v56 = vand.u32 4294901760, %v2992_v40 }
 0x589   :  { %v11285_v17 = vpack.c.bf16 %v3677_v2, %v3674_v56  ;;  %v11321_v5 = vsub.f32 %v2992_v40, %v3674_v56  ;;  %v12774_v40 = vand.u32 4294901760, %v11312_v27 }
 0x58a   :  { %8923 = vmatpush3.bf16.msra.mxu0 %v11041_v18  ;;  %v11279_v18 = vpack.c.bf16 %v3671_v59, %v3668_v52  ;;  %v12775_v52 = vand.u32 4294901760, %v11306_v15 }
 0x58b   :  { %8924 = vmatprep.subr.bf16.mxu0 %v12913_v41  ;;  %12984 = vst [vmem:[#allocation43_spill] sm:$0xff] %v11285_v17  ;;  %v9171_v56 = vpack.c.bf16 %v12773_v16, %v12774_v40  ;;  %v12772_v2 = vand.u32 4294901760, %v11321_v5 }
 0x58c   :  { %12983 = vst [vmem:[#allocation42_spill] sm:$0xff] %v11279_v18  ;;  %v9168_v59 = vpack.c.bf16 %v12775_v52, %v12776_v25 }
 0x58e   :  { %8926 = vmatpush3.bf16.msra.mxu0 %v11067_v53  ;;  %v2994_v53 = vld [vmem:[#allocation15 + $0x30] sm:$0xff] }
 0x58f   :  { %9071 = vmatprep.subr.bf16.mxu0 %v12913_v41  ;;  %v3680_v3 = vand.u32 4294901760, %v2994_v53 }
 0x591   :  { %7509 = vmatmul.mubr.f32.vlgmr.msra.gmra.mrb[8].mxu0 %v11158_v33  ;;  %v11289_v24 = vpack.c.bf16 %v3683_v38, %v3680_v3  ;;  %v11330_v48 = vsub.f32 %v2994_v53, %v3680_v3  ;;  %v12769_v53 = vand.u32 4294901760, %v11323_v21  ;;  %v12767_v3 = vand.u32 4294901760, %v11332_v47 }
 0x592   :  { %9073 = vmatpush3.bf16.msra.mxu0 %v11274_v1  ;;  %7753 = vmatprep.mubr.msk.f32.mxu0 %vm9808_vm0, %v12917_v37 }
 0x593   :  { %9074 = vmatprep.subr.bf16.mxu0 %v12913_v41  ;;  %12985 = vst [vmem:[#allocation44_spill] sm:$0xff] %v11289_v24  ;;  %v9129_v61 = vpack.c.bf16 %v11332_v47, %v11330_v48  ;;  %v12768_v6 = vand.u32 4294901760, %v11330_v48 }
 0x595   :  { %v9177_v38 = vpack.c.bf16 %v12767_v3, %v12768_v6 }
 0x596   :  { %9076 = vmatpush3.bf16.msra.mxu0 %v11279_v18 }
 0x597   :  { %9077 = vmatprep.subr.bf16.mxu0 %v12913_v41 }
 0x59a   :  { %9079 = vmatpush3.bf16.msra.mxu0 %v11285_v17 }
 0x59b   :  { %9080 = vmatprep.subr.bf16.mxu0 %v12913_v41 }
 0x59e   :  { %9082 = vmatpush3.bf16.msra.mxu0 %v11289_v24 }
 0x59f   :  { %9083 = vmatprep.subr.bf16.mxu0 %v12913_v41 }
 0x5a2   :  { %9085 = vmatpush3.bf16.msra.mxu0 %v11293_v35 }
 0x5a3   :  { %9086 = vmatprep.subr.bf16.mxu0 %v12913_v41 }
 0x5a6   :  { %9088 = vmatpush3.bf16.msra.mxu0 %v11297_v34 }
 0x5a7   :  { %9089 = vmatprep.subr.bf16.mxu0 %v12913_v41 }
 0x5aa   :  { %9091 = vmatpush3.bf16.msra.mxu0 %v11301_v19 }
 0x5ab   :  { %9092 = vmatprep.subr.bf16.mxu0 %v12913_v41 }
 0x5ae   :  { %9094 = vmatpush3.bf16.msra.mxu0 %v11309_v54 }
 0x5af   :  { %9119 = vmatprep.subr.bf16.mxu0 %v12913_v41 }
 0x5b1   :  { %7754 = vmatmul.mubr.f32.vlgmr.msra.gmra.mrb[10].mxu0 %v11168_v32  ;;  %v9126_v32 = vpack.c.bf16 %v11323_v21, %v11321_v5 }
 0x5b2   :  { %9121 = vmatpush3.bf16.msra.mxu0 %v9120_v44  ;;  %7823 = vmatprep.mubr.msk.f32.mxu0 %vm9808_vm0, %v12917_v37  ;;  %v3006_v44 = vld [vmem:[#allocation16 + $0x10] sm:$0xff] }
 0x5b3   :  { %9122 = vmatprep.subr.bf16.mxu0 %v12913_v41 }
 0x5b6   :  { %9124 = vmatpush3.bf16.msra.mxu0 %v9123_v10  ;;  %v3007_v10 = vld [vmem:[#allocation16 + $0x18] sm:$0xff] }
 0x5b7   :  { %9125 = vmatprep.subr.bf16.mxu0 %v12913_v41 }
 0x5ba   :  { %9127 = vmatpush3.bf16.msra.mxu0 %v9126_v32  ;;  %v11425_v32 = vsub.f32 %v3004_v60, %v3021_v43  ;;  %v3014_v43 = vld [vmem:[#allocation16 + $0x50] sm:$0xff] }
 0x5bb   :  { %9128 = vmatprep.subr.bf16.mxu0 %v12913_v41 }
 0x5be   :  { %9130 = vmatpush3.bf16.msra.mxu0 %v9129_v61  ;;  %v11427_v61 = vsub.f32 %v3005_v14, %v3024_v30  ;;  %v3015_v30 = vld [vmem:[#allocation16 + $0x58] sm:$0xff] }
 0x5bf   :  { %9131 = vmatprep.subr.bf16.mxu0 %v12913_v41  ;;  %v3054_v62 = vand.u32 4294901760, %v3015_v30 }
 0x5c2   :  { %9133 = vmatpush3.bf16.msra.mxu0 %v9132_v42  ;;  %v3027_v42 = vand.u32 4294901760, %v3006_v44 }
 0x5c3   :  { %9134 = vmatprep.subr.bf16.mxu0 %v12913_v41 }
 0x5c4   :  { %v11432_v0 = vsub.f32 %v3006_v44, %v3027_v42  ;;  %v3017_v44 = vld [vmem:[#allocation16 + $0x68] sm:$0xff] }
 0x5c5   :  { %v3060_v16 = vand.u32 4294901760, %v3017_v44 }
 0x5c6   :  { %9136 = vmatpush3.bf16.msra.mxu0 %v9135_v12  ;;  %v3030_v12 = vand.u32 4294901760, %v3007_v10  ;;  %v13025_v1 = vand.u32 4294901760, %v11432_v0 }
 0x5c7   :  { %9137 = vmatprep.subr.bf16.mxu0 %v12913_v41  ;;  %v11466_v25 = vsub.f32 %v3017_v44, %v3060_v16 }
 0x5c8   :  { %v11430_v26 = vpack.c.bf16 %v3030_v12, %v3027_v42  ;;  %v11434_v60 = vsub.f32 %v3007_v10, %v3030_v12  ;;  %v3018_v42 = vld [vmem:[#allocation16 + $0x70] sm:$0xff] }
 0x5c9   :  { %v3063_v40 = vand.u32 4294901760, %v3018_v42 }
 0x5ca   :  { %9139 = vmatpush3.bf16.msra.mxu0 %v9138_v28  ;;  %v3008_v28 = vld [vmem:[#allocation16 + $0x20] sm:$0xff]  ;;  %8932 = vmatpush3.bf16.msra.mxu1 %v11430_v26 }
 0x5cb   :  { %9140 = vmatprep.subr.bf16.mxu0 %v12913_v41  ;;  %8933 = vmatprep.subr.bf16.mxu1 %v12913_v41 }
 0x5ce   :  { %9142 = vmatpush3.bf16.msra.mxu0 %v9141_v39  ;;  %v3009_v39 = vld [vmem:[#allocation16 + $0x28] sm:$0xff] }
 0x5cf   :  { %9167 = vmatprep.subr.bf16.mxu0 %v12913_v41 }
 0x5d1   :  { %7824 = vmatmul.mubr.f32.vlgmr.msra.gmra.mrb[12].mxu0 %v11161_v9  ;;  %v9174_v9 = vpack.c.bf16 %v12769_v53, %v12772_v2  ;;  %v3048_v53 = vand.u32 4294901760, %v3013_v45 }
 0x5d2   :  { %9169 = vmatpush3.bf16.msra.mxu0 %v9168_v59  ;;  %7893 = vmatprep.mubr.msk.f32.mxu0 %vm9808_vm0, %v12917_v37  ;;  %v3010_v59 = vld [vmem:[#allocation16 + $0x30] sm:$0xff] }
 0x5d3   :  { %9170 = vmatprep.subr.bf16.mxu0 %v12913_v41  ;;  %v11455_v2 = vsub.f32 %v3013_v45, %v3048_v53 }
 0x5d6   :  { %9172 = vmatpush3.bf16.msra.mxu0 %v9171_v56  ;;  %v3033_v56 = vand.u32 4294901760, %v3008_v28 }
 0x5d7   :  { %9173 = vmatprep.subr.bf16.mxu0 %v12913_v41 }
 0x5d8   :  { %v11440_v8 = vsub.f32 %v3008_v28, %v3033_v56  ;;  %v3051_v28 = vand.u32 4294901760, %v3014_v43 }
 0x5da   :  { %9175 = vmatpush3.bf16.msra.mxu0 %v9174_v9  ;;  %v3036_v9 = vand.u32 4294901760, %v3009_v39  ;;  %v11482_v45 = vpack.c.bf16 %v3054_v62, %v3051_v28 }
 0x5db   :  { %9176 = vmatprep.subr.bf16.mxu0 %v12913_v41 }
 0x5dc   :  { %v11442_v3 = vsub.f32 %v3009_v39, %v3036_v9  ;;  %v11448_v10 = vpack.c.bf16 %v3036_v9, %v3033_v56  ;;  %v3057_v39 = vand.u32 4294901760, %v3016_v58  ;;  %v11459_v56 = vsub.f32 %v3014_v43, %v3051_v28 }
 0x5dd   :  { %v11461_v9 = vsub.f32 %v3015_v30, %v3054_v62  ;;  %v12779_v43 = vand.u32 4294901760, %v11432_v0  ;;  %v12781_v30 = vand.u32 4294901760, %v11434_v60 }
 0x5de   :  { %9178 = vmatpush3.bf16.msra.mxu0 %v9177_v38  ;;  %v3011_v38 = vld [vmem:[#allocation16 + $0x38] sm:$0xff]  ;;  %8935 = vmatpush3.bf16.msra.mxu1 %v11448_v10 }
 0x5df   :  { %9179 = vmatprep.subr.bf16.mxu0 %v12913_v41  ;;  %v3042_v14 = vand.u32 4294901760, %v3011_v38  ;;  %8936 = vmatprep.subr.bf16.mxu1 %v12913_v41 }
 0x5e2   :  { %9181 = vmatpush3.bf16.msra.mxu0 %v9180_v51  ;;  %v3039_v51 = vand.u32 4294901760, %v3010_v59 }
 0x5e3   :  { %9182 = vmatprep.subr.bf16.mxu0 %v12913_v41 }
 0x5e4   :  { %v11444_v6 = vsub.f32 %v3010_v59, %v3039_v51  ;;  %v11457_v52 = vpack.c.bf16 %v3042_v14, %v3039_v51  ;;  %v11486_v51 = vpack.c.bf16 %v3060_v16, %v3057_v39 }
 0x5e6   :  { %9184 = vmatpush3.bf16.msra.mxu0 %v9183_v13  ;;  %v3012_v13 = vld [vmem:[#allocation16 + $0x40] sm:$0xff]  ;;  %8938 = vmatpush3.bf16.msra.mxu1 %v11457_v52 }
 0x5e7   :  { %9185 = vmatprep.subr.bf16.mxu0 %v12913_v41  ;;  %v3045_v12 = vand.u32 4294901760, %v3012_v13  ;;  %8939 = vmatprep.subr.bf16.mxu1 %v12913_v41 }
 0x5e9   :  { %v11453_v59 = vsub.f32 %v3012_v13, %v3045_v12  ;;  %v11468_v13 = vsub.f32 %v3018_v42, %v3063_v40  ;;  %v3129_v42 = vsub.f32 %v11432_v0, %v12779_v43 }
 0x5ea   :  { %9187 = vmatpush3.bf16.msra.mxu0 %v9186_v57  ;;  %v11450_v57 = vsub.f32 %v3011_v38, %v3042_v14  ;;  %v11464_v38 = vsub.f32 %v3016_v58, %v3057_v39  ;;  %v11478_v58 = vpack.c.bf16 %v3048_v53, %v3045_v12  ;;  %v12780_v53 = vand.u32 4294901760, %v11425_v32 }
 0x5eb   :  { %9188 = vmatprep.subr.bf16.mxu0 %v12913_v41  ;;  %v12778_v14 = vand.u32 4294901760, %v11427_v61  ;;  %v3136_v12 = vsub.f32 %v11434_v60, %v12781_v30  ;;  %v3130_v28 = vand.u32 4294901760, %v3129_v42  ;;  %v12786_v30 = vand.u32 4294901760, %v11444_v6 }
 0x5ec   :  { %8941 = vmatpush3.bf16.msra.mxu1 %v11478_v58  ;;  %v3115_v62 = vsub.f32 %v11425_v32, %v12780_v53  ;;  %v12789_v42 = vand.u32 4294901760, %v11450_v57 }
 0x5ed   :  { %8942 = vmatprep.subr.bf16.mxu1 %v12913_v41  ;;  %v3122_v16 = vsub.f32 %v11427_v61, %v12778_v14  ;;  %v3137_v39 = vand.u32 4294901760, %v3136_v12  ;;  %v12782_v14 = vand.u32 4294901760, %v11440_v8 }
 0x5ee   :  { %9190 = vmatpush3.bf16.msra.mxu0 %v9189_v22  ;;  %v11473_v22 = vsub.f32 %v3019_v4, %v3066_v20  ;;  %v11490_v4 = vpack.c.bf16 %v3066_v20, %v3063_v40  ;;  %v3116_v20 = vand.u32 4294901760, %v3115_v62  ;;  %v12785_v62 = vand.u32 4294901760, %v11442_v3 }
 0x5ef   :  { %9215 = vmatprep.subr.bf16.mxu0 %v12913_v41  ;;  %v3123_v40 = vand.u32 4294901760, %v3122_v16  ;;  %v11515_v16 = vpack.c.bf16 %v3137_v39, %v3130_v28  ;;  %v3157_v28 = vsub.f32 %v11444_v6, %v12786_v30  ;;  %v3164_v39 = vsub.f32 %v11450_v57, %v12789_v42 }
 0x5f0   :  { %8944 = vmatpush3.bf16.msra.mxu1 %v11482_v45  ;;  %v12794_v42 = vand.u32 4294901760, %v11459_v56 }
 0x5f1   :  { %7894 = vmatmul.mubr.f32.vlgmr.msra.gmra.mrb[14].mxu0 %v11158_v33  ;;  %8945 = vmatprep.subr.bf16.mxu1 %v12913_v41  ;;  %v11505_v44 = vpack.c.bf16 %v3123_v40, %v3116_v20  ;;  %v3143_v20 = vsub.f32 %v11440_v8, %v12782_v14  ;;  %v3150_v40 = vsub.f32 %v11442_v3, %v12785_v62  ;;  %v3158_v14 = vand.u32 4294901760, %v3157_v28 }
 0x5f2   :  { %7963 = vmatprep.mubr.msk.f32.mxu0 %vm9808_vm0, %v12917_v37  ;;  %v3165_v54 = vand.u32 4294901760, %v3164_v39  ;;  %v12790_v62 = vand.u32 4294901760, %v11453_v59  ;;  %v12797_v28 = vand.u32 4294901760, %v11461_v9 }
 0x5f3   :  { %v3144_v43 = vand.u32 4294901760, %v3143_v20  ;;  %v3151_v53 = vand.u32 4294901760, %v3150_v40  ;;  %v12793_v20 = vand.u32 4294901760, %v11455_v2 }
 0x5f4   :  { %8947 = vmatpush3.bf16.msra.mxu1 %v11486_v51  ;;  %v11535_v40 = vpack.c.bf16 %v3165_v54, %v3158_v14  ;;  %v3185_v54 = vsub.f32 %v11459_v56, %v12794_v42  ;;  %v3192_v14 = vsub.f32 %v11461_v9, %v12797_v28  ;;  %v12803_v28 = vand.u32 4294901760, %v11468_v13 }
 0x5f5   :  { %8948 = vmatprep.subr.bf16.mxu1 %v12913_v41  ;;  %v11525_v12 = vpack.c.bf16 %v3151_v53, %v3144_v43  ;;  %v3171_v53 = vsub.f32 %v11453_v59, %v12790_v62  ;;  %v3178_v43 = vsub.f32 %v11455_v2, %v12793_v20  ;;  %v12798_v20 = vand.u32 4294901760, %v11464_v38 }
 0x5f6   :  { %v3186_v62 = vand.u32 4294901760, %v3185_v54  ;;  %v3193_v34 = vand.u32 4294901760, %v3192_v14  ;;  %v12804_v54 = vand.u32 4294901760, %v11473_v22 }
 0x5f7   :  { %v3172_v30 = vand.u32 4294901760, %v3171_v53  ;;  %v3179_v19 = vand.u32 4294901760, %v3178_v43  ;;  %v12805_v53 = vand.u32 4294901760, %v11466_v25 }
 0x5f8   :  { %8950 = vmatpush3.bf16.msra.mxu1 %v11490_v4  ;;  %v11555_v43 = vpack.c.bf16 %v3193_v34, %v3186_v62  ;;  %v3213_v34 = vsub.f32 %v11468_v13, %v12803_v28  ;;  %v3220_v62 = vsub.f32 %v11473_v22, %v12804_v54 }
 0x5f9   :  { %8951 = vmatprep.subr.bf16.mxu1 %v12913_v41  ;;  %v11545_v39 = vpack.c.bf16 %v3179_v19, %v3172_v30  ;;  %v3199_v19 = vsub.f32 %v11464_v38, %v12798_v20  ;;  %v3206_v30 = vsub.f32 %v11466_v25, %v12805_v53 }
 0x5fa   :  { %v3214_v20 = vand.u32 4294901760, %v3213_v34  ;;  %v3221_v24 = vand.u32 4294901760, %v3220_v62  ;;  %v5823_v62 = vld [vmem:[%s12666_s10] ss:$0 sm:$0xff]  ;;  %s12549_s10 = sld [smem:[#allocation7 + $0xd]] }
 0x5fb   :  { %v3200_v42 = vand.u32 4294901760, %v3199_v19  ;;  %v3207_v35 = vand.u32 4294901760, %v3206_v30  ;;  %v12997_v30 = vld [vmem:[#allocation32_spill] sm:$0xff] }
 0x5fc   :  { %v8973_v17 = vpack.c.bf16 %v3221_v24, %v3214_v20  ;;  %v12998_v19 = vsub.s32 0, %v12997_v30  ;;  %v12999_v18 = vsub.s32 1, %v12997_v30  ;;  %v13001_v33 = vsub.s32 2, %v12997_v30 }
 0x5fd   :  { %v11565_v14 = vpack.c.bf16 %v3207_v35, %v3200_v42  ;;  %v13005_v29 = vsub.s32 4, %v12997_v30 }
 0x600   :  { %13158 = sst [smem:[#allocation62_spill]] %s12549_s10  ;;  %s5672_s10 = scalar_lea.vmem [#allocation2], %s12499_s27 }
 0x601   :  { %s5638_s27 = scalar_lea.vmem [#allocation3], %s12523_s12  ;;  %s5674_s12 = scalar_lea.vmem [#allocation3], %s12531_s21 }
 0x602   :  { %s13168_s21 = sld [smem:[#allocation55_spill]] }
 0x664   :  { %v2934_v54 = vpop.f32.mrb[8].mxu0 }
 0x665   :  { %v9504_v53 = vadd.f32 %v5823_v62, %v2934_v54  ;;  %v7510_v35 = vpop.f32.mrb[9].mxu0  ;;  %v13003_v54 = vsub.s32 3, %v12997_v30 }
 0x667   :  { %v2938_v42 = vmax.f32 %v9504_v53, 0.0 }
 0x669   :  { %v2942_v28 = vrot.slane %v2938_v42, %v12998_v19  ;;  %v2948_v34 = vrot.slane %v2938_v42, %v12999_v18  ;;  %v2954_v20 = vrot.slane %v2938_v42, %v13001_v33  ;;  %v2960_v35 = vrot.slane %v2938_v42, %v13003_v54 }
 0x66a   :  { %v2966_v18 = vrot.slane %v2938_v42, %v13005_v29  ;;  %v13007_v33 = vsub.s32 5, %v12997_v30  ;;  %v13009_v54 = vsub.s32 6, %v12997_v30  ;;  %v13011_v29 = vsub.s32 7, %v12997_v30 }
 0x66b   :  { %v2943_v24 = vsel %vm865_vm2, %v2942_v28, -1e+30  ;;  %v2949_v46 = vsel %vm875_vm3, %v2948_v34, -1e+30  ;;  %v2955_v19 = vsel %vm885_vm4, %v2954_v20, -1e+30 }
 0x66c   :  { %v2944_v31 = vmax.f32 %v2943_v24, -1e+30  ;;  %v2961_v28 = vsel %vm895_vm5, %v2960_v35, -1e+30  ;;  %v2972_v24 = vrot.slane %v2938_v42, %v13007_v33  ;;  %v2967_v34 = vsel %vm905_vm6, %v2966_v18, -1e+30 }
 0x66d   :  { %v13031_v18 = vand.u32 4294901760, %v11453_v59 }
 0x66e   :  { %v2950_v53 = vmax.f32 %v2944_v31, %v2949_v46  ;;  %v2978_v46 = vrot.slane %v2938_v42, %v13009_v54  ;;  %v2973_v20 = vsel %vm915_vm7, %v2972_v24, -1e+30 }
 0x670   :  { %v2956_v50 = vmax.f32 %v2950_v53, %v2955_v19  ;;  %v2984_v53 = vrot.slane %v2938_v42, %v13011_v29  ;;  %v2979_v35 = vsel %vm925_vm8, %v2978_v46, -1e+30  ;;  %v13023_v29 = vand.u32 4294901760, %v11425_v32 }
 0x672   :  { %v2962_v23 = vmax.f32 %v2956_v50, %v2961_v28  ;;  %v2985_v50 = vsel %vm935_vm9, %v2984_v53, -1e+30  ;;  %v13024_v53 = vand.u32 4294901760, %v11427_v61 }
 0x674   :  { %v2968_v31 = vmax.f32 %v2962_v23, %v2967_v34 }
 0x676   :  { %v2974_v19 = vmax.f32 %v2968_v31, %v2973_v20  ;;  %v13022_v31 = vpack.c.bf16 %v11473_v22, %v11468_v13 }
 0x678   :  { %v2980_v55 = vmax.f32 %v2974_v19, %v2979_v35  ;;  %v9024_v19 = vpack.c.bf16 %v13024_v53, %v13023_v29  ;;  %v13026_v35 = vand.u32 4294901760, %v11434_v60  ;;  %v13052_v53 = vld [vmem:[#allocation50_spill] sm:$0xff] }
 0x67a   :  { %v2986_v28 = vmax.f32 %v2980_v55, %v2985_v50  ;;  %v9027_v33 = vpack.c.bf16 %v13026_v35, %v13025_v1 }
 0x67c   :  { %v2987_v63 = vsel %vm193_vm10, %v2986_v28, 0.0  ;;  %v13029_v28 = vand.u32 4294901760, %v11444_v6 }
 0x67d   :  { %v11626_v54 = vand.u32 4294901760, %v2987_v63 }
 0x67f   :  { %v11629_v23 = vsub.f32 %v2987_v63, %v11626_v54  ;;  %v13032_v63 = vand.u32 4294901760, %v11455_v2 }
 0x681   :  { %v3103_v30 = vand.u32 4294901760, %v11629_v23 }
 0x683   :  { %v3104_v42 = vsub.f32 %v11629_v23, %v3103_v30 }
 0x684   :  { %v11635_v24 = vpop.f32.mrb[10].mxu0 }
 0x685   :  { %v7755_v34 = vpop.f32.mrb[11].mxu0  ;;  %v3105_v46 = vand.u32 4294901760, %v3104_v42 }
 0x687   :  { %7544 = vmatmul.mubr.f32.vlgmr.msra.gmra.mrb[18].mxu1 %v3105_v46 }
 0x688   :  { %8953 = vmatpush3.bf16.msra.mxu1 %v11505_v44  ;;  %7578 = vmatprep.mubr.msk.f32.mxu1 %vm9808_vm0, %v12917_v37 }
 0x689   :  { %8954 = vmatprep.subr.bf16.mxu1 %v12913_v41 }
 0x68c   :  { %8956 = vmatpush3.bf16.msra.mxu1 %v11515_v16  ;;  %v13015_v16 = vpack.c.bf16 %v11427_v61, %v11425_v32  ;;  %v13027_v32 = vand.u32 4294901760, %v11440_v8  ;;  %v13028_v61 = vand.u32 4294901760, %v11442_v3 }
 0x68d   :  { %8957 = vmatprep.subr.bf16.mxu1 %v12913_v41 }
 0x68e   :  { %v9030_v50 = vpack.c.bf16 %v13028_v61, %v13027_v32 }
 0x690   :  { %8959 = vmatpush3.bf16.msra.mxu1 %v11525_v12  ;;  %v13016_v12 = vpack.c.bf16 %v11434_v60, %v11432_v0  ;;  %v13030_v0 = vand.u32 4294901760, %v11450_v57 }
 0x691   :  { %8960 = vmatprep.subr.bf16.mxu1 %v12913_v41 }
 0x692   :  { %v9033_v60 = vpack.c.bf16 %v13030_v0, %v13029_v28  ;;  %v13054_v28 = vld [vmem:[#allocation51_spill] sm:$0xff] }
 0x693   :  { %v13055_v0 = vand.u32 4294901760, %v13054_v28 }
 0x694   :  { %8962 = vmatpush3.bf16.msra.mxu1 %v11535_v40  ;;  %v13018_v40 = vpack.c.bf16 %v11450_v57, %v11444_v6  ;;  %v13035_v6 = vand.u32 4294901760, %v11464_v38  ;;  %v13036_v57 = vand.u32 4294901760, %v11466_v25 }
 0x695   :  { %8963 = vmatprep.subr.bf16.mxu1 %v12913_v41 }
 0x696   :  { %v9042_v42 = vpack.c.bf16 %v13036_v57, %v13035_v6  ;;  %v13058_v6 = vld [vmem:[#allocation53_spill] sm:$0xff] }
 0x697   :  { %v13059_v57 = vand.u32 4294901760, %v13058_v6 }
 0x698   :  { %8965 = vmatpush3.bf16.msra.mxu1 %v11545_v39  ;;  %v13019_v39 = vpack.c.bf16 %v11455_v2, %v11453_v59  ;;  %v13037_v2 = vand.u32 4294901760, %v11468_v13  ;;  %v13038_v59 = vand.u32 4294901760, %v11473_v22  ;;  %v13042_v13 = vand.u32 4294901760, %v11314_v7 }
 0x699   :  { %8966 = vmatprep.subr.bf16.mxu1 %v12913_v41 }
 0x69a   :  { %v9045_v34 = vpack.c.bf16 %v13038_v59, %v13037_v2  ;;  %v3777_v22 = vsub.f32 %v11314_v7, %v13042_v13  ;;  %v13060_v2 = vld [vmem:[#allocation54_spill] sm:$0xff]  ;;  %v13066_v13 = vld [vmem:[#allocation44_spill] sm:$0xff] }
 0x69b   :  { %v13061_v59 = vand.u32 4294901760, %v13060_v2 }
 0x69c   :  { %8968 = vmatpush3.bf16.msra.mxu1 %v11555_v43  ;;  %v13020_v43 = vpack.c.bf16 %v11461_v9, %v11459_v56 }
 0x69d   :  { %8969 = vmatprep.subr.bf16.mxu1 %v12913_v41 }
 0x6a0   :  { %8971 = vmatpush3.bf16.msra.mxu1 %v11565_v14  ;;  %v13021_v14 = vpack.c.bf16 %v11466_v25, %v11464_v38  ;;  %v13039_v25 = vand.u32 4294901760, %v11304_v36 }
 0x6a1   :  { %8972 = vmatprep.subr.bf16.mxu1 %v12913_v41 }
 0x6a4   :  { %8974 = vmatpush3.bf16.msra.mxu1 %v8973_v17  ;;  %v11653_v55 = vpop.f32.mrb[12].mxu0  ;;  %v13017_v17 = vpack.c.bf16 %v11442_v3, %v11440_v8  ;;  %v13033_v3 = vand.u32 4294901760, %v11459_v56  ;;  %v13034_v8 = vand.u32 4294901760, %v11461_v9  ;;  %v13041_v9 = vand.u32 4294901760, %v11312_v27 }
 0x6a5   :  { %v7825_v44 = vpop.f32.mrb[13].mxu0  ;;  %8975 = vmatprep.subr.bf16.mxu1 %v12913_v41 }
 0x6a6   :  { %v3770_v38 = vsub.f32 %v11312_v27, %v13041_v9  ;;  %v3778_v44 = vand.u32 4294901760, %v3777_v22  ;;  %v13064_v9 = vld [vmem:[#allocation42_spill] sm:$0xff]  ;;  %v13067_v22 = vld [vmem:[#allocation45_spill] sm:$0xff] }
 0x6a7   :  { %7579 = vmatmul.mubr.f32.vlgmr.msra.gmra.mrb[20].mxu1 %v11626_v54 }
 0x6a8   :  { %8977 = vmatpush3.bf16.msra.mxu1 %v13015_v16  ;;  %7613 = vmatprep.mubr.msk.f32.mxu1 %vm9808_vm0, %v12917_v37  ;;  %v3771_v46 = vand.u32 4294901760, %v3770_v38  ;;  %v13065_v38 = vld [vmem:[#allocation43_spill] sm:$0xff] }
 0x6a9   :  { %8978 = vmatprep.subr.bf16.mxu1 %v12913_v41 }
 0x6aa   :  { %v9099_v16 = vpack.c.bf16 %v3778_v44, %v3771_v46  ;;  %v13071_v46 = vld [vmem:[#allocation40_spill] sm:$0xff] }
 0x6ac   :  { %8980 = vmatpush3.bf16.msra.mxu1 %v13016_v12  ;;  %v13045_v12 = vand.u32 4294901760, %v11330_v48 }
 0x6ad   :  { %8981 = vmatprep.subr.bf16.mxu1 %v12913_v41 }
 0x6b0   :  { %8983 = vmatpush3.bf16.msra.mxu1 %v13017_v17  ;;  %v13046_v17 = vand.u32 4294901760, %v11332_v47 }
 0x6b1   :  { %8984 = vmatprep.subr.bf16.mxu1 %v12913_v41 }
 0x6b4   :  { %8986 = vmatpush3.bf16.msra.mxu1 %v13018_v40 }
 0x6b5   :  { %8987 = vmatprep.subr.bf16.mxu1 %v12913_v41 }
 0x6b8   :  { %8989 = vmatpush3.bf16.msra.mxu1 %v13019_v39  ;;  %v13047_v39 = vand.u32 4294901760, %v11337_v11 }
 0x6b9   :  { %8990 = vmatprep.subr.bf16.mxu1 %v12913_v41 }
 0x6bc   :  { %8992 = vmatpush3.bf16.msra.mxu1 %v13020_v43  ;;  %v3812_v43 = vsub.f32 %v11337_v11, %v13047_v39 }
 0x6bd   :  { %8993 = vmatprep.subr.bf16.mxu1 %v12913_v41 }
 0x6c0   :  { %8995 = vmatpush3.bf16.msra.mxu1 %v13021_v14  ;;  %v13048_v14 = vld [vmem:[#allocation48_spill] sm:$0xff] }
 0x6c1   :  { %8996 = vmatprep.subr.bf16.mxu1 %v12913_v41 }
 0x6c4   :  { %8998 = vmatpush3.bf16.msra.mxu1 %v13022_v31  ;;  %v11690_v62 = vpop.f32.mrb[14].mxu0  ;;  %v13049_v31 = vand.u32 4294901760, %v13048_v14 }
 0x6c5   :  { %v7895_v20 = vpop.f32.mrb[15].mxu0  ;;  %8999 = vmatprep.subr.bf16.mxu1 %v12913_v41 }
 0x6c7   :  { %7614 = vmatmul.mubr.f32.vlgmr.msra.gmra.mrb[22].mxu1 %v11629_v23  ;;  %v9036_v23 = vpack.c.bf16 %v13032_v63, %v13031_v18  ;;  %v13056_v18 = vld [vmem:[#allocation52_spill] sm:$0xff] }
 0x6c8   :  { %9001 = vmatpush3.bf16.msra.mxu1 %v11415_v49  ;;  %7648 = vmatprep.mubr.msk.f32.mxu1 %vm9808_vm0, %v12917_v37  ;;  %v13057_v63 = vand.u32 4294901760, %v13056_v18 }
 0x6c9   :  { %9002 = vmatprep.subr.bf16.mxu1 %v12913_v41 }
 0x6cc   :  { %9004 = vmatpush3.bf16.msra.mxu1 %v11430_v26 }
 0x6cd   :  { %9005 = vmatprep.subr.bf16.mxu1 %v12913_v41 }
 0x6d0   :  { %9007 = vmatpush3.bf16.msra.mxu1 %v11448_v10 }
 0x6d1   :  { %9008 = vmatprep.subr.bf16.mxu1 %v12913_v41 }
 0x6d4   :  { %9010 = vmatpush3.bf16.msra.mxu1 %v11457_v52 }
 0x6d5   :  { %9011 = vmatprep.subr.bf16.mxu1 %v12913_v41 }
 0x6d8   :  { %9013 = vmatpush3.bf16.msra.mxu1 %v11478_v58 }
 0x6d9   :  { %9014 = vmatprep.subr.bf16.mxu1 %v12913_v41 }
 0x6dc   :  { %9016 = vmatpush3.bf16.msra.mxu1 %v11482_v45 }
 0x6dd   :  { %9017 = vmatprep.subr.bf16.mxu1 %v12913_v41 }
 0x6e0   :  { %9019 = vmatpush3.bf16.msra.mxu1 %v11486_v51 }
 0x6e1   :  { %9020 = vmatprep.subr.bf16.mxu1 %v12913_v41 }
 0x6e4   :  { %9022 = vmatpush3.bf16.msra.mxu1 %v11490_v4 }
 0x6e5   :  { %9023 = vmatprep.subr.bf16.mxu1 %v12913_v41 }
 0x6e7   :  { %7649 = vmatmul.mubr.f32.vlgmr.msra.gmra.mrb[24].mxu1 %v3103_v30  ;;  %v9039_v30 = vpack.c.bf16 %v13034_v8, %v13033_v3 }
 0x6e8   :  { %9025 = vmatpush3.bf16.msra.mxu1 %v9024_v19  ;;  %7683 = vmatprep.mubr.msk.f32.mxu1 %vm9808_vm0, %v12917_v37  ;;  %v13053_v19 = vand.u32 4294901760, %v13052_v53 }
 0x6e9   :  { %9026 = vmatprep.subr.bf16.mxu1 %v12913_v41 }
 0x6ea   :  { %v3833_v1 = vsub.f32 %v13052_v53, %v13053_v19  ;;  %v4319_v53 = vld [vmem:[#allocation18 + $0x10] sm:$0xff]  ;;  %v4320_v19 = vld [vmem:[#allocation18 + $0x18] sm:$0xff] }
 0x6ec   :  { %9028 = vmatpush3.bf16.msra.mxu1 %v9027_v33  ;;  %v3813_v33 = vand.u32 4294901760, %v3812_v43  ;;  %v3834_v61 = vand.u32 4294901760, %v3833_v1  ;;  %v4317_v43 = vld [vmem:[#allocation18] sm:$0xff] }
 0x6ed   :  { %9029 = vmatprep.subr.bf16.mxu1 %v12913_v41 }
 0x6f0   :  { %9031 = vmatpush3.bf16.msra.mxu1 %v9030_v50 }
 0x6f1   :  { %9032 = vmatprep.subr.bf16.mxu1 %v12913_v41 }
 0x6f4   :  { %9034 = vmatpush3.bf16.msra.mxu1 %v9033_v60  ;;  %v3840_v60 = vsub.f32 %v13054_v28, %v13055_v0 }
 0x6f5   :  { %9035 = vmatprep.subr.bf16.mxu1 %v12913_v41 }
 0x6f6   :  { %v3841_v8 = vand.u32 4294901760, %v3840_v60 }
 0x6f8   :  { %9037 = vmatpush3.bf16.msra.mxu1 %v9036_v23  ;;  %v3847_v23 = vsub.f32 %v13056_v18, %v13057_v63 }
 0x6f9   :  { %9038 = vmatprep.subr.bf16.mxu1 %v12913_v41 }
 0x6fc   :  { %9040 = vmatpush3.bf16.msra.mxu1 %v9039_v30  ;;  %v3848_v30 = vand.u32 4294901760, %v3847_v23 }
 0x6fd   :  { %9041 = vmatprep.subr.bf16.mxu1 %v12913_v41 }
 0x700   :  { %9043 = vmatpush3.bf16.msra.mxu1 %v9042_v42  ;;  %v3854_v42 = vsub.f32 %v13058_v6, %v13059_v57 }
 0x701   :  { %9044 = vmatprep.subr.bf16.mxu1 %v12913_v41 }
 0x704   :  { %9046 = vmatpush3.bf16.msra.mxu1 %v9045_v34  ;;  %v3861_v34 = vsub.f32 %v13060_v2, %v13061_v59 }
 0x705   :  { %9047 = vmatprep.subr.bf16.mxu1 %v12913_v41 }
 0x707   :  { %7684 = vmatmul.mubr.f32.vlgmr.msra.gmra.mrb[26].mxu1 %v11626_v54 }
 0x708   :  { %9049 = vmatpush3.bf16.msra.mxu1 %v11415_v49  ;;  %7718 = vmatprep.mubr.msk.f32.mxu1 %vm9808_vm0, %v12917_v37  ;;  %v13040_v49 = vand.u32 4294901760, %v11306_v15 }
 0x709   :  { %9050 = vmatprep.subr.bf16.mxu1 %v12913_v41 }
 0x70c   :  { %9052 = vmatpush3.bf16.msra.mxu1 %v11430_v26  ;;  %v3756_v26 = vsub.f32 %v11304_v36, %v13039_v25  ;;  %v13043_v36 = vand.u32 4294901760, %v11321_v5  ;;  %v9114_v25 = vpack.c.bf16 %v3848_v30, %v3841_v8 }
 0x70d   :  { %9053 = vmatprep.subr.bf16.mxu1 %v12913_v41 }
 0x710   :  { %9055 = vmatpush3.bf16.msra.mxu1 %v11448_v10  ;;  %v3763_v10 = vsub.f32 %v11306_v15, %v13040_v49  ;;  %v3784_v15 = vsub.f32 %v11321_v5, %v13043_v36  ;;  %v3798_v5 = vsub.f32 %v11330_v48, %v13045_v12  ;;  %v3819_v48 = vsub.f32 %v13048_v14, %v13049_v31  ;;  %v4318_v14 = vld [vmem:[#allocation18 + $0x8] sm:$0xff]  ;;  %v4975_v31 = vld [vmem:[#allocation19] sm:$0xff] }
 0x711   :  { %9056 = vmatprep.subr.bf16.mxu1 %v12913_v41  ;;  %v3862_v49 = vand.u32 4294901760, %v3861_v34 }
 0x712   :  { %v3764_v56 = vand.u32 4294901760, %v3763_v10  ;;  %v3785_v27 = vand.u32 4294901760, %v3784_v15  ;;  %v3820_v32 = vand.u32 4294901760, %v3819_v48  ;;  %v4334_v48 = vand.u32 4294901760, %v4317_v43 }
 0x714   :  { %9058 = vmatpush3.bf16.msra.mxu1 %v11457_v52  ;;  %v3757_v52 = vand.u32 4294901760, %v3756_v26  ;;  %v9108_v50 = vpack.c.bf16 %v3820_v32, %v3813_v33  ;;  %v3855_v26 = vand.u32 4294901760, %v3854_v42  ;;  %v4343_v33 = vand.u32 4294901760, %v4320_v19  ;;  %v4977_v32 = vld [vmem:[#allocation19 + $0x10] sm:$0xff] }
 0x715   :  { %9059 = vmatprep.subr.bf16.mxu1 %v12913_v41  ;;  %v4998_v8 = vand.u32 4294901760, %v4977_v32 }
 0x716   :  { %v9117_v10 = vpack.c.bf16 %v3862_v49, %v3855_v26 }
 0x717   :  { %v11899_v57 = vsub.f32 %v4977_v32, %v4998_v8 }
 0x718   :  { %9061 = vmatpush3.bf16.msra.mxu1 %v11478_v58  ;;  %v13044_v58 = vand.u32 4294901760, %v11323_v21 }
 0x719   :  { %9062 = vmatprep.subr.bf16.mxu1 %v12913_v41 }
 0x71c   :  { %9064 = vmatpush3.bf16.msra.mxu1 %v11482_v45  ;;  %v3791_v45 = vsub.f32 %v11323_v21, %v13044_v58  ;;  %v3805_v21 = vsub.f32 %v11332_v47, %v13046_v17  ;;  %v13050_v47 = vld [vmem:[#allocation49_spill] sm:$0xff]  ;;  %v13068_v58 = vld [vmem:[#allocation46_spill] sm:$0xff] }
 0x71d   :  { %9065 = vmatprep.subr.bf16.mxu1 %v12913_v41  ;;  %v13051_v20 = vand.u32 4294901760, %v13050_v47 }
 0x71e   :  { %v3792_v7 = vand.u32 4294901760, %v3791_v45  ;;  %v3806_v40 = vand.u32 4294901760, %v3805_v21  ;;  %v13069_v45 = vld [vmem:[#allocation28_spill] sm:$0xff] }
 0x71f   :  { %v3826_v29 = vsub.f32 %v13050_v47, %v13051_v20  ;;  %v4337_v47 = vand.u32 4294901760, %v4318_v14  ;;  %v4976_v20 = vld [vmem:[#allocation19 + $0x8] sm:$0xff] }
 0x720   :  { %9067 = vmatpush3.bf16.msra.mxu1 %v11486_v51  ;;  %v9096_v51 = vpack.c.bf16 %v3764_v56, %v3757_v52  ;;  %v13062_v52 = vld [vmem:[#allocation39_spill] sm:$0xff]  ;;  %v13063_v56 = vld [vmem:[#allocation41_spill] sm:$0xff]  ;;  %v4995_v1 = vand.u32 4294901760, %v4976_v20 }
 0x721   :  { %9068 = vmatprep.subr.bf16.mxu1 %v12913_v41  ;;  %v3827_v11 = vand.u32 4294901760, %v3826_v29  ;;  %v4992_v29 = vand.u32 4294901760, %v4975_v31  ;;  %v11879_v28 = vsub.f32 %v4318_v14, %v4337_v47 }
 0x722   :  { %v11885_v18 = vsub.f32 %v4976_v20, %v4995_v1  ;;  %v4326_v20 = vld [vmem:[#allocation18 + $0x48] sm:$0xff] }
 0x723   :  { %v9111_v3 = vpack.c.bf16 %v3834_v61, %v3827_v11  ;;  %v4978_v11 = vld [vmem:[#allocation19 + $0x18] sm:$0xff]  ;;  %v11875_v61 = vpack.c.bf16 %v4337_v47, %v4334_v48  ;;  %v11881_v0 = vsub.f32 %v4975_v31, %v4992_v29  ;;  %v11883_v60 = vpack.c.bf16 %v4995_v1, %v4992_v29  ;;  %v4325_v47 = vld [vmem:[#allocation18 + $0x40] sm:$0xff]  ;;  %v4984_v1 = vld [vmem:[#allocation19 + $0x48] sm:$0xff] }
 0x724   :  { %9070 = vmatpush3.bf16.msra.mxu1 %v11490_v4  ;;  %v9102_v4 = vpack.c.bf16 %v3792_v7, %v3785_v27  ;;  %v5001_v30 = vand.u32 4294901760, %v4978_v11  ;;  %v4983_v29 = vld [vmem:[#allocation19 + $0x40] sm:$0xff] }
 0x725   :  { %9095 = vmatprep.subr.bf16.mxu1 %v12913_v41  ;;  %13072 = vst [vmem:[#allocation32_spill] sm:$0xff] %v11875_v61  ;;  %13073 = vst [vmem:[#allocation33_spill] sm:$0xff] %v11883_v60  ;;  %9217 = vmatpush3.bf16.msra.mxu0 %v11875_v61 }
 0x726   :  { %9218 = vmatprep.subr.bf16.mxu0 %v12913_v41  ;;  %v11897_v6 = vpack.c.bf16 %v5001_v30, %v4998_v8  ;;  %v11901_v42 = vsub.f32 %v4978_v11, %v5001_v30  ;;  %v4327_v8 = vld [vmem:[#allocation18 + $0x50] sm:$0xff]  ;;  %v4328_v30 = vld [vmem:[#allocation18 + $0x58] sm:$0xff] }
 0x727   :  { %7719 = vmatmul.mubr.f32.vlgmr.msra.gmra.mrb[28].mxu1 %v11626_v54  ;;  %v3799_v54 = vand.u32 4294901760, %v3798_v5 }
 0x728   :  { %9097 = vmatpush3.bf16.msra.mxu1 %v9096_v51  ;;  %7788 = vmatprep.mubr.msk.f32.mxu1 %vm9808_vm0, %v12917_v37  ;;  %v13070_v51 = vld [vmem:[#allocation47_spill] sm:$0xff]  ;;  %13075 = vst [vmem:[#allocation29_spill] sm:$0xff] %v11897_v6 }
 0x729   :  { %9098 = vmatprep.subr.bf16.mxu1 %v12913_v41  ;;  %v9105_v35 = vpack.c.bf16 %v3806_v40, %v3799_v54 }
 0x72c   :  { %9100 = vmatpush3.bf16.msra.mxu1 %v9099_v16 }
 0x72d   :  { %9101 = vmatprep.subr.bf16.mxu1 %v12913_v41 }
 0x730   :  { %9103 = vmatpush3.bf16.msra.mxu1 %v9102_v4 }
 0x731   :  { %9104 = vmatprep.subr.bf16.mxu1 %v12913_v41 }
 0x734   :  { %9106 = vmatpush3.bf16.msra.mxu1 %v9105_v35  ;;  %v4340_v35 = vand.u32 4294901760, %v4319_v53 }
 0x735   :  { %9107 = vmatprep.subr.bf16.mxu1 %v12913_v41 }
 0x736   :  { %v11887_v63 = vsub.f32 %v4319_v53, %v4340_v35  ;;  %v11890_v23 = vpack.c.bf16 %v4343_v33, %v4340_v35  ;;  %v4358_v53 = vand.u32 4294901760, %v4325_v47  ;;  %v5016_v35 = vand.u32 4294901760, %v4983_v29 }
 0x738   :  { %9109 = vmatpush3.bf16.msra.mxu1 %v9108_v50  ;;  %v11877_v50 = vsub.f32 %v4317_v43, %v4334_v48  ;;  %13074 = vst [vmem:[#allocation35_spill] sm:$0xff] %v11890_v23  ;;  %9220 = vmatpush3.bf16.msra.mxu0 %v11890_v23 }
 0x739   :  { %9110 = vmatprep.subr.bf16.mxu1 %v12913_v41  ;;  %9221 = vmatprep.subr.bf16.mxu0 %v12913_v41 }
 0x73c   :  { %9112 = vmatpush3.bf16.msra.mxu1 %v9111_v3  ;;  %v11892_v3 = vsub.f32 %v4320_v19, %v4343_v33  ;;  %v4361_v19 = vand.u32 4294901760, %v4326_v20  ;;  %v5019_v33 = vand.u32 4294901760, %v4984_v1 }
 0x73d   :  { %9113 = vmatprep.subr.bf16.mxu1 %v12913_v41 }
 0x73e   :  { %v11945_v32 = vpack.c.bf16 %v4361_v19, %v4358_v53  ;;  %v11947_v11 = vpack.c.bf16 %v5019_v33, %v5016_v35 }
 0x740   :  { %9115 = vmatpush3.bf16.msra.mxu1 %v9114_v25  ;;  %13080 = vst [vmem:[#allocation37_spill] sm:$0xff] %v11945_v32  ;;  %13081 = vst [vmem:[#allocation38_spill] sm:$0xff] %v11947_v11 }
 0x741   :  { %9116 = vmatprep.subr.bf16.mxu1 %v12913_v41 }
 0x744   :  { %9118 = vmatpush3.bf16.msra.mxu1 %v9117_v10 }
 0x745   :  { %9143 = vmatprep.subr.bf16.mxu1 %v12913_v41 }
 0x747   :  { %7789 = vmatmul.mubr.f32.vlgmr.msra.gmra.mrb[30].mxu1 %v13062_v52 }
 0x748   :  { %9145 = vmatpush3.bf16.msra.mxu1 %v13063_v56  ;;  %7858 = vmatprep.mubr.msk.f32.mxu1 %vm9808_vm0, %v12917_v37 }
 0x749   :  { %9146 = vmatprep.subr.bf16.mxu1 %v12913_v41 }
 0x74c   :  { %9148 = vmatpush3.bf16.msra.mxu1 %v13064_v9 }
 0x74d   :  { %9149 = vmatprep.subr.bf16.mxu1 %v12913_v41 }
 0x750   :  { %9151 = vmatpush3.bf16.msra.mxu1 %v13065_v38 }
 0x751   :  { %9152 = vmatprep.subr.bf16.mxu1 %v12913_v41 }
 0x754   :  { %9154 = vmatpush3.bf16.msra.mxu1 %v13066_v13 }
 0x755   :  { %9155 = vmatprep.subr.bf16.mxu1 %v12913_v41 }
 0x758   :  { %9157 = vmatpush3.bf16.msra.mxu1 %v13067_v22 }
 0x759   :  { %9158 = vmatprep.subr.bf16.mxu1 %v12913_v41 }
 0x75a   :  { %v3107_v36 = vpop.f32.mrb[18].mxu1 }
 0x75b   :  { %v7545_v15 = vpop.f32.mrb[19].mxu1 }
 0x75c   :  { %9160 = vmatpush3.bf16.msra.mxu1 %v13068_v58 }
 0x75d   :  { %9161 = vmatprep.subr.bf16.mxu1 %v12913_v41 }
 0x760   :  { %9163 = vmatpush3.bf16.msra.mxu1 %v13069_v45 }
 0x761   :  { %9164 = vmatprep.subr.bf16.mxu1 %v12913_v41 }
 0x764   :  { %9166 = vmatpush3.bf16.msra.mxu1 %v13070_v51 }
 0x765   :  { %9191 = vmatprep.subr.bf16.mxu1 %v12913_v41 }
 0x767   :  { %7859 = vmatmul.mubr.f32.vlgmr.msra.gmra.mrb[32].mxu1 %v13071_v46  ;;  %v11921_v46 = vld [vmem:[#allocation19 + $0x20] sm:$0xff] }
 0x768   :  { %9193 = vmatpush3.bf16.msra.mxu1 %v13063_v56  ;;  %7928 = vmatprep.mubr.msk.f32.mxu1 %vm9808_vm0, %v12917_v37 }
 0x769   :  { %9194 = vmatprep.subr.bf16.mxu1 %v12913_v41 }
 0x76c   :  { %9196 = vmatpush3.bf16.msra.mxu1 %v13064_v9 }
 0x76d   :  { %9197 = vmatprep.subr.bf16.mxu1 %v12913_v41 }
 0x770   :  { %9199 = vmatpush3.bf16.msra.mxu1 %v13065_v38 }
 0x771   :  { %9200 = vmatprep.subr.bf16.mxu1 %v12913_v41 }
 0x774   :  { %9202 = vmatpush3.bf16.msra.mxu1 %v13066_v13 }
 0x775   :  { %9203 = vmatprep.subr.bf16.mxu1 %v12913_v41 }
 0x778   :  { %9205 = vmatpush3.bf16.msra.mxu1 %v13067_v22 }
 0x779   :  { %9206 = vmatprep.subr.bf16.mxu1 %v12913_v41 }
 0x77a   :  { %v3258_v44 = vpop.f32.mrb[20].mxu1 }
 0x77b   :  { %v3259_v27 = vadd.f32 %v3258_v44, %v3107_v36  ;;  %v7580_v7 = vpop.f32.mrb[21].mxu1  ;;  %v5824_v36 = vld [vmem:[%s12669_s13] ss:$0 sm:$0xff]  ;;  %s12491_s13 = sld [smem:[#allocation4]] }
 0x77c   :  { %9208 = vmatpush3.bf16.msra.mxu1 %v13068_v58  ;;  %v5004_v7 = vand.u32 4294901760, %v11921_v46 }
 0x77d   :  { %9209 = vmatprep.subr.bf16.mxu1 %v12913_v41 }
 0x780   :  { %9211 = vmatpush3.bf16.msra.mxu1 %v13069_v45 }
 0x781   :  { %9212 = vmatprep.subr.bf16.mxu1 %v12913_v41  ;;  %s5636_s30 = scalar_lea.vmem [#allocation2], %s12491_s13  ;;  %s5681_s13 = scalar_lea.vmem [#allocation2], %s12501_s11 }
 0x782   :  { %s5726_s11 = scalar_lea.vmem [#allocation2], %s12511_s20  ;;  %s13162_s20 = sld [smem:[#allocation57_spill]] }
 0x784   :  { %9214 = vmatpush3.bf16.msra.mxu1 %v13070_v51  ;;  %v11917_v51 = vld [vmem:[#allocation18 + $0x20] sm:$0xff] }
 0x785   :  { %9359 = vmatprep.subr.bf16.mxu1 %v12913_v41 }
 0x787   :  { %7929 = vmatmul.mubr.f32.vlgmr.msra.gmra.mrb[34].mxu1 %v13062_v52 }
 0x788   :  { %8173 = vmatprep.mubr.msk.f32.mxu1 %vm9808_vm0, %v12917_v37  ;;  %9361 = vmatpush3.bf16.msra.mxu1 %v11883_v60  ;;  %s5710_s15 = scalar_lea.vmem [#allocation3], %s13162_s20 }
 0x789   :  { %9362 = vmatprep.subr.bf16.mxu1 %v12913_v41 }
 0x78c   :  { %9364 = vmatpush3.bf16.msra.mxu1 %v11897_v6 }
 0x78d   :  { %9365 = vmatprep.subr.bf16.mxu1 %v12913_v41 }
 0x79a   :  { %v3362_v16 = vpop.f32.mrb[22].mxu1 }
 0x79b   :  { %v3363_v12 = vadd.f32 %v3362_v16, %v3259_v27  ;;  %v7615_v5 = vpop.f32.mrb[23].mxu1  ;;  %v11925_v27 = vld [vmem:[#allocation19 + $0x28] sm:$0xff] }
 0x79c   :  { %v5007_v16 = vand.u32 4294901760, %v11925_v27 }
 0x79e   :  { %v11931_v5 = vpack.c.bf16 %v5007_v16, %v5004_v7 }
 0x7a0   :  { %13077 = vst [vmem:[#allocation31_spill] sm:$0xff] %v11931_v5  ;;  %9367 = vmatpush3.bf16.msra.mxu1 %v11931_v5 }
 0x7a1   :  { %9368 = vmatprep.subr.bf16.mxu1 %v12913_v41 }
 0x7ba   :  { %v3451_v17 = vpop.f32.mrb[24].mxu1 }
 0x7bb   :  { %v3452_v21 = vadd.f32 %v3451_v17, %v3363_v12  ;;  %v7650_v4 = vpop.f32.mrb[25].mxu1  ;;  %v4323_v17 = vld [vmem:[#allocation18 + $0x30] sm:$0xff] }
 0x7bc   :  { %v4981_v4 = vld [vmem:[#allocation19 + $0x30] sm:$0xff] }
 0x7bd   :  { %v5010_v43 = vand.u32 4294901760, %v4981_v4 }
 0x7bf   :  { %v11979_v5 = vsub.f32 %v4981_v4, %v5010_v43 }
 0x7da   :  { %v3570_v54 = vpop.f32.mrb[26].mxu1 }
 0x7db   :  { %v3571_v40 = vadd.f32 %v3570_v54, %v3452_v21  ;;  %v7685_v39 = vpop.f32.mrb[27].mxu1  ;;  %v4324_v21 = vld [vmem:[#allocation18 + $0x38] sm:$0xff]  ;;  %v4352_v54 = vand.u32 4294901760, %v4323_v17 }
 0x7dc   :  { %v4982_v39 = vld [vmem:[#allocation19 + $0x38] sm:$0xff] }
 0x7dd   :  { %v5013_v14 = vand.u32 4294901760, %v4982_v39 }
 0x7df   :  { %v11939_v48 = vpack.c.bf16 %v5013_v14, %v5010_v43 }
 0x7e1   :  { %13079 = vst [vmem:[#allocation36_spill] sm:$0xff] %v11939_v48  ;;  %9370 = vmatpush3.bf16.msra.mxu1 %v11939_v48  ;;  %v11973_v48 = vsub.f32 %v11925_v27, %v5007_v16  ;;  %v4332_v27 = vld [vmem:[#allocation18 + $0x78] sm:$0xff] }
 0x7e2   :  { %9371 = vmatprep.subr.bf16.mxu1 %v12913_v41 }
 0x7e5   :  { %9373 = vmatpush3.bf16.msra.mxu1 %v11947_v11 }
 0x7e6   :  { %9374 = vmatprep.subr.bf16.mxu1 %v12913_v41 }
 0x7fa   :  { %v3657_v2 = vpop.f32.mrb[28].mxu1 }
 0x7fb   :  { %v3658_v59 = vadd.f32 %v3657_v2, %v3571_v40  ;;  %v7720_v34 = vpop.f32.mrb[29].mxu1  ;;  %v4355_v40 = vand.u32 4294901760, %v4324_v21  ;;  %v4985_v2 = vld [vmem:[#allocation19 + $0x50] sm:$0xff] }
 0x7fc   :  { %v4367_v34 = vand.u32 4294901760, %v4328_v30 }
 0x7fd   :  { %v3749_v25 = vadd.f32 %v11635_v24, %v3658_v59  ;;  %v11937_v31 = vpack.c.bf16 %v4355_v40, %v4352_v54  ;;  %v4364_v59 = vand.u32 4294901760, %v4327_v8 }
 0x7ff   :  { %13078 = vst [vmem:[#allocation34_spill] sm:$0xff] %v11937_v31  ;;  %v11993_v16 = vsub.f32 %v4327_v8, %v4364_v59 }
 0x81a   :  { %v3899_v26 = vpop.f32.mrb[30].mxu1 }
 0x81b   :  { %v3900_v49 = vadd.f32 %v3899_v26, %v3749_v25  ;;  %v7790_v10 = vpop.f32.mrb[31].mxu1  ;;  %v4986_v25 = vld [vmem:[#allocation19 + $0x58] sm:$0xff]  ;;  %v5022_v26 = vand.u32 4294901760, %v4985_v2 }
 0x81c   :  { %v11953_v10 = vpack.c.bf16 %v4367_v34, %v4364_v59 }
 0x81d   :  { %v4004_v52 = vadd.f32 %v11653_v55, %v3900_v49  ;;  %v11919_v55 = vld [vmem:[#allocation18 + $0x28] sm:$0xff]  ;;  %v5025_v49 = vand.u32 4294901760, %v4986_v25 }
 0x81e   :  { %v4349_v44 = vand.u32 4294901760, %v11919_v55  ;;  %13082 = vst [vmem:[#allocation48_spill] sm:$0xff] %v11953_v10 }
 0x81f   :  { %v11999_v4 = vsub.f32 %v4986_v25, %v5025_v49 }
 0x83a   :  { %v4092_v56 = vpop.f32.mrb[32].mxu1 }
 0x83b   :  { %v4093_v9 = vadd.f32 %v4092_v56, %v4004_v52  ;;  %v7860_v38 = vpop.f32.mrb[33].mxu1  ;;  %v11955_v52 = vpack.c.bf16 %v5025_v49, %v5022_v26  ;;  %v4329_v56 = vld [vmem:[#allocation18 + $0x60] sm:$0xff] }
 0x83c   :  { %v4987_v38 = vld [vmem:[#allocation19 + $0x60] sm:$0xff] }
 0x83d   :  { %v4212_v13 = vadd.f32 %v11690_v62, %v4093_v9  ;;  %v4346_v62 = vand.u32 4294901760, %v11917_v51  ;;  %13083 = vst [vmem:[#allocation49_spill] sm:$0xff] %v11955_v52  ;;  %v4330_v9 = vld [vmem:[#allocation18 + $0x68] sm:$0xff]  ;;  %9376 = vmatpush3.bf16.msra.mxu1 %v11955_v52  ;;  %v11975_v52 = vsub.f32 %v4323_v17, %v4352_v54  ;;  %v11995_v17 = vsub.f32 %v4328_v30, %v4367_v34  ;;  %v4990_v54 = vld [vmem:[#allocation19 + $0x78] sm:$0xff] }
 0x83e   :  { %9377 = vmatprep.subr.bf16.mxu1 %v12913_v41 }
 0x83f   :  { %v11929_v12 = vpack.c.bf16 %v4349_v44, %v4346_v62  ;;  %v11964_v11 = vsub.f32 %v11917_v51, %v4346_v62  ;;  %v11984_v51 = vsub.f32 %v4325_v47, %v4358_v53  ;;  %v11988_v62 = vsub.f32 %v4983_v29, %v5016_v35 }
 0x840   :  { %v4379_v29 = vand.u32 4294901760, %v4332_v27  ;;  %v12853_v35 = vand.u32 4294901760, %v11879_v28 }
 0x841   :  { %13076 = vst [vmem:[#allocation30_spill] sm:$0xff] %v11929_v12  ;;  %9223 = vmatpush3.bf16.msra.mxu0 %v11929_v12  ;;  %v11981_v12 = vsub.f32 %v4982_v39, %v5013_v14 }
 0x842   :  { %9224 = vmatprep.subr.bf16.mxu0 %v12913_v41  ;;  %v4435_v49 = vsub.f32 %v11879_v28, %v12853_v35 }
 0x845   :  { %9226 = vmatpush3.bf16.msra.mxu0 %v11937_v31  ;;  %v11977_v31 = vsub.f32 %v4324_v21, %v4355_v40  ;;  %v11997_v21 = vsub.f32 %v4985_v2, %v5022_v26  ;;  %v12020_v2 = vsub.f32 %v4332_v27, %v4379_v29 }
 0x846   :  { %9227 = vmatprep.subr.bf16.mxu0 %v12913_v41 }
 0x849   :  { %9229 = vmatpush3.bf16.msra.mxu0 %v11945_v32  ;;  %v11967_v32 = vsub.f32 %v11919_v55, %v4349_v44  ;;  %v11986_v55 = vsub.f32 %v4326_v20, %v4361_v19  ;;  %v4331_v44 = vld [vmem:[#allocation18 + $0x70] sm:$0xff]  ;;  %v5037_v19 = vand.u32 4294901760, %v4990_v54 }
 0x84a   :  { %9230 = vmatprep.subr.bf16.mxu0 %v12913_v41  ;;  %v4376_v20 = vand.u32 4294901760, %v4331_v44 }
 0x84b   :  { %v12026_v25 = vsub.f32 %v4990_v54, %v5037_v19 }
 0x84c   :  { %v12016_v8 = vpack.c.bf16 %v4379_v29, %v4376_v20  ;;  %v12018_v30 = vsub.f32 %v4331_v44, %v4376_v20 }
 0x84d   :  { %9232 = vmatpush3.bf16.msra.mxu0 %v11953_v10  ;;  %v11970_v10 = vsub.f32 %v11921_v46, %v5004_v7  ;;  %v11990_v46 = vsub.f32 %v4984_v1, %v5019_v33  ;;  %v4989_v7 = vld [vmem:[#allocation19 + $0x70] sm:$0xff]  ;;  %v12854_v1 = vand.u32 4294901760, %v11877_v50  ;;  %v12844_v33 = vand.u32 4294901760, %v11881_v0 }
 0x84e   :  { %9233 = vmatprep.subr.bf16.mxu0 %v12913_v41  ;;  %v5034_v53 = vand.u32 4294901760, %v4989_v7  ;;  %13086 = vst [vmem:[#allocation52_spill] sm:$0xff] %v12016_v8  ;;  %v12888_v23 = vand.u32 4294901760, %v12026_v25 }
 0x84f   :  { %v4428_v26 = vsub.f32 %v11877_v50, %v12854_v1 }
 0x850   :  { %v12022_v59 = vsub.f32 %v4989_v7, %v5034_v53  ;;  %v12024_v34 = vpack.c.bf16 %v5037_v19, %v5034_v53  ;;  %v12847_v19 = vand.u32 4294901760, %v11964_v11 }
 0x852   :  { %13087 = vst [vmem:[#allocation53_spill] sm:$0xff] %v12024_v34 }
 0x85a   :  { %v4298_v22 = vpop.f32.mrb[34].mxu1 }
 0x85b   :  { %v4299_v15 = vadd.f32 %v4298_v22, %v4212_v13  ;;  %v7930_v58 = vpop.f32.mrb[35].mxu1  ;;  %v4370_v13 = vand.u32 4294901760, %v4329_v56  ;;  %v4373_v22 = vand.u32 4294901760, %v4330_v9 }
 0x85c   :  { %v5028_v58 = vand.u32 4294901760, %v4987_v38 }
 0x85d   :  { %v11913_v45 = vadd.f32 %v5824_v36, %v4299_v15  ;;  %v4988_v36 = vld [vmem:[#allocation19 + $0x68] sm:$0xff]  ;;  %v11961_v15 = vpack.c.bf16 %v4373_v22, %v4370_v13  ;;  %v12001_v40 = vsub.f32 %v4329_v56, %v4370_v13  ;;  %v12003_v39 = vsub.f32 %v4330_v9, %v4373_v22 }
 0x85e   :  { %v12007_v14 = vsub.f32 %v4987_v38, %v5028_v58  ;;  %v5086_v56 = vsub.f32 %v11881_v0, %v12844_v33  ;;  %v12843_v9 = vand.u32 4294901760, %v11885_v18  ;;  %v12842_v38 = vand.u32 4294901760, %v11887_v63 }
 0x85f   :  { %v4310_v24 = vmul.f32 %v11913_v45, %v11913_v45  ;;  %13084 = vst [vmem:[#allocation50_spill] sm:$0xff] %v11961_v15  ;;  %9235 = vmatpush3.bf16.msra.mxu0 %v11961_v15  ;;  %v12846_v13 = vand.u32 4294901760, %v11892_v3  ;;  %v4429_v22 = vand.u32 4294901760, %v4428_v26  ;;  %v12877_v15 = vand.u32 4294901760, %v12003_v39 }
 0x860   :  { %9236 = vmatprep.subr.bf16.mxu0 %v12913_v41  ;;  %v5087_v44 = vand.u32 4294901760, %v5086_v56  ;;  %v5093_v27 = vsub.f32 %v11885_v18, %v12843_v9  ;;  %v4442_v7 = vsub.f32 %v11887_v63, %v12842_v38  ;;  %v12851_v38 = vand.u32 4294901760, %v11967_v32 }
 0x861   :  { %4311 = vadd.xlane.f32.xlu0 %v4310_v24  ;;  %v5031_v24 = vand.u32 4294901760, %v4988_v36  ;;  %v4449_v54 = vsub.f32 %v11892_v3, %v12846_v13 }
 0x862   :  { %v5094_v26 = vand.u32 4294901760, %v5093_v27  ;;  %v4463_v27 = vsub.f32 %v11967_v32, %v12851_v38 }
 0x863   :  { %v12005_v43 = vpack.c.bf16 %v5031_v24, %v5028_v58  ;;  %v12009_v47 = vsub.f32 %v4988_v36, %v5031_v24  ;;  %9238 = vmatpush3.bf16.msra.mxu0 %v12016_v8  ;;  %v4436_v36 = vand.u32 4294901760, %v4435_v49  ;;  %v12845_v58 = vand.u32 4294901760, %v11899_v57 }
 0x864   :  { %9239 = vmatprep.subr.bf16.mxu0 %v12913_v41  ;;  %v12848_v24 = vand.u32 4294901760, %v11901_v42  ;;  %v4443_v49 = vand.u32 4294901760, %v4442_v7  ;;  %v4450_v56 = vand.u32 4294901760, %v4449_v54  ;;  %v12850_v7 = vand.u32 4294901760, %v11973_v48 }
 0x865   :  { %13085 = vst [vmem:[#allocation51_spill] sm:$0xff] %v12005_v43  ;;  %9379 = vmatpush3.bf16.msra.mxu1 %v12005_v43  ;;  %v12055_v20 = vpack.c.bf16 %v4436_v36, %v4429_v22  ;;  %v5100_v29 = vsub.f32 %v11899_v57, %v12845_v58  ;;  %v4456_v22 = vsub.f32 %v11964_v11, %v12847_v19  ;;  %v12849_v36 = vand.u32 4294901760, %v11970_v10 }
 0x866   :  { %9380 = vmatprep.subr.bf16.mxu1 %v12913_v41  ;;  %v5107_v53 = vsub.f32 %v11901_v42, %v12848_v24  ;;  %v12069_v58 = vpack.c.bf16 %v5094_v26, %v5087_v44  ;;  %v12071_v13 = vpack.c.bf16 %v4450_v56, %v4443_v49  ;;  %v12852_v19 = vand.u32 4294901760, %v11975_v52 }
 0x867   :  { %v5101_v9 = vand.u32 4294901760, %v5100_v29  ;;  %v4457_v29 = vand.u32 4294901760, %v4456_v22  ;;  %v4464_v24 = vand.u32 4294901760, %v4463_v27  ;;  %v5121_v44 = vsub.f32 %v11973_v48, %v12850_v7 }
 0x868   :  { %v5108_v33 = vand.u32 4294901760, %v5107_v53  ;;  %v5114_v53 = vsub.f32 %v11970_v10, %v12849_v36  ;;  %v12855_v26 = vand.u32 4294901760, %v11977_v31  ;;  %v12861_v49 = vand.u32 4294901760, %v11979_v5 }
 0x869   :  { %9382 = vmatpush3.bf16.msra.mxu1 %v12024_v34  ;;  %v12862_v22 = vand.u32 4294901760, %v11984_v51  ;;  %v12093_v36 = vpack.c.bf16 %v4464_v24, %v4457_v29  ;;  %v5122_v27 = vand.u32 4294901760, %v5121_v44  ;;  %v12863_v24 = vand.u32 4294901760, %v11986_v55 }
 0x86a   :  { %9383 = vmatprep.subr.bf16.mxu1 %v12913_v41  ;;  %v12077_v54 = vpack.c.bf16 %v5108_v33, %v5101_v9  ;;  %v5115_v56 = vand.u32 4294901760, %v5114_v53  ;;  %v4470_v33 = vsub.f32 %v11975_v52, %v12852_v19  ;;  %v12860_v9 = vand.u32 4294901760, %v11981_v12 }
 0x86b   :  { %v4477_v7 = vsub.f32 %v11977_v31, %v12855_v26  ;;  %v5128_v38 = vsub.f32 %v11979_v5, %v12861_v49  ;;  %v4484_v35 = vsub.f32 %v11984_v51, %v12862_v22  ;;  %v12864_v26 = vand.u32 4294901760, %v11988_v62 }
 0x86c   :  { %v4471_v53 = vand.u32 4294901760, %v4470_v33  ;;  %v5135_v19 = vsub.f32 %v11981_v12, %v12860_v9  ;;  %v12108_v29 = vpack.c.bf16 %v5122_v27, %v5115_v56  ;;  %v4491_v33 = vsub.f32 %v11986_v55, %v12863_v24 }
 0x86d   :  { %v4478_v44 = vand.u32 4294901760, %v4477_v7  ;;  %v5129_v1 = vand.u32 4294901760, %v5128_v38  ;;  %v4485_v8 = vand.u32 4294901760, %v4484_v35  ;;  %v12865_v9 = vand.u32 4294901760, %v11990_v46 }
 0x86e   :  { %v5136_v34 = vand.u32 4294901760, %v5135_v19  ;;  %v5142_v22 = vsub.f32 %v11988_v62, %v12864_v26  ;;  %v12868_v56 = vand.u32 4294901760, %v11993_v16  ;;  %v12871_v38 = vand.u32 4294901760, %v11995_v17 }
 0x86f   :  { %v12115_v49 = vpack.c.bf16 %v4478_v44, %v4471_v53  ;;  %v4492_v19 = vand.u32 4294901760, %v4491_v33  ;;  %v5149_v35 = vsub.f32 %v11990_v46, %v12865_v9  ;;  %v12874_v27 = vand.u32 4294901760, %v11997_v21 }
 0x870   :  { %v12122_v7 = vpack.c.bf16 %v5136_v34, %v5129_v1  ;;  %v5143_v24 = vand.u32 4294901760, %v5142_v22  ;;  %v4498_v53 = vsub.f32 %v11993_v16, %v12868_v56  ;;  %v4505_v44 = vsub.f32 %v11995_v17, %v12871_v38 }
 0x871   :  { %v12875_v26 = vand.u32 4294901760, %v11999_v4  ;;  %v12135_v1 = vpack.c.bf16 %v4492_v19, %v4485_v8  ;;  %v5150_v34 = vand.u32 4294901760, %v5149_v35  ;;  %v5156_v33 = vsub.f32 %v11997_v21, %v12874_v27 }
 0x872   :  { %v12876_v9 = vand.u32 4294901760, %v12001_v40  ;;  %v4499_v22 = vand.u32 4294901760, %v4498_v53  ;;  %v4506_v43 = vand.u32 4294901760, %v4505_v44  ;;  %v12878_v19 = vand.u32 4294901760, %v12007_v14 }
 0x873   :  { %v5163_v56 = vsub.f32 %v11999_v4, %v12875_v26  ;;  %v12145_v38 = vpack.c.bf16 %v5150_v34, %v5143_v24  ;;  %v5157_v6 = vand.u32 4294901760, %v5156_v33  ;;  %v4519_v53 = vsub.f32 %v12003_v39, %v12877_v15 }
 0x874   :  { %v4512_v8 = vsub.f32 %v12001_v40, %v12876_v9  ;;  %v12151_v35 = vpack.c.bf16 %v4506_v43, %v4499_v22  ;;  %v12881_v44 = vand.u32 4294901760, %v12009_v47  ;;  %v5170_v24 = vsub.f32 %v12007_v14, %v12878_v19 }
 0x875   :  { %v5164_v27 = vand.u32 4294901760, %v5163_v56  ;;  %v12884_v34 = vand.u32 4294901760, %v12018_v30  ;;  %v12887_v33 = vand.u32 4294901760, %v12020_v2  ;;  %v4520_v43 = vand.u32 4294901760, %v4519_v53 }
 0x876   :  { %13088 = vst [vmem:[#allocation54_spill] sm:$0xff] %v12151_v35  ;;  %v4513_v26 = vand.u32 4294901760, %v4512_v8  ;;  %v5177_v56 = vsub.f32 %v12009_v47, %v12881_v44  ;;  %v12889_v22 = vand.u32 4294901760, %v12022_v59  ;;  %v5171_v15 = vand.u32 4294901760, %v5170_v24 }
 0x877   :  { %v12162_v9 = vpack.c.bf16 %v5164_v27, %v5157_v6  ;;  %v4526_v8 = vsub.f32 %v12018_v30, %v12884_v34  ;;  %v4533_v19 = vsub.f32 %v12020_v2, %v12887_v33  ;;  %v5191_v24 = vsub.f32 %v12026_v25, %v12888_v23 }
 0x878   :  { %v12175_v6 = vpack.c.bf16 %v4520_v43, %v4513_v26  ;;  %v5178_v27 = vand.u32 4294901760, %v5177_v56  ;;  %v5184_v53 = vsub.f32 %v12022_v59, %v12889_v22  ;;  %v9264_v26 = vpack.c.bf16 %v11879_v28, %v11877_v50 }
 0x879   :  { %13089 = vst [vmem:[#allocation39_spill] sm:$0xff] %v12162_v9  ;;  %v4527_v44 = vand.u32 4294901760, %v4526_v8  ;;  %v4534_v60 = vand.u32 4294901760, %v4533_v19  ;;  %v5192_v35 = vand.u32 4294901760, %v5191_v24  ;;  %v9408_v43 = vpack.c.bf16 %v11885_v18, %v11881_v0 }
 0x87a   :  { %v9402_v34 = vpack.c.bf16 %v5178_v27, %v5171_v15  ;;  %v5185_v61 = vand.u32 4294901760, %v5184_v53  ;;  %v9267_v56 = vpack.c.bf16 %v11892_v3, %v11887_v63  ;;  %v9411_v19 = vpack.c.bf16 %v11901_v42, %v11899_v57 }
 0x87b   :  { %v9261_v9 = vpack.c.bf16 %v4534_v60, %v4527_v44 }
 0x87c   :  { %v9405_v33 = vpack.c.bf16 %v5192_v35, %v5185_v61  ;;  %v9429_v35 = vpack.c.bf16 %v12026_v25, %v12022_v59 }
 0x8ee   :  { %v4312_v15 = vpop.xlane.xlu0 %4311 }
 0x8ef   :  { %v4313_v44 = vmax.f32 %v4312_v15, 1e-24  ;;  %v13113_v15 = vld [vmem:[#allocation48_spill] sm:$0xff] }
 0x8f1   :  { %9579 = vrsqrt.f32 %v4313_v44  ;;  %v13115_v44 = vld [vmem:[#allocation50_spill] sm:$0xff] }
 0x8fb   :  { %v9580_v61 = vpop.eup %9579 }
 0x8fc   :  { %v4315_v27 = vmul.f32 %v9580_v61, %v11913_v45  ;;  %v13090_v45 = vld [vmem:[#allocation54_spill] sm:$0xff] }
 0x8fd   :  { %v13112_v61 = vld [vmem:[#allocation38_spill] sm:$0xff] }
 0x8fe   :  { %v4316_v60 = vmax.f32 %v4315_v27, 0.0  ;;  %v13116_v27 = vld [vmem:[#allocation51_spill] sm:$0xff] }
 0x900   :  { %v12216_v53 = vand.u32 4294901760, %v4316_v60 }
 0x902   :  { %v12219_v24 = vsub.f32 %v4316_v60, %v12216_v53  ;;  %v13111_v60 = vld [vmem:[#allocation37_spill] sm:$0xff] }
 0x904   :  { %v12222_v23 = vand.u32 4294901760, %v12219_v24 }
 0x906   :  { %v4417_v22 = vsub.f32 %v12219_v24, %v12222_v23 }
 0x908   :  { %v4418_v8 = vand.u32 4294901760, %v4417_v22  ;;  %v13104_v22 = vld [vmem:[#allocation33_spill] sm:$0xff] }
 0x90a   :  { %7964 = vmatmul.mubr.f32.vlgmr.msra.gmra.mrb[16].mxu0 %v4418_v8  ;;  %8174 = vmatmul.mubr.f32.vlgmr.msra.gmra.mrb[36].mxu1 %v4418_v8  ;;  %v13110_v8 = vld [vmem:[#allocation36_spill] sm:$0xff] }
 0x90b   :  { %9241 = vmatpush3.bf16.msra.mxu0 %v12055_v20  ;;  %9385 = vmatpush3.bf16.msra.mxu1 %v12069_v58  ;;  %v13092_v58 = vpack.c.bf16 %v11967_v32, %v11964_v11  ;;  %v13093_v20 = vpack.c.bf16 %v11973_v48, %v11970_v10 }
 0x90c   :  { %9242 = vmatprep.subr.bf16.mxu0 %v12913_v41  ;;  %9386 = vmatprep.subr.bf16.mxu1 %v12913_v41 }
 0x90d   :  { %7998 = vmatprep.mubr.msk.f32.mxu0 %vm9808_vm0, %v12917_v37  ;;  %8208 = vmatprep.mubr.msk.f32.mxu1 %vm9808_vm0, %v12917_v37 }
 0x90f   :  { %9244 = vmatpush3.bf16.msra.mxu0 %v12071_v13  ;;  %9388 = vmatpush3.bf16.msra.mxu1 %v12077_v54  ;;  %v13091_v13 = vld [vmem:[#allocation39_spill] sm:$0xff]  ;;  %v13095_v54 = vpack.c.bf16 %v11981_v12, %v11979_v5 }
 0x910   :  { %9245 = vmatprep.subr.bf16.mxu0 %v12913_v41  ;;  %9389 = vmatprep.subr.bf16.mxu1 %v12913_v41 }
 0x913   :  { %9247 = vmatpush3.bf16.msra.mxu0 %v12093_v36  ;;  %9391 = vmatpush3.bf16.msra.mxu1 %v12108_v29  ;;  %v13094_v36 = vpack.c.bf16 %v11977_v31, %v11975_v52  ;;  %v13098_v29 = vpack.c.bf16 %v11995_v17, %v11993_v16 }
 0x914   :  { %9248 = vmatprep.subr.bf16.mxu0 %v12913_v41  ;;  %9392 = vmatprep.subr.bf16.mxu1 %v12913_v41 }
 0x917   :  { %9250 = vmatpush3.bf16.msra.mxu0 %v12115_v49  ;;  %9394 = vmatpush3.bf16.msra.mxu1 %v12122_v7  ;;  %v13096_v49 = vpack.c.bf16 %v11986_v55, %v11984_v51  ;;  %v13100_v7 = vpack.c.bf16 %v12003_v39, %v12001_v40 }
 0x918   :  { %9251 = vmatprep.subr.bf16.mxu0 %v12913_v41  ;;  %9395 = vmatprep.subr.bf16.mxu1 %v12913_v41 }
 0x91b   :  { %9253 = vmatpush3.bf16.msra.mxu0 %v12135_v1  ;;  %9397 = vmatpush3.bf16.msra.mxu1 %v12145_v38  ;;  %v13099_v38 = vpack.c.bf16 %v11999_v4, %v11997_v21  ;;  %v13101_v1 = vpack.c.bf16 %v12009_v47, %v12007_v14 }
 0x91c   :  { %9254 = vmatprep.subr.bf16.mxu0 %v12913_v41  ;;  %9398 = vmatprep.subr.bf16.mxu1 %v12913_v41 }
 0x91f   :  { %9256 = vmatpush3.bf16.msra.mxu0 %v13090_v45  ;;  %9400 = vmatpush3.bf16.msra.mxu1 %v13091_v13  ;;  %v13118_v45 = vld [vmem:[#allocation53_spill] sm:$0xff]  ;;  %v13119_v13 = vand.u32 4294901760, %v11877_v50  ;;  %v13123_v50 = vand.u32 4294901760, %v11887_v63  ;;  %v13127_v63 = vand.u32 4294901760, %v11964_v11  ;;  %v13133_v11 = vand.u32 4294901760, %v11979_v5 }
 0x920   :  { %9257 = vmatprep.subr.bf16.mxu0 %v12913_v41  ;;  %9401 = vmatprep.subr.bf16.mxu1 %v12913_v41  ;;  %v13140_v5 = vand.u32 4294901760, %v11995_v17  ;;  %v13146_v17 = vand.u32 4294901760, %v12009_v47 }
 0x923   :  { %9259 = vmatpush3.bf16.msra.mxu0 %v12175_v6  ;;  %9403 = vmatpush3.bf16.msra.mxu1 %v9402_v34  ;;  %v13102_v34 = vpack.c.bf16 %v12020_v2, %v12018_v30  ;;  %v13105_v6 = vld [vmem:[#allocation35_spill] sm:$0xff] }
 0x924   :  { %9260 = vmatprep.subr.bf16.mxu0 %v12913_v41  ;;  %9404 = vmatprep.subr.bf16.mxu1 %v12913_v41 }
 0x927   :  { %9262 = vmatpush3.bf16.msra.mxu0 %v9261_v9  ;;  %9406 = vmatpush3.bf16.msra.mxu1 %v9405_v33  ;;  %v13097_v9 = vpack.c.bf16 %v11990_v46, %v11988_v62  ;;  %v13103_v33 = vld [vmem:[#allocation32_spill] sm:$0xff] }
 0x928   :  { %9263 = vmatprep.subr.bf16.mxu0 %v12913_v41  ;;  %9407 = vmatprep.subr.bf16.mxu1 %v12913_v41 }
 0x92a   :  { %7999 = vmatmul.mubr.f32.vlgmr.msra.gmra.mrb[16].mxu0 %v12216_v53  ;;  %8209 = vmatmul.mubr.f32.vlgmr.msra.gmra.mrb[36].mxu1 %v12216_v53 }
 0x92b   :  { %9265 = vmatpush3.bf16.msra.mxu0 %v9264_v26  ;;  %9409 = vmatpush3.bf16.msra.mxu1 %v9408_v43  ;;  %v13106_v26 = vld [vmem:[#allocation29_spill] sm:$0xff]  ;;  %v13107_v43 = vld [vmem:[#allocation30_spill] sm:$0xff] }
 0x92c   :  { %9266 = vmatprep.subr.bf16.mxu0 %v12913_v41  ;;  %9410 = vmatprep.subr.bf16.mxu1 %v12913_v41 }
 0x92d   :  { %8033 = vmatprep.mubr.msk.f32.mxu0 %vm9808_vm0, %v12917_v37  ;;  %8243 = vmatprep.mubr.msk.f32.mxu1 %vm9808_vm0, %v12917_v37 }
 0x92f   :  { %9268 = vmatpush3.bf16.msra.mxu0 %v9267_v56  ;;  %9412 = vmatpush3.bf16.msra.mxu1 %v9411_v19  ;;  %v13108_v56 = vld [vmem:[#allocation31_spill] sm:$0xff]  ;;  %v13109_v19 = vld [vmem:[#allocation34_spill] sm:$0xff] }
 0x930   :  { %9269 = vmatprep.subr.bf16.mxu0 %v12913_v41  ;;  %9413 = vmatprep.subr.bf16.mxu1 %v12913_v41 }
 0x933   :  { %9271 = vmatpush3.bf16.msra.mxu0 %v13092_v58  ;;  %9415 = vmatpush3.bf16.msra.mxu1 %v13093_v20  ;;  %v13120_v58 = vand.u32 4294901760, %v11879_v28  ;;  %v13124_v28 = vand.u32 4294901760, %v11892_v3 }
 0x934   :  { %9272 = vmatprep.subr.bf16.mxu0 %v12913_v41  ;;  %9416 = vmatprep.subr.bf16.mxu1 %v12913_v41 }
 0x935   :  { %v9312_v20 = vpack.c.bf16 %v13120_v58, %v13119_v13 }
 0x937   :  { %9274 = vmatpush3.bf16.msra.mxu0 %v13094_v36  ;;  %9418 = vmatpush3.bf16.msra.mxu1 %v13095_v54  ;;  %v13121_v36 = vand.u32 4294901760, %v11881_v0  ;;  %v13122_v54 = vand.u32 4294901760, %v11885_v18  ;;  %v13125_v0 = vand.u32 4294901760, %v11899_v57  ;;  %v13126_v18 = vand.u32 4294901760, %v11901_v42 }
 0x938   :  { %9275 = vmatprep.subr.bf16.mxu0 %v12913_v41  ;;  %9419 = vmatprep.subr.bf16.mxu1 %v12913_v41  ;;  %v13129_v57 = vand.u32 4294901760, %v11970_v10  ;;  %v13130_v42 = vand.u32 4294901760, %v11973_v48  ;;  %v13135_v48 = vand.u32 4294901760, %v11984_v51  ;;  %v13136_v10 = vand.u32 4294901760, %v11986_v55 }
 0x939   :  { %v13141_v51 = vand.u32 4294901760, %v11997_v21  ;;  %v13142_v55 = vand.u32 4294901760, %v11999_v4  ;;  %v13147_v21 = vand.u32 4294901760, %v12018_v30  ;;  %v13148_v4 = vand.u32 4294901760, %v12020_v2 }
 0x93a   :  { %v9324_v58 = vpack.c.bf16 %v13136_v10, %v13135_v48 }
 0x93b   :  { %9277 = vmatpush3.bf16.msra.mxu0 %v13096_v49  ;;  %9421 = vmatpush3.bf16.msra.mxu1 %v13097_v9  ;;  %v9456_v49 = vpack.c.bf16 %v13122_v54, %v13121_v36  ;;  %v9315_v9 = vpack.c.bf16 %v13124_v28, %v13123_v50  ;;  %v9471_v54 = vpack.c.bf16 %v13142_v55, %v13141_v51 }
 0x93c   :  { %9278 = vmatprep.subr.bf16.mxu0 %v12913_v41  ;;  %9422 = vmatprep.subr.bf16.mxu1 %v12913_v41  ;;  %v9333_v28 = vpack.c.bf16 %v13148_v4, %v13147_v21 }
 0x93f   :  { %9280 = vmatpush3.bf16.msra.mxu0 %v13098_v29  ;;  %9424 = vmatpush3.bf16.msra.mxu1 %v13099_v38  ;;  %v9459_v29 = vpack.c.bf16 %v13126_v18, %v13125_v0  ;;  %v9462_v38 = vpack.c.bf16 %v13130_v42, %v13129_v57 }
 0x940   :  { %9281 = vmatprep.subr.bf16.mxu0 %v12913_v41  ;;  %9425 = vmatprep.subr.bf16.mxu1 %v12913_v41 }
 0x943   :  { %9283 = vmatpush3.bf16.msra.mxu0 %v13100_v7  ;;  %9427 = vmatpush3.bf16.msra.mxu1 %v13101_v1  ;;  %v13131_v7 = vand.u32 4294901760, %v11975_v52  ;;  %v13132_v1 = vand.u32 4294901760, %v11977_v31  ;;  %v13137_v52 = vand.u32 4294901760, %v11988_v62  ;;  %v13138_v31 = vand.u32 4294901760, %v11990_v46 }
 0x944   :  { %9284 = vmatprep.subr.bf16.mxu0 %v12913_v41  ;;  %9428 = vmatprep.subr.bf16.mxu1 %v12913_v41  ;;  %v13143_v62 = vand.u32 4294901760, %v12001_v40  ;;  %v13144_v46 = vand.u32 4294901760, %v12003_v39  ;;  %v13149_v40 = vand.u32 4294901760, %v12022_v59  ;;  %v13150_v39 = vand.u32 4294901760, %v12026_v25 }
 0x947   :  { %9286 = vmatpush3.bf16.msra.mxu0 %v13102_v34  ;;  %9430 = vmatpush3.bf16.msra.mxu1 %v9429_v35  ;;  %v13114_v35 = vld [vmem:[#allocation49_spill] sm:$0xff]  ;;  %v9321_v34 = vpack.c.bf16 %v13132_v1, %v13131_v7 }
 0x948   :  { %9287 = vmatprep.subr.bf16.mxu0 %v12913_v41  ;;  %9431 = vmatprep.subr.bf16.mxu1 %v12913_v41 }
 0x94a   :  { %8034 = vmatmul.mubr.f32.vlgmr.msra.gmra.mrb[16].mxu0 %v12219_v24  ;;  %8244 = vmatmul.mubr.f32.vlgmr.msra.gmra.mrb[36].mxu1 %v12219_v24  ;;  %v13117_v24 = vld [vmem:[#allocation52_spill] sm:$0xff] }
 0x94b   :  { %9289 = vmatpush3.bf16.msra.mxu0 %v13103_v33  ;;  %9433 = vmatpush3.bf16.msra.mxu1 %v13104_v22 }
 0x94c   :  { %9290 = vmatprep.subr.bf16.mxu0 %v12913_v41  ;;  %9434 = vmatprep.subr.bf16.mxu1 %v12913_v41 }
 0x94d   :  { %8068 = vmatprep.mubr.msk.f32.mxu0 %vm9808_vm0, %v12917_v37  ;;  %8278 = vmatprep.mubr.msk.f32.mxu1 %vm9808_vm0, %v12917_v37 }
 0x94f   :  { %9292 = vmatpush3.bf16.msra.mxu0 %v13105_v6  ;;  %9436 = vmatpush3.bf16.msra.mxu1 %v13106_v26 }
 0x950   :  { %9293 = vmatprep.subr.bf16.mxu0 %v12913_v41  ;;  %9437 = vmatprep.subr.bf16.mxu1 %v12913_v41 }
 0x953   :  { %9295 = vmatpush3.bf16.msra.mxu0 %v13107_v43  ;;  %9439 = vmatpush3.bf16.msra.mxu1 %v13108_v56 }
 0x954   :  { %9296 = vmatprep.subr.bf16.mxu0 %v12913_v41  ;;  %9440 = vmatprep.subr.bf16.mxu1 %v12913_v41 }
 0x957   :  { %9298 = vmatpush3.bf16.msra.mxu0 %v13109_v19  ;;  %9442 = vmatpush3.bf16.msra.mxu1 %v13110_v8 }
 0x958   :  { %9299 = vmatprep.subr.bf16.mxu0 %v12913_v41  ;;  %9443 = vmatprep.subr.bf16.mxu1 %v12913_v41 }
 0x95b   :  { %9301 = vmatpush3.bf16.msra.mxu0 %v13111_v60  ;;  %9445 = vmatpush3.bf16.msra.mxu1 %v13112_v61 }
 0x95c   :  { %9302 = vmatprep.subr.bf16.mxu0 %v12913_v41  ;;  %9446 = vmatprep.subr.bf16.mxu1 %v12913_v41 }
 0x95f   :  { %9304 = vmatpush3.bf16.msra.mxu0 %v13113_v15  ;;  %9448 = vmatpush3.bf16.msra.mxu1 %v13114_v35 }
 0x960   :  { %9305 = vmatprep.subr.bf16.mxu0 %v12913_v41  ;;  %9449 = vmatprep.subr.bf16.mxu1 %v12913_v41 }
 0x963   :  { %9307 = vmatpush3.bf16.msra.mxu0 %v13115_v44  ;;  %9451 = vmatpush3.bf16.msra.mxu1 %v13116_v27 }
 0x964   :  { %9308 = vmatprep.subr.bf16.mxu0 %v12913_v41  ;;  %9452 = vmatprep.subr.bf16.mxu1 %v12913_v41 }
 0x967   :  { %9310 = vmatpush3.bf16.msra.mxu0 %v13117_v24  ;;  %9454 = vmatpush3.bf16.msra.mxu1 %v13118_v45 }
 0x968   :  { %9311 = vmatprep.subr.bf16.mxu0 %v12913_v41  ;;  %9455 = vmatprep.subr.bf16.mxu1 %v12913_v41 }
 0x96a   :  { %8069 = vmatmul.mubr.f32.vlgmr.msra.gmra.mrb[16].mxu0 %v12222_v23  ;;  %8279 = vmatmul.mubr.f32.vlgmr.msra.gmra.mrb[36].mxu1 %v12222_v23  ;;  %v13128_v23 = vand.u32 4294901760, %v11967_v32  ;;  %v13134_v32 = vand.u32 4294901760, %v11981_v12  ;;  %v13139_v12 = vand.u32 4294901760, %v11993_v16  ;;  %v13145_v16 = vand.u32 4294901760, %v12007_v14 }
 0x96b   :  { %9313 = vmatpush3.bf16.msra.mxu0 %v9312_v20  ;;  %9457 = vmatpush3.bf16.msra.mxu1 %v9456_v49  ;;  %v9468_v20 = vpack.c.bf16 %v13138_v31, %v13137_v52  ;;  %v9330_v49 = vpack.c.bf16 %v13144_v46, %v13143_v62 }
 0x96c   :  { %9314 = vmatprep.subr.bf16.mxu0 %v12913_v41  ;;  %9458 = vmatprep.subr.bf16.mxu1 %v12913_v41  ;;  %v9318_v3 = vpack.c.bf16 %v13128_v23, %v13127_v63  ;;  %v9465_v13 = vpack.c.bf16 %v13134_v32, %v13133_v11  ;;  %v9327_v36 = vpack.c.bf16 %v13140_v5, %v13139_v12 }
 0x96d   :  { %8103 = vmatprep.mubr.msk.f32.mxu0 %vm9808_vm0, %v12917_v37  ;;  %8313 = vmatprep.mubr.msk.f32.mxu1 %vm9808_vm0, %v12917_v37  ;;  %v9474_v50 = vpack.c.bf16 %v13146_v17, %v13145_v16 }
 0x96f   :  { %9316 = vmatpush3.bf16.msra.mxu0 %v9315_v9  ;;  %9460 = vmatpush3.bf16.msra.mxu1 %v9459_v29  ;;  %v9477_v9 = vpack.c.bf16 %v13150_v39, %v13149_v40 }
 0x970   :  { %9317 = vmatprep.subr.bf16.mxu0 %v12913_v41  ;;  %9461 = vmatprep.subr.bf16.mxu1 %v12913_v41 }
 0x973   :  { %9319 = vmatpush3.bf16.msra.mxu0 %v9318_v3  ;;  %9463 = vmatpush3.bf16.msra.mxu1 %v9462_v38 }
 0x974   :  { %9320 = vmatprep.subr.bf16.mxu0 %v12913_v41  ;;  %9464 = vmatprep.subr.bf16.mxu1 %v12913_v41 }
 0x977   :  { %9322 = vmatpush3.bf16.msra.mxu0 %v9321_v34  ;;  %9466 = vmatpush3.bf16.msra.mxu1 %v9465_v13 }
 0x978   :  { %9323 = vmatprep.subr.bf16.mxu0 %v12913_v41  ;;  %9467 = vmatprep.subr.bf16.mxu1 %v12913_v41 }
 0x97b   :  { %9325 = vmatpush3.bf16.msra.mxu0 %v9324_v58  ;;  %9469 = vmatpush3.bf16.msra.mxu1 %v9468_v20 }
 0x97c   :  { %9326 = vmatprep.subr.bf16.mxu0 %v12913_v41  ;;  %9470 = vmatprep.subr.bf16.mxu1 %v12913_v41 }
 0x97f   :  { %9328 = vmatpush3.bf16.msra.mxu0 %v9327_v36  ;;  %9472 = vmatpush3.bf16.msra.mxu1 %v9471_v54 }
 0x980   :  { %9329 = vmatprep.subr.bf16.mxu0 %v12913_v41  ;;  %9473 = vmatprep.subr.bf16.mxu1 %v12913_v41 }
 0x983   :  { %9331 = vmatpush3.bf16.msra.mxu0 %v9330_v49  ;;  %9475 = vmatpush3.bf16.msra.mxu1 %v9474_v50 }
 0x984   :  { %9332 = vmatprep.subr.bf16.mxu0 %v12913_v41  ;;  %9476 = vmatprep.subr.bf16.mxu1 %v12913_v41 }
 0x987   :  { %9334 = vmatpush3.bf16.msra.mxu0 %v9333_v28  ;;  %9478 = vmatpush3.bf16.msra.mxu1 %v9477_v9 }
 0x988   :  { %9335 = vmatprep.subr.bf16.mxu0 %v12913_v41  ;;  %9479 = vmatprep.subr.bf16.mxu1 %v12913_v41 }
 0x98a   :  { %8104 = vmatmul.mubr.f32.vlgmr.msra.gmra.mrb[16].mxu0 %v12216_v53  ;;  %8314 = vmatmul.mubr.f32.vlgmr.msra.gmra.mrb[36].mxu1 %v12216_v53 }
 0x98b   :  { %9337 = vmatpush3.bf16.msra.mxu0 %v13103_v33  ;;  %9481 = vmatpush3.bf16.msra.mxu1 %v13104_v22  ;;  %v12563_v33 = vld [vmem:[%s13160_s19] sm:$0x1]  ;;  %s5719_s19 = scalar_lea.vmem [#allocation3], %s13163_s23 }
 0x98c   :  { %9338 = vmatprep.subr.bf16.mxu0 %v12913_v41  ;;  %9482 = vmatprep.subr.bf16.mxu1 %v12913_v41 }
 0x98d   :  { %8138 = vmatprep.mubr.msk.f32.mxu0 %vm9808_vm0, %v12917_v37  ;;  %8348 = vmatprep.mubr.msk.f32.mxu1 %vm9808_vm0, %v12917_v37 }
 0x98f   :  { %9340 = vmatpush3.bf16.msra.mxu0 %v13105_v6  ;;  %9484 = vmatpush3.bf16.msra.mxu1 %v13106_v26 }
 0x990   :  { %9341 = vmatprep.subr.bf16.mxu0 %v12913_v41  ;;  %9485 = vmatprep.subr.bf16.mxu1 %v12913_v41 }
 0x993   :  { %9343 = vmatpush3.bf16.msra.mxu0 %v13107_v43  ;;  %9487 = vmatpush3.bf16.msra.mxu1 %v13108_v56 }
 0x994   :  { %9344 = vmatprep.subr.bf16.mxu0 %v12913_v41  ;;  %9488 = vmatprep.subr.bf16.mxu1 %v12913_v41 }
 0x997   :  { %9346 = vmatpush3.bf16.msra.mxu0 %v13109_v19  ;;  %9490 = vmatpush3.bf16.msra.mxu1 %v13110_v8 }
 0x998   :  { %9347 = vmatprep.subr.bf16.mxu0 %v12913_v41  ;;  %9491 = vmatprep.subr.bf16.mxu1 %v12913_v41 }
 0x99b   :  { %9349 = vmatpush3.bf16.msra.mxu0 %v13111_v60  ;;  %9493 = vmatpush3.bf16.msra.mxu1 %v13112_v61 }
 0x99c   :  { %9350 = vmatprep.subr.bf16.mxu0 %v12913_v41  ;;  %9494 = vmatprep.subr.bf16.mxu1 %v12913_v41 }
 0x99f   :  { %9352 = vmatpush3.bf16.msra.mxu0 %v13113_v15  ;;  %9496 = vmatpush3.bf16.msra.mxu1 %v13114_v35 }
 0x9a0   :  { %9353 = vmatprep.subr.bf16.mxu0 %v12913_v41  ;;  %9497 = vmatprep.subr.bf16.mxu1 %v12913_v41 }
 0x9a3   :  { %9355 = vmatpush3.bf16.msra.mxu0 %v13115_v44  ;;  %9499 = vmatpush3.bf16.msra.mxu1 %v13116_v27 }
 0x9a4   :  { %9356 = vmatprep.subr.bf16.mxu0 %v12913_v41  ;;  %9500 = vmatprep.subr.bf16.mxu1 %v12913_v41 }
 0x9a7   :  { %9358 = vmatpush3.bf16.msra.mxu0 %v13117_v24  ;;  %9502 = vmatpush3.bf16.msra.mxu1 %v13118_v45 }
 0x9aa   :  { %8139 = vmatmul.mubr.f32.vlgmr.msra.gmra.mrb[16].mxu0 %v12216_v53  ;;  %8349 = vmatmul.mubr.f32.vlgmr.msra.gmra.mrb[36].mxu1 %v12216_v53 }
 0xa7d   :  { %v4970_v41 = vpop.f32.mrb[16].mxu0  ;;  %v5628_v37 = vpop.f32.mrb[36].mxu1 }
 0xa7e   :  { %4974 = vst [vmem:[#allocation2] sm:$0xff] %v4970_v41  ;;  %5632 = vst [vmem:[#allocation3] sm:$0xff] %v5628_v37  ;;  %v8140_v14 = vpop.f32.mrb[17].mxu0  ;;  %v8350_v47 = vpop.f32.mrb[37].mxu1 }
 0xa85   :  { %v5637_v30 = vld [vmem:[%s5636_s30] sm:$0x1]  ;;  %s5762_s30 = scalar_lea.vmem [#allocation2], %s12519_s7  ;;  %s13167_s7 = sld [smem:[#allocation62_spill]] }
 0xa86   :  { %v5646_v2 = vld [vmem:[%s5645_s8] sm:$0x1]  ;;  %s5683_s8 = scalar_lea.vmem [#allocation3], %s12533_s3  ;;  %s5728_s3 = scalar_lea.vmem [#allocation3], %s13164_s24 }
 0xa87   :  { %v5655_v59 = vld [vmem:[%s5654_s5] sm:$0x1]  ;;  %s5708_s5 = scalar_lea.vmem [#allocation2], %s12507_s16  ;;  %s13161_s16 = sld [smem:[#allocation56_spill]] }
 0xa88   :  { %v5664_v25 = vld [vmem:[%s5663_s26] sm:$0x1]  ;;  %s5692_s26 = scalar_lea.vmem [#allocation3], %s12535_s22  ;;  %s13169_s22 = sld [smem:[#allocation63_spill]] }
 0xa89   :  { %v5673_v53 = vld [vmem:[%s5672_s10] sm:$0x1]  ;;  %s13165_s10 = sld [smem:[#allocation60_spill]] }
 0xa8a   :  { %v5682_v22 = vld [vmem:[%s5681_s13] sm:$0x1] }
 0xa8b   :  { %v5691_v6 = vld [vmem:[%s5690_s4] sm:$0x1]  ;;  %s5746_s4 = scalar_lea.vmem [#allocation3], %s13166_s28 }
 0xa8c   :  { %v5700_v26 = vld [vmem:[%s5699_s0] sm:$0x1]  ;;  %s5755_s0 = scalar_lea.vmem [#allocation3], %s13167_s7 }
 0xa8d   :  { %v5709_v43 = vld [vmem:[%s5708_s5] sm:$0x1]  ;;  %s5701_s6 = scalar_lea.vmem [#allocation3], %s13161_s16  ;;  %s5771_s5 = scalar_lea.vmem [#allocation2], %s13168_s21 }
 0xa8e   :  { %v5718_v56 = vld [vmem:[%s5717_s1] sm:$0x1] }
 0xa8f   :  { %v5639_v19 = vld [vmem:[%s5638_s27] sm:$0x1]  ;;  %s5737_s13 = scalar_lea.vmem [#allocation3], %s13165_s10 }
 0xa90   :  { %v5648_v8 = vld [vmem:[%s5647_s2] sm:$0x1]  ;;  %v5640_v35 = vadd.f32 %v5639_v19, %v5637_v30  ;;  %s13170_s2 = sld [smem:[#allocation67_spill]] }
 0xa91   :  { %v5727_v60 = vld [vmem:[%s5726_s11] sm:$0x1]  ;;  %v5649_v44 = vadd.f32 %v5648_v8, %v5646_v2 }
 0xa92   :  { %v5736_v61 = vld [vmem:[%s5735_s9] sm:$0x1]  ;;  %v5641_v38 = vadd.f32 %v5640_v35, %v12563_v33 }
 0xa93   :  { %v5745_v15 = vld [vmem:[%s5744_s29] sm:$0x1]  ;;  %v5650_v7 = vadd.f32 %v5649_v44, %v12563_v33  ;;  %s5764_s29 = scalar_lea.vmem [#allocation3], %s13169_s22 }
 0xa94   :  { %v5657_v27 = vld [vmem:[%s5656_s25] sm:$0x1]  ;;  %s5773_s25 = scalar_lea.vmem [#allocation3], %s12553_s18 }
 0xa95   :  { %v5666_v24 = vld [vmem:[%s5665_s17] sm:$0x1]  ;;  %v5658_v29 = vadd.f32 %v5657_v27, %v5655_v59 }
 0xa96   :  { %v5675_v45 = vld [vmem:[%s5674_s12] sm:$0x1]  ;;  %v5667_v63 = vadd.f32 %v5666_v24, %v5664_v25  ;;  %5642 = vst [vmem:[%s13170_s2] sm:$0x1] %v5641_v38  ;;  %5651 = vst [vmem:[%s13170_s2 + $0x1] sm:$0x1] %v5650_v7 }
 0xa97   :  { %v5754_v0 = vld [vmem:[%s5753_s14] sm:$0x1]  ;;  %v5676_v23 = vadd.f32 %v5675_v45, %v5673_v53  ;;  %v5659_v48 = vadd.f32 %v5658_v29, %v12563_v33 }
 0xa98   :  { %v5763_v18 = vld [vmem:[%s5762_s30] sm:$0x1]  ;;  %v5668_v10 = vadd.f32 %v5667_v63, %v12563_v33 }
 0xa99   :  { %v5684_v3 = vld [vmem:[%s5683_s8] sm:$0x1]  ;;  %v5677_v58 = vadd.f32 %v5676_v23, %v12563_v33  ;;  %5660 = vst [vmem:[%s13170_s2 + $0x2] sm:$0x1] %v5659_v48 }
 0xa9a   :  { %v5693_v57 = vld [vmem:[%s5692_s26] sm:$0x1]  ;;  %v5685_v1 = vadd.f32 %v5684_v3, %v5682_v22  ;;  %5669 = vst [vmem:[%s13170_s2 + $0x3] sm:$0x1] %v5668_v10 }
 0xa9b   :  { %v5702_v42 = vld [vmem:[%s5701_s6] sm:$0x1]  ;;  %v5694_v34 = vadd.f32 %v5693_v57, %v5691_v6  ;;  %5678 = vst [vmem:[%s13170_s2 + $0x4] sm:$0x1] %v5677_v58 }
 0xa9c   :  { %v5711_v11 = vld [vmem:[%s5710_s15] sm:$0x1]  ;;  %v5703_v52 = vadd.f32 %v5702_v42, %v5700_v26  ;;  %v5686_v36 = vadd.f32 %v5685_v1, %v12563_v33 }
 0xa9d   :  { %v5720_v32 = vld [vmem:[%s5719_s19] sm:$0x1]  ;;  %v5695_v51 = vadd.f32 %v5694_v34, %v12563_v33  ;;  %v5712_v55 = vadd.f32 %v5711_v11, %v5709_v43 }
 0xa9e   :  { %v5729_v13 = vld [vmem:[%s5728_s3] sm:$0x1]  ;;  %v5721_v54 = vadd.f32 %v5720_v32, %v5718_v56  ;;  %v5704_v49 = vadd.f32 %v5703_v52, %v12563_v33  ;;  %5687 = vst [vmem:[%s13170_s2 + $0x5] sm:$0x1] %v5686_v36 }
 0xa9f   :  { %v5738_v31 = vld [vmem:[%s5737_s13] sm:$0x1]  ;;  %v5730_v16 = vadd.f32 %v5729_v13, %v5727_v60  ;;  %5696 = vst [vmem:[%s13170_s2 + $0x6] sm:$0x1] %v5695_v51  ;;  %v5713_v21 = vadd.f32 %v5712_v55, %v12563_v33 }
 0xaa0   :  { %v5747_v20 = vld [vmem:[%s5746_s4] sm:$0x1]  ;;  %v5739_v17 = vadd.f32 %v5738_v31, %v5736_v61  ;;  %v5722_v4 = vadd.f32 %v5721_v54, %v12563_v33  ;;  %5705 = vst [vmem:[%s13170_s2 + $0x7] sm:$0x1] %v5704_v49 }
 0xaa1   :  { %v5756_v12 = vld [vmem:[%s5755_s0] sm:$0x1]  ;;  %v5748_v50 = vadd.f32 %v5747_v20, %v5745_v15  ;;  %v5731_v39 = vadd.f32 %v5730_v16, %v12563_v33  ;;  %5714 = vst [vmem:[%s13170_s2 + $0x8] sm:$0x1] %v5713_v21 }
 0xaa2   :  { %v5772_v5 = vld [vmem:[%s5771_s5] sm:$0x1]  ;;  %v5757_v28 = vadd.f32 %v5756_v12, %v5754_v0  ;;  %v5740_v9 = vadd.f32 %v5739_v17, %v12563_v33  ;;  %5723 = vst [vmem:[%s13170_s2 + $0x9] sm:$0x1] %v5722_v4 }
 0xaa3   :  { %v5765_v62 = vld [vmem:[%s5764_s29] sm:$0x1]  ;;  %v5749_v41 = vadd.f32 %v5748_v50, %v12563_v33  ;;  %5732 = vst [vmem:[%s13170_s2 + $0xa] sm:$0x1] %v5731_v39 }
 0xaa4   :  { %v5774_v46 = vld [vmem:[%s5773_s25] sm:$0x1]  ;;  %v5766_v40 = vadd.f32 %v5765_v62, %v5763_v18  ;;  %v5758_v14 = vadd.f32 %v5757_v28, %v12563_v33  ;;  %5741 = vst [vmem:[%s13170_s2 + $0xb] sm:$0x1] %v5740_v9 }
 0xaa5   :  { %v5775_v37 = vadd.f32 %v5774_v46, %v5772_v5  ;;  %5750 = vst [vmem:[%s13170_s2 + $0xc] sm:$0x1] %v5749_v41 }
 0xaa6   :  { %v5767_v47 = vadd.f32 %v5766_v40, %v12563_v33  ;;  %5759 = vst [vmem:[%s13170_s2 + $0xd] sm:$0x1] %v5758_v14 }
 0xaa7   :  { %v5776_v30 = vadd.f32 %v5775_v37, %v12563_v33 }
 0xaa8   :  { %5768 = vst [vmem:[%s13170_s2 + $0xe] sm:$0x1] %v5767_v47 }
 0xaa9   :  { %5777 = vst [vmem:[%s13170_s2 + $0xf] sm:$0x1] %v5776_v30 }
 0xaaa   :  { %5782 = vsyncpa [#allocation5], 1 }
 0xaab   :  { %5783 = vsyncpa [#allocation11], 1 }
 0xaac   :  { %5784 = vsyncpa [#allocation14], 1 }
 0xaad   :  { %5785 = vsyncpa [#allocation17], 1 }
 0xaae   :  { %5786 = vsyncpa [#allocation20], 1 }
 0xaaf   :  { %5787 = vsyncpa [#allocation6], 1 }
 0xab0   :  { %5788 = vsyncpa [#allocation8], 1 }

</bundles_post_ra>
